<compile_context>
chip_gen: v5e
topology: v5e:2x2
jax: 0.10.0
libtpu: 0.0.40
codegen_flags: <defaults>
</compile_context>

<pallas_src>
import jax
import jax.numpy as jnp
from jax import lax
from jax.experimental import pallas as pl
from jax.experimental.pallas import tpu as pltpu

# ----- model hyper-parameters (small synthetic shapes) -----
B, L, VOCAB = 2, 8, 64
H, NUM_HEADS, HEAD_DIM, FF = 32, 2, 16, 64   # bert hidden / heads / head dim / ffn
G = 16                                        # gru_hidden_size
NUM_LABELS = 5
LN_EPS = 1e-12

# ----- packed small-parameter slab layout: (SLAB_ROWS, 128) f32, one row per param ----
R_LN0G, R_LN0B = 0, 1
R_BQKV = 2                     # [bq | bk | bv]  (3H lanes)
R_BO = 3
R_LN1G, R_LN1B = 4, 5
R_B1, R_B2 = 6, 7
R_LN2G, R_LN2B = 8, 9
R_BIH, R_BHH = 10, 11          # GRU biases, [fwd | bwd] (6G lanes)
R_FCB = 12
R_CRF_START, R_CRF_END = 13, 14
R_CRF_TRANS = 16               # rows 16..16+N-1 (stays inside one 8-row sublane group)
SLAB_ROWS = 24


# ----------------------------------------------------------------------------
# fused Pallas kernel (one batch element per grid step)
# ----------------------------------------------------------------------------
def fused_kernel(cmask_sm, seqend_sm, emb_ref, amask_ref,
                 wqkv_ref, wo_ref, w1_ref, w2_ref, wih_ref, whh_ref, fcw_ref, slab_ref,
                 tags_ref):
    f32 = jnp.float32
    b_idx = pl.program_id(0)

    # ---------------- hoisted parameter loads (once per grid step) -------------------
    def row(r, width):
        return slab_ref[r:r + 1, 0:width]

    ln0g, ln0b = row(R_LN0G, H), row(R_LN0B, H)
    bqkv = row(R_BQKV, 3 * H)
    bo = row(R_BO, H)
    ln1g, ln1b = row(R_LN1G, H), row(R_LN1B, H)
    b1, b2 = row(R_B1, FF), row(R_B2, H)
    ln2g, ln2b = row(R_LN2G, H), row(R_LN2B, H)
    bih = row(R_BIH, 6 * G)
    bhh = row(R_BHH, 6 * G)
    fcb = row(R_FCB, NUM_LABELS)
    crf_start = row(R_CRF_START, NUM_LABELS)
    crf_end = row(R_CRF_END, NUM_LABELS)
    crf_trans = slab_ref[R_CRF_TRANS:R_CRF_TRANS + NUM_LABELS, 0:NUM_LABELS]   # (N, N)

    wqkv = wqkv_ref[...]                       # (H, 3H)  bf16
    wo = wo_ref[...]                           # (H, H)   bf16
    w1 = w1_ref[...]                           # (H, FF)  bf16
    w2 = w2_ref[...]                           # (FF, H)  bf16
    wih = wih_ref[...]                         # (H, 6G)  bf16
    whh = whh_ref[...]                         # (2G, 3G) f32  rows [fwd ; bwd]
    fcw = fcw_ref[...]                         # (2G, N)  f32  rows [fwd ; bwd]
    whh_f, whh_b = whh[0:G, :], whh[G:2 * G, :]
    bhh_f, bhh_b = bhh[:, 0:3 * G], bhh[:, 3 * G:6 * G]
    fcw_f, fcw_b = fcw[0:G, :], fcw[G:2 * G, :]

    def ln(v, g, b):
        mu = jnp.mean(v, axis=-1, keepdims=True)
        var = jnp.mean((v - mu) ** 2, axis=-1, keepdims=True)
        return (v - mu) * lax.rsqrt(var + LN_EPS) * g + b

    # ---------------- mini-BERT encoder layer, one batch element: (L, H) -------------
    x = emb_ref[0]                             # (L, H) f32
    neg = (1.0 - amask_ref[0]) * -1e9          # (1, L) additive key mask

    h0 = ln(x, ln0g, ln0b)                     # embedding LayerNorm
    qkv = jnp.dot(h0.astype(jnp.bfloat16), wqkv,
                  preferred_element_type=f32) + bqkv                     # (L, 3H)

    inv_sqrt_d = 1.0 / (HEAD_DIM ** 0.5)
    attn = bo                                  # (1,H) bias, broadcasts to (L,H)
    for hh in range(NUM_HEADS):                # static, NUM_HEADS == 2
        q_sl = slice(hh * HEAD_DIM, (hh + 1) * HEAD_DIM)
        k_sl = slice(H + hh * HEAD_DIM, H + (hh + 1) * HEAD_DIM)
        v_sl = slice(2 * H + hh * HEAD_DIM, 2 * H + (hh + 1) * HEAD_DIM)
        qh, kh, vh = qkv[:, q_sl], qkv[:, k_sl], qkv[:, v_sl]
        s = lax.dot_general(qh, kh, (((1,), (1,)), ((), ())),
                            preferred_element_type=f32) * inv_sqrt_d + neg   # (L, L)
        m = jnp.max(s, axis=-1, keepdims=True)
        e = jnp.exp(s - m)
        p = e * pl.reciprocal(jnp.sum(e, axis=-1, keepdims=True), approx=True)
        ctx = jnp.dot(p, vh, preferred_element_type=f32)                     # (L, HD)
        # fold head context through its slice of the output projection (no concat)
        attn = attn + jnp.dot(ctx.astype(jnp.bfloat16), wo[q_sl, :],
                              preferred_element_type=f32)

    h1 = ln(h0 + attn, ln1g, ln1b)
    ff = jax.nn.gelu(jnp.dot(h1.astype(jnp.bfloat16), w1,
                             preferred_element_type=f32) + b1, approximate=True)
    ffo = jnp.dot(ff.astype(jnp.bfloat16), w2, preferred_element_type=f32) + b2
    h2 = ln(h1 + ffo, ln2g, ln2b)              # (L, H) == last_hidden_state

    # ---------------- bidirectional GRU (register-resident recurrence) ---------------
    # hoisted input-gate matmul for fwd+bwd in one go: (L, H) @ (H, 6G)
    gi = jnp.dot(h2.astype(jnp.bfloat16), wih, preferred_element_type=f32) + bih
    gi_f, gi_b = gi[:, 0:3 * G], gi[:, 3 * G:6 * G]        # hoisted lane split

    def gru_gate(gi_d, gh_d, h_d):             # PyTorch gate order [r | z | n]
        r = jax.nn.sigmoid(gi_d[:, 0:G] + gh_d[:, 0:G])
        z = jax.nn.sigmoid(gi_d[:, G:2 * G] + gh_d[:, G:2 * G])
        n = jnp.tanh(gi_d[:, 2 * G:3 * G] + r * gh_d[:, 2 * G:3 * G])
        return (1.0 - z) * n + z * h_d

    row_iota = lax.broadcasted_iota(jnp.int32, (L, 1), 0)  # hoisted
    hf = jnp.zeros((1, G), f32)
    hb = jnp.zeros((1, G), f32)
    fwd_acc = jnp.zeros((L, G), f32)
    bwd_acc = jnp.zeros((L, G), f32)
    for t in range(L):                         # statically unrolled recurrence
        tb = L - 1 - t
        ghf = jnp.dot(hf, whh_f, preferred_element_type=f32) + bhh_f        # (1, 3G)
        ghb = jnp.dot(hb, whh_b, preferred_element_type=f32) + bhh_b
        hf = gru_gate(gi_f[t:t + 1, :], ghf, hf)
        hb = gru_gate(gi_b[tb:tb + 1, :], ghb, hb)
        fwd_acc = jnp.where(row_iota == t, hf, fwd_acc)    # fwd output at position t
        bwd_acc = jnp.where(row_iota == tb, hb, bwd_acc)   # bwd output at position tb

    # ---------------- fc -> emissions (register values) ------------------------------
    em = (jnp.dot(fwd_acc, fcw_f, preferred_element_type=f32)
          + jnp.dot(bwd_acc, fcw_b, preferred_element_type=f32) + fcb)      # (L, N)

    # ---------------- CRF Viterbi forward (pure 2-D (N,N) math) ----------------------
    sub_iota = lax.broadcasted_iota(jnp.int32, (NUM_LABELS, NUM_LABELS), 0)
    lane_iota = lax.broadcasted_iota(jnp.int32, (NUM_LABELS, NUM_LABELS), 1)
    diag = sub_iota == lane_iota

    score = crf_start + em[0:1, :]                         # (1, N)
    bp = [jnp.zeros((1, NUM_LABELS), jnp.int32)]           # bp[t][0,j] = best prev tag
    for t in range(1, L):                      # statically unrolled
        # score as a column vector without a per-step transpose: diag-select + reduce
        sc_col = jnp.sum(
            jnp.where(diag, jnp.broadcast_to(score, (NUM_LABELS, NUM_LABELS)), 0.0),
            axis=1, keepdims=True)                         # (N, 1)
        ns = sc_col + crf_trans                            # ns[i,j] = score_i + T[i,j]
        best = jnp.max(ns, axis=0, keepdims=True)          # (1, N)
        bp.append(jnp.min(jnp.where(ns >= best, sub_iota, NUM_LABELS),
                          axis=0, keepdims=True))          # first-max tie-break
        m_t = cmask_sm[b_idx, t]                           # scalar from SMEM
        score = jnp.where(m_t > 0, best + em[t:t + 1, :], score)
    score = score + crf_end

    # ---------------- CRF backtrace (backpointers stay in registers) -----------------
    lane_n = lax.broadcasted_iota(jnp.int32, (1, NUM_LABELS), 1)
    lane_l = lax.broadcasted_iota(jnp.int32, (1, L), 1)
    best_fin = jnp.max(score, axis=-1, keepdims=True)
    last_tag = jnp.min(jnp.where(score >= best_fin, lane_n, NUM_LABELS),
                       axis=-1, keepdims=True)             # (1, 1) int32
    se = seqend_sm[b_idx]                                  # scalar seq_end

    zero = jnp.zeros((1, 1), jnp.int32)
    cur = zero
    tags = jnp.zeros((1, L), jnp.int32)
    for t in range(L - 1, -1, -1):             # statically unrolled backtrace
        tp1 = min(t + 1, L - 1)
        from_bp = jnp.max(jnp.where(lane_n == cur, bp[tp1], 0), axis=-1, keepdims=True)
        cur = jnp.where(se == t, last_tag, jnp.where(se > t, from_bp, zero))
        tags = jnp.where(lane_l == t, cur, tags)
    tags_ref[0] = tags                         # (1, L) -> output block (1, 1, L)


# ----------------------------------------------------------------------------
# parameters
# ----------------------------------------------------------------------------
def init_params(key):
    keys = iter(jax.random.split(key, 64))

    def nrm(shape, scale=0.02):
        return (scale * jax.random.normal(next(keys), shape)).astype(jnp.float32)

    p = {}
    p["tok_emb"] = nrm((VOCAB, H))
    p["pos_emb"] = nrm((L, H))
    p["ln0_g"] = jnp.ones((1, H), jnp.float32)
    p["ln0_b"] = jnp.zeros((1, H), jnp.float32)
    for name in ("q", "k", "v", "o"):
        p["w" + name] = nrm((H, H))
        p["b" + name] = jnp.zeros((1, H), jnp.float32)
    p["ln1_g"] = jnp.ones((1, H), jnp.float32)
    p["ln1_b"] = jnp.zeros((1, H), jnp.float32)
    p["w1"] = nrm((H, FF))
    p["b1"] = jnp.zeros((1, FF), jnp.float32)
    p["w2"] = nrm((FF, H))
    p["b2"] = jnp.zeros((1, H), jnp.float32)
    p["ln2_g"] = jnp.ones((1, H), jnp.float32)
    p["ln2_b"] = jnp.zeros((1, H), jnp.float32)

    # bidirectional GRU (gate order [r|z|n] per direction):
    #   gru_wih (H, 6G)  = [W_ih_fwd | W_ih_bwd]   (hoisted input-gate matmul)
    #   gru_whh (2G, 3G) = rows [W_hh_fwd ; W_hh_bwd]
    wih_f, wih_b = nrm((H, 3 * G), 0.1), nrm((H, 3 * G), 0.1)
    whh_f, whh_b = nrm((G, 3 * G), 0.1), nrm((G, 3 * G), 0.1)
    p["gru_wih"] = jnp.concatenate([wih_f, wih_b], axis=1)
    p["gru_bih"] = jnp.zeros((1, 6 * G), jnp.float32)
    p["gru_whh"] = jnp.concatenate([whh_f, whh_b], axis=0)
    p["gru_bhh"] = jnp.zeros((1, 6 * G), jnp.float32)

    p["fc_w"] = nrm((2 * G, NUM_LABELS), 0.1)    # rows ordered [fwd ; bwd]
    p["fc_b"] = jnp.zeros((1, NUM_LABELS), jnp.float32)
    p["crf_start"] = nrm((1, NUM_LABELS), 0.1)
    p["crf_end"] = nrm((1, NUM_LABELS), 0.1)
    p["crf_trans"] = nrm((NUM_LABELS, NUM_LABELS), 0.1)
    return p


def pack_params(p):
    """Pack all tiny params into one (SLAB_ROWS,128) slab; cast MXU weights to bf16."""
    slab = jnp.zeros((SLAB_ROWS, 128), jnp.float32)

    def put(s, r, vec):
        vec = vec.reshape(1, -1)
        return s.at[r:r + 1, 0:vec.shape[1]].set(vec)

    slab = put(slab, R_LN0G, p["ln0_g"]); slab = put(slab, R_LN0B, p["ln0_b"])
    slab = put(slab, R_BQKV, jnp.concatenate([p["bq"], p["bk"], p["bv"]], axis=1))
    slab = put(slab, R_BO, p["bo"])
    slab = put(slab, R_LN1G, p["ln1_g"]); slab = put(slab, R_LN1B, p["ln1_b"])
    slab = put(slab, R_B1, p["b1"]); slab = put(slab, R_B2, p["b2"])
    slab = put(slab, R_LN2G, p["ln2_g"]); slab = put(slab, R_LN2B, p["ln2_b"])
    slab = put(slab, R_BIH, p["gru_bih"]); slab = put(slab, R_BHH, p["gru_bhh"])
    slab = put(slab, R_FCB, p["fc_b"])
    slab = put(slab, R_CRF_START, p["crf_start"]); slab = put(slab, R_CRF_END, p["crf_end"])
    slab = slab.at[R_CRF_TRANS:R_CRF_TRANS + NUM_LABELS, 0:NUM_LABELS].set(p["crf_trans"])

    wqkv = jnp.concatenate([p["wq"], p["wk"], p["wv"]], axis=1).astype(jnp.bfloat16)
    wo = p["wo"].astype(jnp.bfloat16)
    w1 = p["w1"].astype(jnp.bfloat16)
    w2 = p["w2"].astype(jnp.bfloat16)
    wih = p["gru_wih"].astype(jnp.bfloat16)
    whh = p["gru_whh"]                        # keep recurrence in f32
    fcw = p["fc_w"]                           # keep CRF emissions in f32
    return wqkv, wo, w1, w2, wih, whh, fcw, slab


# ----------------------------------------------------------------------------
# forward: one fused pallas_call
# ----------------------------------------------------------------------------
def bert_gru_crf_forward(params, input_ids, attention_mask, labels=None):
    # BERT embedding gather kept in XLA glue (data-dependent gather).
    emb = (params["tok_emb"][input_ids] + params["pos_emb"][None]).astype(jnp.float32)
    amask3 = attention_mask.astype(jnp.float32).reshape(B, 1, L)
    crf_mask = attention_mask.at[:, 0].set(1).astype(jnp.int32)      # (B, L)
    seq_end = jnp.sum(crf_mask, axis=1).astype(jnp.int32) - 1        # (B,)

    mats = list(pack_params(params))

    in_specs = ([pl.BlockSpec((1, L, H), lambda i, *_: (i, 0, 0)),
                 pl.BlockSpec((1, 1, L), lambda i, *_: (i, 0, 0))]
                + [pl.BlockSpec(m.shape, lambda i, *_: (0, 0)) for m in mats])

    grid_spec = pltpu.PrefetchScalarGridSpec(
        num_scalar_prefetch=2,                 # crf_mask, seq_end -> SMEM
        grid=(B,),
        in_specs=in_specs,
        out_specs=pl.BlockSpec((1, 1, L), lambda i, *_: (i, 0, 0)),
    )

    tags3 = pl.pallas_call(
        fused_kernel,
        out_shape=jax.ShapeDtypeStruct((B, 1, L), jnp.int32),
        grid_spec=grid_spec,
        compiler_params=pltpu.CompilerParams(dimension_semantics=("parallel",)),
    )(crf_mask, seq_end, emb, amask3, *mats)

    loss = None                                # labels=None path of the reference module
    return loss, tags3[:, 0, :]


if __name__ == "__main__":
    key = jax.random.PRNGKey(0)
    params = init_params(key)

    input_ids = jax.random.randint(jax.random.fold_in(key, 123), (B, L), 0, VOCAB)
    attention_mask = jnp.array([[1] * L,
                                [1] * 5 + [0] * (L - 5)], dtype=jnp.int32)

    fwd = jax.jit(bert_gru_crf_forward)
    loss, tag_seq = fwd(params, input_ids, attention_mask)
    jax.block_until_ready(tag_seq)
    assert tag_seq.shape == (B, L) and tag_seq.dtype == jnp.int32
    assert loss is None
    assert bool(jnp.all((tag_seq >= 0) & (tag_seq < NUM_LABELS)))
    print("KERNEL_OK")
</pallas_src>

<mosaic_0001>
module attributes {stable_mosaic.version = 11 : i64} {
  func.func @fused_kernel(%arg0: i32, %arg1: memref<2x8xi32, #tpu.memory_space<smem>>, %arg2: memref<2xi32, #tpu.memory_space<smem>>, %arg3: memref<1x8x32xf32, #tpu.memory_space<vmem>>, %arg4: memref<1x1x8xf32, #tpu.memory_space<vmem>>, %arg5: memref<32x96xbf16, #tpu.memory_space<vmem>>, %arg6: memref<32x32xbf16, #tpu.memory_space<vmem>>, %arg7: memref<32x64xbf16, #tpu.memory_space<vmem>>, %arg8: memref<64x32xbf16, #tpu.memory_space<vmem>>, %arg9: memref<32x96xbf16, #tpu.memory_space<vmem>>, %arg10: memref<32x48xf32, #tpu.memory_space<vmem>>, %arg11: memref<32x5xf32, #tpu.memory_space<vmem>>, %arg12: memref<24x128xf32, #tpu.memory_space<vmem>>, %arg13: memref<1x1x8xi32, #tpu.memory_space<vmem>>) attributes {dimension_semantics = [#tpu.dimension_semantics<parallel>], iteration_bounds = array<i64: 2>, scalar_prefetch = 2 : i64, scratch_operands = 0 : i64, tpu.core_type = #tpu.core_type<tc>, window_params = [{transform_indices = @transform_0, window_bounds = array<i64: 1, 8, 32>}, {transform_indices = @transform_1, window_bounds = array<i64: 1, 1, 8>}, {pipeline_mode = #tpu.pipeline_mode<synchronous>, transform_indices = @transform_2, window_bounds = array<i64: 32, 96>}, {pipeline_mode = #tpu.pipeline_mode<synchronous>, transform_indices = @transform_3, window_bounds = array<i64: 32, 32>}, {pipeline_mode = #tpu.pipeline_mode<synchronous>, transform_indices = @transform_4, window_bounds = array<i64: 32, 64>}, {pipeline_mode = #tpu.pipeline_mode<synchronous>, transform_indices = @transform_5, window_bounds = array<i64: 64, 32>}, {pipeline_mode = #tpu.pipeline_mode<synchronous>, transform_indices = @transform_6, window_bounds = array<i64: 32, 96>}, {pipeline_mode = #tpu.pipeline_mode<synchronous>, transform_indices = @transform_7, window_bounds = array<i64: 32, 48>}, {pipeline_mode = #tpu.pipeline_mode<synchronous>, transform_indices = @transform_8, window_bounds = array<i64: 32, 5>}, {pipeline_mode = #tpu.pipeline_mode<synchronous>, transform_indices = @transform_9, window_bounds = array<i64: 24, 128>}, {transform_indices = @transform_10, window_bounds = array<i64: 1, 1, 8>}]} {
    %c0 = arith.constant 0 : index
    %c0_0 = arith.constant 0 : index
    %0 = vector.load %arg12[%c0, %c0_0] : memref<24x128xf32, #tpu.memory_space<vmem>>, vector<1x32xf32>
    %c1 = arith.constant 1 : index
    %c0_1 = arith.constant 0 : index
    %1 = vector.load %arg12[%c1, %c0_1] : memref<24x128xf32, #tpu.memory_space<vmem>>, vector<1x32xf32>
    %c2 = arith.constant 2 : index
    %c0_2 = arith.constant 0 : index
    %2 = vector.load %arg12[%c2, %c0_2] : memref<24x128xf32, #tpu.memory_space<vmem>>, vector<1x96xf32>
    %c3 = arith.constant 3 : index
    %c0_3 = arith.constant 0 : index
    %3 = vector.load %arg12[%c3, %c0_3] : memref<24x128xf32, #tpu.memory_space<vmem>>, vector<1x32xf32>
    %c4 = arith.constant 4 : index
    %c0_4 = arith.constant 0 : index
    %4 = vector.load %arg12[%c4, %c0_4] : memref<24x128xf32, #tpu.memory_space<vmem>>, vector<1x32xf32>
    %c5 = arith.constant 5 : index
    %c0_5 = arith.constant 0 : index
    %5 = vector.load %arg12[%c5, %c0_5] : memref<24x128xf32, #tpu.memory_space<vmem>>, vector<1x32xf32>
    %c6 = arith.constant 6 : index
    %c0_6 = arith.constant 0 : index
    %6 = vector.load %arg12[%c6, %c0_6] : memref<24x128xf32, #tpu.memory_space<vmem>>, vector<1x64xf32>
    %c7 = arith.constant 7 : index
    %c0_7 = arith.constant 0 : index
    %7 = vector.load %arg12[%c7, %c0_7] : memref<24x128xf32, #tpu.memory_space<vmem>>, vector<1x32xf32>
    %c8 = arith.constant 8 : index
    %c0_8 = arith.constant 0 : index
    %8 = vector.load %arg12[%c8, %c0_8] : memref<24x128xf32, #tpu.memory_space<vmem>>, vector<1x32xf32>
    %c9 = arith.constant 9 : index
    %c0_9 = arith.constant 0 : index
    %9 = vector.load %arg12[%c9, %c0_9] : memref<24x128xf32, #tpu.memory_space<vmem>>, vector<1x32xf32>
    %c10 = arith.constant 10 : index
    %c0_10 = arith.constant 0 : index
    %10 = vector.load %arg12[%c10, %c0_10] : memref<24x128xf32, #tpu.memory_space<vmem>>, vector<1x96xf32>
    %c11 = arith.constant 11 : index
    %c0_11 = arith.constant 0 : index
    %11 = vector.load %arg12[%c11, %c0_11] : memref<24x128xf32, #tpu.memory_space<vmem>>, vector<1x96xf32>
    %c12 = arith.constant 12 : index
    %c0_12 = arith.constant 0 : index
    %12 = vector.load %arg12[%c12, %c0_12] : memref<24x128xf32, #tpu.memory_space<vmem>>, vector<1x5xf32>
    %c13 = arith.constant 13 : index
    %c0_13 = arith.constant 0 : index
    %13 = vector.load %arg12[%c13, %c0_13] : memref<24x128xf32, #tpu.memory_space<vmem>>, vector<1x5xf32>
    %c14 = arith.constant 14 : index
    %c0_14 = arith.constant 0 : index
    %14 = vector.load %arg12[%c14, %c0_14] : memref<24x128xf32, #tpu.memory_space<vmem>>, vector<1x5xf32>
    %c16 = arith.constant 16 : index
    %c0_15 = arith.constant 0 : index
    %15 = vector.load %arg12[%c16, %c0_15] : memref<24x128xf32, #tpu.memory_space<vmem>>, vector<5x5xf32>
    %c0_16 = arith.constant 0 : index
    %c0_17 = arith.constant 0 : index
    %16 = vector.load %arg5[%c0_16, %c0_17] : memref<32x96xbf16, #tpu.memory_space<vmem>>, vector<32x96xbf16>
    %c0_18 = arith.constant 0 : index
    %c0_19 = arith.constant 0 : index
    %17 = vector.load %arg6[%c0_18, %c0_19] : memref<32x32xbf16, #tpu.memory_space<vmem>>, vector<32x32xbf16>
    %c0_20 = arith.constant 0 : index
    %c0_21 = arith.constant 0 : index
    %18 = vector.load %arg7[%c0_20, %c0_21] : memref<32x64xbf16, #tpu.memory_space<vmem>>, vector<32x64xbf16>
    %c0_22 = arith.constant 0 : index
    %c0_23 = arith.constant 0 : index
    %19 = vector.load %arg8[%c0_22, %c0_23] : memref<64x32xbf16, #tpu.memory_space<vmem>>, vector<64x32xbf16>
    %c0_24 = arith.constant 0 : index
    %c0_25 = arith.constant 0 : index
    %20 = vector.load %arg9[%c0_24, %c0_25] : memref<32x96xbf16, #tpu.memory_space<vmem>>, vector<32x96xbf16>
    %c0_26 = arith.constant 0 : index
    %c0_27 = arith.constant 0 : index
    %21 = vector.load %arg10[%c0_26, %c0_27] : memref<32x48xf32, #tpu.memory_space<vmem>>, vector<32x48xf32>
    %c0_28 = arith.constant 0 : index
    %c0_29 = arith.constant 0 : index
    %22 = vector.load %arg11[%c0_28, %c0_29] : memref<32x5xf32, #tpu.memory_space<vmem>>, vector<32x5xf32>
    %23 = vector.extract_strided_slice %21 {offsets = [0, 0], sizes = [16, 48], strides = [1, 1]} : vector<32x48xf32> to vector<16x48xf32>
    %24 = vector.extract_strided_slice %21 {offsets = [16, 0], sizes = [16, 48], strides = [1, 1]} : vector<32x48xf32> to vector<16x48xf32>
    %25 = vector.extract_strided_slice %11 {offsets = [0, 0], sizes = [1, 48], strides = [1, 1]} : vector<1x96xf32> to vector<1x48xf32>
    %26 = vector.extract_strided_slice %11 {offsets = [0, 48], sizes = [1, 48], strides = [1, 1]} : vector<1x96xf32> to vector<1x48xf32>
    %27 = vector.extract_strided_slice %22 {offsets = [0, 0], sizes = [16, 5], strides = [1, 1]} : vector<32x5xf32> to vector<16x5xf32>
    %28 = vector.extract_strided_slice %22 {offsets = [16, 0], sizes = [16, 5], strides = [1, 1]} : vector<32x5xf32> to vector<16x5xf32>
    %c0_30 = arith.constant 0 : index
    %c0_31 = arith.constant 0 : index
    %c0_32 = arith.constant 0 : index
    %29 = vector.load %arg3[%c0_30, %c0_31, %c0_32] : memref<1x8x32xf32, #tpu.memory_space<vmem>>, vector<1x8x32xf32>
    %30 = vector.shape_cast %29 : vector<1x8x32xf32> to vector<8x32xf32>
    %c0_33 = arith.constant 0 : index
    %c0_34 = arith.constant 0 : index
    %c0_35 = arith.constant 0 : index
    %31 = vector.load %arg4[%c0_33, %c0_34, %c0_35] : memref<1x1x8xf32, #tpu.memory_space<vmem>>, vector<1x1x8xf32>
    %32 = vector.shape_cast %31 : vector<1x1x8xf32> to vector<1x8xf32>
    %cst = arith.constant 1.000000e+00 : f32
    %33 = vector.broadcast %cst : f32 to vector<1x8xf32>
    %34 = arith.subf %33, %32 : vector<1x8xf32>
    %cst_36 = arith.constant -1.000000e+09 : f32
    %35 = vector.broadcast %cst_36 : f32 to vector<1x8xf32>
    %36 = arith.mulf %34, %35 : vector<1x8xf32>
    %cst_37 = arith.constant dense<0.000000e+00> : vector<8xf32>
    %37 = vector.multi_reduction <add>, %30, %cst_37 [1] : vector<8x32xf32> to vector<8xf32>
    %38 = vector.shape_cast %37 : vector<8xf32> to vector<8x1xf32>
    %cst_38 = arith.constant 3.200000e+01 : f32
    %39 = vector.broadcast %cst_38 : f32 to vector<8x1xf32>
    %40 = arith.divf %38, %39 : vector<8x1xf32>
    %41 = vector.broadcast %40 : vector<8x1xf32> to vector<8x32xf32>
    %42 = arith.subf %30, %41 : vector<8x32xf32>
    %43 = arith.mulf %42, %42 : vector<8x32xf32>
    %cst_39 = arith.constant dense<0.000000e+00> : vector<8xf32>
    %44 = vector.multi_reduction <add>, %43, %cst_39 [1] : vector<8x32xf32> to vector<8xf32>
    %45 = vector.shape_cast %44 : vector<8xf32> to vector<8x1xf32>
    %cst_40 = arith.constant 3.200000e+01 : f32
    %46 = vector.broadcast %cst_40 : f32 to vector<8x1xf32>
    %47 = arith.divf %45, %46 : vector<8x1xf32>
    %48 = vector.broadcast %40 : vector<8x1xf32> to vector<8x32xf32>
    %49 = arith.subf %30, %48 : vector<8x32xf32>
    %cst_41 = arith.constant 9.99999996E-13 : f32
    %50 = vector.broadcast %cst_41 : f32 to vector<8x1xf32>
    %51 = arith.addf %47, %50 : vector<8x1xf32>
    %52 = math.rsqrt %51 : vector<8x1xf32>
    %53 = vector.broadcast %52 : vector<8x1xf32> to vector<8x32xf32>
    %54 = arith.mulf %49, %53 : vector<8x32xf32>
    %55 = vector.broadcast %0 : vector<1x32xf32> to vector<8x32xf32>
    %56 = arith.mulf %54, %55 : vector<8x32xf32>
    %57 = vector.broadcast %1 : vector<1x32xf32> to vector<8x32xf32>
    %58 = arith.addf %56, %57 : vector<8x32xf32>
    %59 = arith.truncf %58 : vector<8x32xf32> to vector<8x32xbf16>
    %cst_42 = arith.constant dense<0.000000e+00> : vector<8x96xf32>
    %60 = tpu.matmul %59, %16, %cst_42 {dimension_numbers = #tpu.dot_dimension_numbers<[1], [0], [0], [1], [0, 0, 1, 1], [], []>} : vector<8x32xbf16>, vector<32x96xbf16>, vector<8x96xf32> -> vector<8x96xf32>
    %61 = vector.broadcast %2 : vector<1x96xf32> to vector<8x96xf32>
    %62 = arith.addf %60, %61 : vector<8x96xf32>
    %63 = vector.extract_strided_slice %62 {offsets = [0, 0], sizes = [8, 16], strides = [1, 1]} : vector<8x96xf32> to vector<8x16xf32>
    %64 = vector.extract_strided_slice %62 {offsets = [0, 32], sizes = [8, 16], strides = [1, 1]} : vector<8x96xf32> to vector<8x16xf32>
    %65 = vector.extract_strided_slice %62 {offsets = [0, 64], sizes = [8, 16], strides = [1, 1]} : vector<8x96xf32> to vector<8x16xf32>
    %cst_43 = arith.constant dense<0.000000e+00> : vector<8x8xf32>
    %66 = tpu.matmul %63, %64, %cst_43 {dimension_numbers = #tpu.dot_dimension_numbers<[1], [1], [0], [0], [0, 0, 1, 0], [], []>} : vector<8x16xf32>, vector<8x16xf32>, vector<8x8xf32> -> vector<8x8xf32>
    %cst_44 = arith.constant 2.500000e-01 : f32
    %67 = vector.broadcast %cst_44 : f32 to vector<8x8xf32>
    %68 = arith.mulf %66, %67 : vector<8x8xf32>
    %69 = vector.broadcast %36 : vector<1x8xf32> to vector<8x8xf32>
    %70 = arith.addf %68, %69 : vector<8x8xf32>
    %cst_45 = arith.constant dense<0xFF800000> : vector<8xf32>
    %71 = vector.multi_reduction <maximumf>, %70, %cst_45 [1] : vector<8x8xf32> to vector<8xf32>
    %72 = vector.shape_cast %71 : vector<8xf32> to vector<8x1xf32>
    %73 = vector.broadcast %72 : vector<8x1xf32> to vector<8x8xf32>
    %74 = arith.subf %70, %73 : vector<8x8xf32>
    %75 = math.exp %74 : vector<8x8xf32>
    %cst_46 = arith.constant dense<0.000000e+00> : vector<8xf32>
    %76 = vector.multi_reduction <add>, %75, %cst_46 [1] : vector<8x8xf32> to vector<8xf32>
    %77 = vector.shape_cast %76 : vector<8xf32> to vector<8x1xf32>
    %78 = tpu.reciprocal %77 {approx = true} : vector<8x1xf32> -> vector<8x1xf32>
    %79 = vector.broadcast %78 : vector<8x1xf32> to vector<8x8xf32>
    %80 = arith.mulf %75, %79 : vector<8x8xf32>
    %cst_47 = arith.constant dense<0.000000e+00> : vector<8x16xf32>
    %81 = tpu.matmul %80, %65, %cst_47 {dimension_numbers = #tpu.dot_dimension_numbers<[1], [0], [0], [1], [0, 0, 1, 1], [], []>} : vector<8x8xf32>, vector<8x16xf32>, vector<8x16xf32> -> vector<8x16xf32>
    %82 = arith.truncf %81 : vector<8x16xf32> to vector<8x16xbf16>
    %83 = vector.extract_strided_slice %17 {offsets = [0, 0], sizes = [16, 32], strides = [1, 1]} : vector<32x32xbf16> to vector<16x32xbf16>
    %cst_48 = arith.constant dense<0.000000e+00> : vector<8x32xf32>
    %84 = tpu.matmul %82, %83, %cst_48 {dimension_numbers = #tpu.dot_dimension_numbers<[1], [0], [0], [1], [0, 0, 1, 1], [], []>} : vector<8x16xbf16>, vector<16x32xbf16>, vector<8x32xf32> -> vector<8x32xf32>
    %85 = vector.broadcast %3 : vector<1x32xf32> to vector<8x32xf32>
    %86 = arith.addf %85, %84 : vector<8x32xf32>
    %87 = vector.extract_strided_slice %62 {offsets = [0, 16], sizes = [8, 16], strides = [1, 1]} : vector<8x96xf32> to vector<8x16xf32>
    %88 = vector.extract_strided_slice %62 {offsets = [0, 48], sizes = [8, 16], strides = [1, 1]} : vector<8x96xf32> to vector<8x16xf32>
    %89 = vector.extract_strided_slice %62 {offsets = [0, 80], sizes = [8, 16], strides = [1, 1]} : vector<8x96xf32> to vector<8x16xf32>
    %cst_49 = arith.constant dense<0.000000e+00> : vector<8x8xf32>
    %90 = tpu.matmul %87, %88, %cst_49 {dimension_numbers = #tpu.dot_dimension_numbers<[1], [1], [0], [0], [0, 0, 1, 0], [], []>} : vector<8x16xf32>, vector<8x16xf32>, vector<8x8xf32> -> vector<8x8xf32>
    %cst_50 = arith.constant 2.500000e-01 : f32
    %91 = vector.broadcast %cst_50 : f32 to vector<8x8xf32>
    %92 = arith.mulf %90, %91 : vector<8x8xf32>
    %93 = vector.broadcast %36 : vector<1x8xf32> to vector<8x8xf32>
    %94 = arith.addf %92, %93 : vector<8x8xf32>
    %cst_51 = arith.constant dense<0xFF800000> : vector<8xf32>
    %95 = vector.multi_reduction <maximumf>, %94, %cst_51 [1] : vector<8x8xf32> to vector<8xf32>
    %96 = vector.shape_cast %95 : vector<8xf32> to vector<8x1xf32>
    %97 = vector.broadcast %96 : vector<8x1xf32> to vector<8x8xf32>
    %98 = arith.subf %94, %97 : vector<8x8xf32>
    %99 = math.exp %98 : vector<8x8xf32>
    %cst_52 = arith.constant dense<0.000000e+00> : vector<8xf32>
    %100 = vector.multi_reduction <add>, %99, %cst_52 [1] : vector<8x8xf32> to vector<8xf32>
    %101 = vector.shape_cast %100 : vector<8xf32> to vector<8x1xf32>
    %102 = tpu.reciprocal %101 {approx = true} : vector<8x1xf32> -> vector<8x1xf32>
    %103 = vector.broadcast %102 : vector<8x1xf32> to vector<8x8xf32>
    %104 = arith.mulf %99, %103 : vector<8x8xf32>
    %cst_53 = arith.constant dense<0.000000e+00> : vector<8x16xf32>
    %105 = tpu.matmul %104, %89, %cst_53 {dimension_numbers = #tpu.dot_dimension_numbers<[1], [0], [0], [1], [0, 0, 1, 1], [], []>} : vector<8x8xf32>, vector<8x16xf32>, vector<8x16xf32> -> vector<8x16xf32>
    %106 = arith.truncf %105 : vector<8x16xf32> to vector<8x16xbf16>
    %107 = vector.extract_strided_slice %17 {offsets = [16, 0], sizes = [16, 32], strides = [1, 1]} : vector<32x32xbf16> to vector<16x32xbf16>
    %cst_54 = arith.constant dense<0.000000e+00> : vector<8x32xf32>
    %108 = tpu.matmul %106, %107, %cst_54 {dimension_numbers = #tpu.dot_dimension_numbers<[1], [0], [0], [1], [0, 0, 1, 1], [], []>} : vector<8x16xbf16>, vector<16x32xbf16>, vector<8x32xf32> -> vector<8x32xf32>
    %109 = arith.addf %86, %108 : vector<8x32xf32>
    %110 = arith.addf %58, %109 : vector<8x32xf32>
    %cst_55 = arith.constant dense<0.000000e+00> : vector<8xf32>
    %111 = vector.multi_reduction <add>, %110, %cst_55 [1] : vector<8x32xf32> to vector<8xf32>
    %112 = vector.shape_cast %111 : vector<8xf32> to vector<8x1xf32>
    %cst_56 = arith.constant 3.200000e+01 : f32
    %113 = vector.broadcast %cst_56 : f32 to vector<8x1xf32>
    %114 = arith.divf %112, %113 : vector<8x1xf32>
    %115 = vector.broadcast %114 : vector<8x1xf32> to vector<8x32xf32>
    %116 = arith.subf %110, %115 : vector<8x32xf32>
    %117 = arith.mulf %116, %116 : vector<8x32xf32>
    %cst_57 = arith.constant dense<0.000000e+00> : vector<8xf32>
    %118 = vector.multi_reduction <add>, %117, %cst_57 [1] : vector<8x32xf32> to vector<8xf32>
    %119 = vector.shape_cast %118 : vector<8xf32> to vector<8x1xf32>
    %cst_58 = arith.constant 3.200000e+01 : f32
    %120 = vector.broadcast %cst_58 : f32 to vector<8x1xf32>
    %121 = arith.divf %119, %120 : vector<8x1xf32>
    %122 = vector.broadcast %114 : vector<8x1xf32> to vector<8x32xf32>
    %123 = arith.subf %110, %122 : vector<8x32xf32>
    %cst_59 = arith.constant 9.99999996E-13 : f32
    %124 = vector.broadcast %cst_59 : f32 to vector<8x1xf32>
    %125 = arith.addf %121, %124 : vector<8x1xf32>
    %126 = math.rsqrt %125 : vector<8x1xf32>
    %127 = vector.broadcast %126 : vector<8x1xf32> to vector<8x32xf32>
    %128 = arith.mulf %123, %127 : vector<8x32xf32>
    %129 = vector.broadcast %4 : vector<1x32xf32> to vector<8x32xf32>
    %130 = arith.mulf %128, %129 : vector<8x32xf32>
    %131 = vector.broadcast %5 : vector<1x32xf32> to vector<8x32xf32>
    %132 = arith.addf %130, %131 : vector<8x32xf32>
    %133 = arith.truncf %132 : vector<8x32xf32> to vector<8x32xbf16>
    %cst_60 = arith.constant dense<0.000000e+00> : vector<8x64xf32>
    %134 = tpu.matmul %133, %18, %cst_60 {dimension_numbers = #tpu.dot_dimension_numbers<[1], [0], [0], [1], [0, 0, 1, 1], [], []>} : vector<8x32xbf16>, vector<32x64xbf16>, vector<8x64xf32> -> vector<8x64xf32>
    %135 = vector.broadcast %6 : vector<1x64xf32> to vector<8x64xf32>
    %136 = arith.addf %134, %135 : vector<8x64xf32>
    %137 = arith.mulf %136, %136 : vector<8x64xf32>
    %138 = arith.mulf %136, %137 : vector<8x64xf32>
    %cst_61 = arith.constant 4.471500e-02 : f32
    %139 = vector.broadcast %cst_61 : f32 to vector<8x64xf32>
    %140 = arith.mulf %139, %138 : vector<8x64xf32>
    %141 = arith.addf %136, %140 : vector<8x64xf32>
    %cst_62 = arith.constant 0.797884583 : f32
    %142 = vector.broadcast %cst_62 : f32 to vector<8x64xf32>
    %143 = arith.mulf %142, %141 : vector<8x64xf32>
    %144 = math.tanh %143 : vector<8x64xf32>
    %cst_63 = arith.constant 1.000000e+00 : f32
    %145 = vector.broadcast %cst_63 : f32 to vector<8x64xf32>
    %146 = arith.addf %145, %144 : vector<8x64xf32>
    %cst_64 = arith.constant 5.000000e-01 : f32
    %147 = vector.broadcast %cst_64 : f32 to vector<8x64xf32>
    %148 = arith.mulf %147, %146 : vector<8x64xf32>
    %149 = arith.mulf %136, %148 : vector<8x64xf32>
    %150 = arith.truncf %149 : vector<8x64xf32> to vector<8x64xbf16>
    %cst_65 = arith.constant dense<0.000000e+00> : vector<8x32xf32>
    %151 = tpu.matmul %150, %19, %cst_65 {dimension_numbers = #tpu.dot_dimension_numbers<[1], [0], [0], [1], [0, 0, 1, 1], [], []>} : vector<8x64xbf16>, vector<64x32xbf16>, vector<8x32xf32> -> vector<8x32xf32>
    %152 = vector.broadcast %7 : vector<1x32xf32> to vector<8x32xf32>
    %153 = arith.addf %151, %152 : vector<8x32xf32>
    %154 = arith.addf %132, %153 : vector<8x32xf32>
    %cst_66 = arith.constant dense<0.000000e+00> : vector<8xf32>
    %155 = vector.multi_reduction <add>, %154, %cst_66 [1] : vector<8x32xf32> to vector<8xf32>
    %156 = vector.shape_cast %155 : vector<8xf32> to vector<8x1xf32>
    %cst_67 = arith.constant 3.200000e+01 : f32
    %157 = vector.broadcast %cst_67 : f32 to vector<8x1xf32>
    %158 = arith.divf %156, %157 : vector<8x1xf32>
    %159 = vector.broadcast %158 : vector<8x1xf32> to vector<8x32xf32>
    %160 = arith.subf %154, %159 : vector<8x32xf32>
    %161 = arith.mulf %160, %160 : vector<8x32xf32>
    %cst_68 = arith.constant dense<0.000000e+00> : vector<8xf32>
    %162 = vector.multi_reduction <add>, %161, %cst_68 [1] : vector<8x32xf32> to vector<8xf32>
    %163 = vector.shape_cast %162 : vector<8xf32> to vector<8x1xf32>
    %cst_69 = arith.constant 3.200000e+01 : f32
    %164 = vector.broadcast %cst_69 : f32 to vector<8x1xf32>
    %165 = arith.divf %163, %164 : vector<8x1xf32>
    %166 = vector.broadcast %158 : vector<8x1xf32> to vector<8x32xf32>
    %167 = arith.subf %154, %166 : vector<8x32xf32>
    %cst_70 = arith.constant 9.99999996E-13 : f32
    %168 = vector.broadcast %cst_70 : f32 to vector<8x1xf32>
    %169 = arith.addf %165, %168 : vector<8x1xf32>
    %170 = math.rsqrt %169 : vector<8x1xf32>
    %171 = vector.broadcast %170 : vector<8x1xf32> to vector<8x32xf32>
    %172 = arith.mulf %167, %171 : vector<8x32xf32>
    %173 = vector.broadcast %8 : vector<1x32xf32> to vector<8x32xf32>
    %174 = arith.mulf %172, %173 : vector<8x32xf32>
    %175 = vector.broadcast %9 : vector<1x32xf32> to vector<8x32xf32>
    %176 = arith.addf %174, %175 : vector<8x32xf32>
    %177 = arith.truncf %176 : vector<8x32xf32> to vector<8x32xbf16>
    %cst_71 = arith.constant dense<0.000000e+00> : vector<8x96xf32>
    %178 = tpu.matmul %177, %20, %cst_71 {dimension_numbers = #tpu.dot_dimension_numbers<[1], [0], [0], [1], [0, 0, 1, 1], [], []>} : vector<8x32xbf16>, vector<32x96xbf16>, vector<8x96xf32> -> vector<8x96xf32>
    %179 = vector.broadcast %10 : vector<1x96xf32> to vector<8x96xf32>
    %180 = arith.addf %178, %179 : vector<8x96xf32>
    %181 = vector.extract_strided_slice %180 {offsets = [0, 0], sizes = [8, 48], strides = [1, 1]} : vector<8x96xf32> to vector<8x48xf32>
    %182 = vector.extract_strided_slice %180 {offsets = [0, 48], sizes = [8, 48], strides = [1, 1]} : vector<8x96xf32> to vector<8x48xf32>
    %183 = tpu.iota {dimensions = array<i32: 0>} : vector<8x1xi32>
    %cst_72 = arith.constant 0.000000e+00 : f32
    %184 = vector.broadcast %cst_72 : f32 to vector<1x16xf32>
    %cst_73 = arith.constant 0.000000e+00 : f32
    %185 = vector.broadcast %cst_73 : f32 to vector<1x16xf32>
    %cst_74 = arith.constant 0.000000e+00 : f32
    %186 = vector.broadcast %cst_74 : f32 to vector<8x16xf32>
    %cst_75 = arith.constant 0.000000e+00 : f32
    %187 = vector.broadcast %cst_75 : f32 to vector<8x16xf32>
    %cst_76 = arith.constant dense<0.000000e+00> : vector<1x48xf32>
    %188 = tpu.matmul %184, %23, %cst_76 {dimension_numbers = #tpu.dot_dimension_numbers<[1], [0], [0], [1], [0, 0, 1, 1], [], []>} : vector<1x16xf32>, vector<16x48xf32>, vector<1x48xf32> -> vector<1x48xf32>
    %189 = arith.addf %188, %25 : vector<1x48xf32>
    %cst_77 = arith.constant dense<0.000000e+00> : vector<1x48xf32>
    %190 = tpu.matmul %185, %24, %cst_77 {dimension_numbers = #tpu.dot_dimension_numbers<[1], [0], [0], [1], [0, 0, 1, 1], [], []>} : vector<1x16xf32>, vector<16x48xf32>, vector<1x48xf32> -> vector<1x48xf32>
    %191 = arith.addf %190, %26 : vector<1x48xf32>
    %192 = vector.extract_strided_slice %181 {offsets = [0, 0], sizes = [1, 48], strides = [1, 1]} : vector<8x48xf32> to vector<1x48xf32>
    %193 = vector.extract_strided_slice %192 {offsets = [0, 0], sizes = [1, 16], strides = [1, 1]} : vector<1x48xf32> to vector<1x16xf32>
    %194 = vector.extract_strided_slice %189 {offsets = [0, 0], sizes = [1, 16], strides = [1, 1]} : vector<1x48xf32> to vector<1x16xf32>
    %195 = arith.addf %193, %194 : vector<1x16xf32>
    %196 = arith.negf %195 : vector<1x16xf32>
    %197 = math.exp %196 : vector<1x16xf32>
    %cst_78 = arith.constant 1.000000e+00 : f32
    %198 = vector.broadcast %cst_78 : f32 to vector<1x16xf32>
    %199 = arith.addf %198, %197 : vector<1x16xf32>
    %200 = arith.divf %198, %199 : vector<1x16xf32>
    %201 = vector.extract_strided_slice %192 {offsets = [0, 16], sizes = [1, 16], strides = [1, 1]} : vector<1x48xf32> to vector<1x16xf32>
    %202 = vector.extract_strided_slice %189 {offsets = [0, 16], sizes = [1, 16], strides = [1, 1]} : vector<1x48xf32> to vector<1x16xf32>
    %203 = arith.addf %201, %202 : vector<1x16xf32>
    %204 = arith.negf %203 : vector<1x16xf32>
    %205 = math.exp %204 : vector<1x16xf32>
    %cst_79 = arith.constant 1.000000e+00 : f32
    %206 = vector.broadcast %cst_79 : f32 to vector<1x16xf32>
    %207 = arith.addf %206, %205 : vector<1x16xf32>
    %208 = arith.divf %206, %207 : vector<1x16xf32>
    %209 = vector.extract_strided_slice %192 {offsets = [0, 32], sizes = [1, 16], strides = [1, 1]} : vector<1x48xf32> to vector<1x16xf32>
    %210 = vector.extract_strided_slice %189 {offsets = [0, 32], sizes = [1, 16], strides = [1, 1]} : vector<1x48xf32> to vector<1x16xf32>
    %211 = arith.mulf %200, %210 : vector<1x16xf32>
    %212 = arith.addf %209, %211 : vector<1x16xf32>
    %213 = math.tanh %212 : vector<1x16xf32>
    %cst_80 = arith.constant 1.000000e+00 : f32
    %214 = vector.broadcast %cst_80 : f32 to vector<1x16xf32>
    %215 = arith.subf %214, %208 : vector<1x16xf32>
    %216 = arith.mulf %215, %213 : vector<1x16xf32>
    %217 = arith.mulf %208, %184 : vector<1x16xf32>
    %218 = arith.addf %216, %217 : vector<1x16xf32>
    %219 = vector.extract_strided_slice %182 {offsets = [7, 0], sizes = [1, 48], strides = [1, 1]} : vector<8x48xf32> to vector<1x48xf32>
    %220 = vector.extract_strided_slice %219 {offsets = [0, 0], sizes = [1, 16], strides = [1, 1]} : vector<1x48xf32> to vector<1x16xf32>
    %221 = vector.extract_strided_slice %191 {offsets = [0, 0], sizes = [1, 16], strides = [1, 1]} : vector<1x48xf32> to vector<1x16xf32>
    %222 = arith.addf %220, %221 : vector<1x16xf32>
    %223 = arith.negf %222 : vector<1x16xf32>
    %224 = math.exp %223 : vector<1x16xf32>
    %cst_81 = arith.constant 1.000000e+00 : f32
    %225 = vector.broadcast %cst_81 : f32 to vector<1x16xf32>
    %226 = arith.addf %225, %224 : vector<1x16xf32>
    %227 = arith.divf %225, %226 : vector<1x16xf32>
    %228 = vector.extract_strided_slice %219 {offsets = [0, 16], sizes = [1, 16], strides = [1, 1]} : vector<1x48xf32> to vector<1x16xf32>
    %229 = vector.extract_strided_slice %191 {offsets = [0, 16], sizes = [1, 16], strides = [1, 1]} : vector<1x48xf32> to vector<1x16xf32>
    %230 = arith.addf %228, %229 : vector<1x16xf32>
    %231 = arith.negf %230 : vector<1x16xf32>
    %232 = math.exp %231 : vector<1x16xf32>
    %cst_82 = arith.constant 1.000000e+00 : f32
    %233 = vector.broadcast %cst_82 : f32 to vector<1x16xf32>
    %234 = arith.addf %233, %232 : vector<1x16xf32>
    %235 = arith.divf %233, %234 : vector<1x16xf32>
    %236 = vector.extract_strided_slice %219 {offsets = [0, 32], sizes = [1, 16], strides = [1, 1]} : vector<1x48xf32> to vector<1x16xf32>
    %237 = vector.extract_strided_slice %191 {offsets = [0, 32], sizes = [1, 16], strides = [1, 1]} : vector<1x48xf32> to vector<1x16xf32>
    %238 = arith.mulf %227, %237 : vector<1x16xf32>
    %239 = arith.addf %236, %238 : vector<1x16xf32>
    %240 = math.tanh %239 : vector<1x16xf32>
    %cst_83 = arith.constant 1.000000e+00 : f32
    %241 = vector.broadcast %cst_83 : f32 to vector<1x16xf32>
    %242 = arith.subf %241, %235 : vector<1x16xf32>
    %243 = arith.mulf %242, %240 : vector<1x16xf32>
    %244 = arith.mulf %235, %185 : vector<1x16xf32>
    %245 = arith.addf %243, %244 : vector<1x16xf32>
    %c0_i32 = arith.constant 0 : i32
    %246 = vector.broadcast %c0_i32 : i32 to vector<8x1xi32>
    %247 = arith.cmpi eq, %183, %246 : vector<8x1xi32>
    %248 = vector.shape_cast %247 : vector<8x1xi1> to vector<8x1xi1>
    %249 = vector.broadcast %248 : vector<8x1xi1> to vector<8x16xi1>
    %250 = vector.shape_cast %218 : vector<1x16xf32> to vector<1x16xf32>
    %251 = vector.broadcast %250 : vector<1x16xf32> to vector<8x16xf32>
    %252 = arith.select %249, %251, %186 : vector<8x16xi1>, vector<8x16xf32>
    %c7_i32 = arith.constant 7 : i32
    %253 = vector.broadcast %c7_i32 : i32 to vector<8x1xi32>
    %254 = arith.cmpi eq, %183, %253 : vector<8x1xi32>
    %255 = vector.shape_cast %254 : vector<8x1xi1> to vector<8x1xi1>
    %256 = vector.broadcast %255 : vector<8x1xi1> to vector<8x16xi1>
    %257 = vector.shape_cast %245 : vector<1x16xf32> to vector<1x16xf32>
    %258 = vector.broadcast %257 : vector<1x16xf32> to vector<8x16xf32>
    %259 = arith.select %256, %258, %187 : vector<8x16xi1>, vector<8x16xf32>
    %cst_84 = arith.constant dense<0.000000e+00> : vector<1x48xf32>
    %260 = tpu.matmul %218, %23, %cst_84 {dimension_numbers = #tpu.dot_dimension_numbers<[1], [0], [0], [1], [0, 0, 1, 1], [], []>} : vector<1x16xf32>, vector<16x48xf32>, vector<1x48xf32> -> vector<1x48xf32>
    %261 = arith.addf %260, %25 : vector<1x48xf32>
    %cst_85 = arith.constant dense<0.000000e+00> : vector<1x48xf32>
    %262 = tpu.matmul %245, %24, %cst_85 {dimension_numbers = #tpu.dot_dimension_numbers<[1], [0], [0], [1], [0, 0, 1, 1], [], []>} : vector<1x16xf32>, vector<16x48xf32>, vector<1x48xf32> -> vector<1x48xf32>
    %263 = arith.addf %262, %26 : vector<1x48xf32>
    %264 = vector.extract_strided_slice %181 {offsets = [1, 0], sizes = [1, 48], strides = [1, 1]} : vector<8x48xf32> to vector<1x48xf32>
    %265 = vector.extract_strided_slice %264 {offsets = [0, 0], sizes = [1, 16], strides = [1, 1]} : vector<1x48xf32> to vector<1x16xf32>
    %266 = vector.extract_strided_slice %261 {offsets = [0, 0], sizes = [1, 16], strides = [1, 1]} : vector<1x48xf32> to vector<1x16xf32>
    %267 = arith.addf %265, %266 : vector<1x16xf32>
    %268 = arith.negf %267 : vector<1x16xf32>
    %269 = math.exp %268 : vector<1x16xf32>
    %cst_86 = arith.constant 1.000000e+00 : f32
    %270 = vector.broadcast %cst_86 : f32 to vector<1x16xf32>
    %271 = arith.addf %270, %269 : vector<1x16xf32>
    %272 = arith.divf %270, %271 : vector<1x16xf32>
    %273 = vector.extract_strided_slice %264 {offsets = [0, 16], sizes = [1, 16], strides = [1, 1]} : vector<1x48xf32> to vector<1x16xf32>
    %274 = vector.extract_strided_slice %261 {offsets = [0, 16], sizes = [1, 16], strides = [1, 1]} : vector<1x48xf32> to vector<1x16xf32>
    %275 = arith.addf %273, %274 : vector<1x16xf32>
    %276 = arith.negf %275 : vector<1x16xf32>
    %277 = math.exp %276 : vector<1x16xf32>
    %cst_87 = arith.constant 1.000000e+00 : f32
    %278 = vector.broadcast %cst_87 : f32 to vector<1x16xf32>
    %279 = arith.addf %278, %277 : vector<1x16xf32>
    %280 = arith.divf %278, %279 : vector<1x16xf32>
    %281 = vector.extract_strided_slice %264 {offsets = [0, 32], sizes = [1, 16], strides = [1, 1]} : vector<1x48xf32> to vector<1x16xf32>
    %282 = vector.extract_strided_slice %261 {offsets = [0, 32], sizes = [1, 16], strides = [1, 1]} : vector<1x48xf32> to vector<1x16xf32>
    %283 = arith.mulf %272, %282 : vector<1x16xf32>
    %284 = arith.addf %281, %283 : vector<1x16xf32>
    %285 = math.tanh %284 : vector<1x16xf32>
    %cst_88 = arith.constant 1.000000e+00 : f32
    %286 = vector.broadcast %cst_88 : f32 to vector<1x16xf32>
    %287 = arith.subf %286, %280 : vector<1x16xf32>
    %288 = arith.mulf %287, %285 : vector<1x16xf32>
    %289 = arith.mulf %280, %218 : vector<1x16xf32>
    %290 = arith.addf %288, %289 : vector<1x16xf32>
    %291 = vector.extract_strided_slice %182 {offsets = [6, 0], sizes = [1, 48], strides = [1, 1]} : vector<8x48xf32> to vector<1x48xf32>
    %292 = vector.extract_strided_slice %291 {offsets = [0, 0], sizes = [1, 16], strides = [1, 1]} : vector<1x48xf32> to vector<1x16xf32>
    %293 = vector.extract_strided_slice %263 {offsets = [0, 0], sizes = [1, 16], strides = [1, 1]} : vector<1x48xf32> to vector<1x16xf32>
    %294 = arith.addf %292, %293 : vector<1x16xf32>
    %295 = arith.negf %294 : vector<1x16xf32>
    %296 = math.exp %295 : vector<1x16xf32>
    %cst_89 = arith.constant 1.000000e+00 : f32
    %297 = vector.broadcast %cst_89 : f32 to vector<1x16xf32>
    %298 = arith.addf %297, %296 : vector<1x16xf32>
    %299 = arith.divf %297, %298 : vector<1x16xf32>
    %300 = vector.extract_strided_slice %291 {offsets = [0, 16], sizes = [1, 16], strides = [1, 1]} : vector<1x48xf32> to vector<1x16xf32>
    %301 = vector.extract_strided_slice %263 {offsets = [0, 16], sizes = [1, 16], strides = [1, 1]} : vector<1x48xf32> to vector<1x16xf32>
    %302 = arith.addf %300, %301 : vector<1x16xf32>
    %303 = arith.negf %302 : vector<1x16xf32>
    %304 = math.exp %303 : vector<1x16xf32>
    %cst_90 = arith.constant 1.000000e+00 : f32
    %305 = vector.broadcast %cst_90 : f32 to vector<1x16xf32>
    %306 = arith.addf %305, %304 : vector<1x16xf32>
    %307 = arith.divf %305, %306 : vector<1x16xf32>
    %308 = vector.extract_strided_slice %291 {offsets = [0, 32], sizes = [1, 16], strides = [1, 1]} : vector<1x48xf32> to vector<1x16xf32>
    %309 = vector.extract_strided_slice %263 {offsets = [0, 32], sizes = [1, 16], strides = [1, 1]} : vector<1x48xf32> to vector<1x16xf32>
    %310 = arith.mulf %299, %309 : vector<1x16xf32>
    %311 = arith.addf %308, %310 : vector<1x16xf32>
    %312 = math.tanh %311 : vector<1x16xf32>
    %cst_91 = arith.constant 1.000000e+00 : f32
    %313 = vector.broadcast %cst_91 : f32 to vector<1x16xf32>
    %314 = arith.subf %313, %307 : vector<1x16xf32>
    %315 = arith.mulf %314, %312 : vector<1x16xf32>
    %316 = arith.mulf %307, %245 : vector<1x16xf32>
    %317 = arith.addf %315, %316 : vector<1x16xf32>
    %c1_i32 = arith.constant 1 : i32
    %318 = vector.broadcast %c1_i32 : i32 to vector<8x1xi32>
    %319 = arith.cmpi eq, %183, %318 : vector<8x1xi32>
    %320 = vector.shape_cast %319 : vector<8x1xi1> to vector<8x1xi1>
    %321 = vector.broadcast %320 : vector<8x1xi1> to vector<8x16xi1>
    %322 = vector.shape_cast %290 : vector<1x16xf32> to vector<1x16xf32>
    %323 = vector.broadcast %322 : vector<1x16xf32> to vector<8x16xf32>
    %324 = arith.select %321, %323, %252 : vector<8x16xi1>, vector<8x16xf32>
    %c6_i32 = arith.constant 6 : i32
    %325 = vector.broadcast %c6_i32 : i32 to vector<8x1xi32>
    %326 = arith.cmpi eq, %183, %325 : vector<8x1xi32>
    %327 = vector.shape_cast %326 : vector<8x1xi1> to vector<8x1xi1>
    %328 = vector.broadcast %327 : vector<8x1xi1> to vector<8x16xi1>
    %329 = vector.shape_cast %317 : vector<1x16xf32> to vector<1x16xf32>
    %330 = vector.broadcast %329 : vector<1x16xf32> to vector<8x16xf32>
    %331 = arith.select %328, %330, %259 : vector<8x16xi1>, vector<8x16xf32>
    %cst_92 = arith.constant dense<0.000000e+00> : vector<1x48xf32>
    %332 = tpu.matmul %290, %23, %cst_92 {dimension_numbers = #tpu.dot_dimension_numbers<[1], [0], [0], [1], [0, 0, 1, 1], [], []>} : vector<1x16xf32>, vector<16x48xf32>, vector<1x48xf32> -> vector<1x48xf32>
    %333 = arith.addf %332, %25 : vector<1x48xf32>
    %cst_93 = arith.constant dense<0.000000e+00> : vector<1x48xf32>
    %334 = tpu.matmul %317, %24, %cst_93 {dimension_numbers = #tpu.dot_dimension_numbers<[1], [0], [0], [1], [0, 0, 1, 1], [], []>} : vector<1x16xf32>, vector<16x48xf32>, vector<1x48xf32> -> vector<1x48xf32>
    %335 = arith.addf %334, %26 : vector<1x48xf32>
    %336 = vector.extract_strided_slice %181 {offsets = [2, 0], sizes = [1, 48], strides = [1, 1]} : vector<8x48xf32> to vector<1x48xf32>
    %337 = vector.extract_strided_slice %336 {offsets = [0, 0], sizes = [1, 16], strides = [1, 1]} : vector<1x48xf32> to vector<1x16xf32>
    %338 = vector.extract_strided_slice %333 {offsets = [0, 0], sizes = [1, 16], strides = [1, 1]} : vector<1x48xf32> to vector<1x16xf32>
    %339 = arith.addf %337, %338 : vector<1x16xf32>
    %340 = arith.negf %339 : vector<1x16xf32>
    %341 = math.exp %340 : vector<1x16xf32>
    %cst_94 = arith.constant 1.000000e+00 : f32
    %342 = vector.broadcast %cst_94 : f32 to vector<1x16xf32>
    %343 = arith.addf %342, %341 : vector<1x16xf32>
    %344 = arith.divf %342, %343 : vector<1x16xf32>
    %345 = vector.extract_strided_slice %336 {offsets = [0, 16], sizes = [1, 16], strides = [1, 1]} : vector<1x48xf32> to vector<1x16xf32>
    %346 = vector.extract_strided_slice %333 {offsets = [0, 16], sizes = [1, 16], strides = [1, 1]} : vector<1x48xf32> to vector<1x16xf32>
    %347 = arith.addf %345, %346 : vector<1x16xf32>
    %348 = arith.negf %347 : vector<1x16xf32>
    %349 = math.exp %348 : vector<1x16xf32>
    %cst_95 = arith.constant 1.000000e+00 : f32
    %350 = vector.broadcast %cst_95 : f32 to vector<1x16xf32>
    %351 = arith.addf %350, %349 : vector<1x16xf32>
    %352 = arith.divf %350, %351 : vector<1x16xf32>
    %353 = vector.extract_strided_slice %336 {offsets = [0, 32], sizes = [1, 16], strides = [1, 1]} : vector<1x48xf32> to vector<1x16xf32>
    %354 = vector.extract_strided_slice %333 {offsets = [0, 32], sizes = [1, 16], strides = [1, 1]} : vector<1x48xf32> to vector<1x16xf32>
    %355 = arith.mulf %344, %354 : vector<1x16xf32>
    %356 = arith.addf %353, %355 : vector<1x16xf32>
    %357 = math.tanh %356 : vector<1x16xf32>
    %cst_96 = arith.constant 1.000000e+00 : f32
    %358 = vector.broadcast %cst_96 : f32 to vector<1x16xf32>
    %359 = arith.subf %358, %352 : vector<1x16xf32>
    %360 = arith.mulf %359, %357 : vector<1x16xf32>
    %361 = arith.mulf %352, %290 : vector<1x16xf32>
    %362 = arith.addf %360, %361 : vector<1x16xf32>
    %363 = vector.extract_strided_slice %182 {offsets = [5, 0], sizes = [1, 48], strides = [1, 1]} : vector<8x48xf32> to vector<1x48xf32>
    %364 = vector.extract_strided_slice %363 {offsets = [0, 0], sizes = [1, 16], strides = [1, 1]} : vector<1x48xf32> to vector<1x16xf32>
    %365 = vector.extract_strided_slice %335 {offsets = [0, 0], sizes = [1, 16], strides = [1, 1]} : vector<1x48xf32> to vector<1x16xf32>
    %366 = arith.addf %364, %365 : vector<1x16xf32>
    %367 = arith.negf %366 : vector<1x16xf32>
    %368 = math.exp %367 : vector<1x16xf32>
    %cst_97 = arith.constant 1.000000e+00 : f32
    %369 = vector.broadcast %cst_97 : f32 to vector<1x16xf32>
    %370 = arith.addf %369, %368 : vector<1x16xf32>
    %371 = arith.divf %369, %370 : vector<1x16xf32>
    %372 = vector.extract_strided_slice %363 {offsets = [0, 16], sizes = [1, 16], strides = [1, 1]} : vector<1x48xf32> to vector<1x16xf32>
    %373 = vector.extract_strided_slice %335 {offsets = [0, 16], sizes = [1, 16], strides = [1, 1]} : vector<1x48xf32> to vector<1x16xf32>
    %374 = arith.addf %372, %373 : vector<1x16xf32>
    %375 = arith.negf %374 : vector<1x16xf32>
    %376 = math.exp %375 : vector<1x16xf32>
    %cst_98 = arith.constant 1.000000e+00 : f32
    %377 = vector.broadcast %cst_98 : f32 to vector<1x16xf32>
    %378 = arith.addf %377, %376 : vector<1x16xf32>
    %379 = arith.divf %377, %378 : vector<1x16xf32>
    %380 = vector.extract_strided_slice %363 {offsets = [0, 32], sizes = [1, 16], strides = [1, 1]} : vector<1x48xf32> to vector<1x16xf32>
    %381 = vector.extract_strided_slice %335 {offsets = [0, 32], sizes = [1, 16], strides = [1, 1]} : vector<1x48xf32> to vector<1x16xf32>
    %382 = arith.mulf %371, %381 : vector<1x16xf32>
    %383 = arith.addf %380, %382 : vector<1x16xf32>
    %384 = math.tanh %383 : vector<1x16xf32>
    %cst_99 = arith.constant 1.000000e+00 : f32
    %385 = vector.broadcast %cst_99 : f32 to vector<1x16xf32>
    %386 = arith.subf %385, %379 : vector<1x16xf32>
    %387 = arith.mulf %386, %384 : vector<1x16xf32>
    %388 = arith.mulf %379, %317 : vector<1x16xf32>
    %389 = arith.addf %387, %388 : vector<1x16xf32>
    %c2_i32 = arith.constant 2 : i32
    %390 = vector.broadcast %c2_i32 : i32 to vector<8x1xi32>
    %391 = arith.cmpi eq, %183, %390 : vector<8x1xi32>
    %392 = vector.shape_cast %391 : vector<8x1xi1> to vector<8x1xi1>
    %393 = vector.broadcast %392 : vector<8x1xi1> to vector<8x16xi1>
    %394 = vector.shape_cast %362 : vector<1x16xf32> to vector<1x16xf32>
    %395 = vector.broadcast %394 : vector<1x16xf32> to vector<8x16xf32>
    %396 = arith.select %393, %395, %324 : vector<8x16xi1>, vector<8x16xf32>
    %c5_i32 = arith.constant 5 : i32
    %397 = vector.broadcast %c5_i32 : i32 to vector<8x1xi32>
    %398 = arith.cmpi eq, %183, %397 : vector<8x1xi32>
    %399 = vector.shape_cast %398 : vector<8x1xi1> to vector<8x1xi1>
    %400 = vector.broadcast %399 : vector<8x1xi1> to vector<8x16xi1>
    %401 = vector.shape_cast %389 : vector<1x16xf32> to vector<1x16xf32>
    %402 = vector.broadcast %401 : vector<1x16xf32> to vector<8x16xf32>
    %403 = arith.select %400, %402, %331 : vector<8x16xi1>, vector<8x16xf32>
    %cst_100 = arith.constant dense<0.000000e+00> : vector<1x48xf32>
    %404 = tpu.matmul %362, %23, %cst_100 {dimension_numbers = #tpu.dot_dimension_numbers<[1], [0], [0], [1], [0, 0, 1, 1], [], []>} : vector<1x16xf32>, vector<16x48xf32>, vector<1x48xf32> -> vector<1x48xf32>
    %405 = arith.addf %404, %25 : vector<1x48xf32>
    %cst_101 = arith.constant dense<0.000000e+00> : vector<1x48xf32>
    %406 = tpu.matmul %389, %24, %cst_101 {dimension_numbers = #tpu.dot_dimension_numbers<[1], [0], [0], [1], [0, 0, 1, 1], [], []>} : vector<1x16xf32>, vector<16x48xf32>, vector<1x48xf32> -> vector<1x48xf32>
    %407 = arith.addf %406, %26 : vector<1x48xf32>
    %408 = vector.extract_strided_slice %181 {offsets = [3, 0], sizes = [1, 48], strides = [1, 1]} : vector<8x48xf32> to vector<1x48xf32>
    %409 = vector.extract_strided_slice %408 {offsets = [0, 0], sizes = [1, 16], strides = [1, 1]} : vector<1x48xf32> to vector<1x16xf32>
    %410 = vector.extract_strided_slice %405 {offsets = [0, 0], sizes = [1, 16], strides = [1, 1]} : vector<1x48xf32> to vector<1x16xf32>
    %411 = arith.addf %409, %410 : vector<1x16xf32>
    %412 = arith.negf %411 : vector<1x16xf32>
    %413 = math.exp %412 : vector<1x16xf32>
    %cst_102 = arith.constant 1.000000e+00 : f32
    %414 = vector.broadcast %cst_102 : f32 to vector<1x16xf32>
    %415 = arith.addf %414, %413 : vector<1x16xf32>
    %416 = arith.divf %414, %415 : vector<1x16xf32>
    %417 = vector.extract_strided_slice %408 {offsets = [0, 16], sizes = [1, 16], strides = [1, 1]} : vector<1x48xf32> to vector<1x16xf32>
    %418 = vector.extract_strided_slice %405 {offsets = [0, 16], sizes = [1, 16], strides = [1, 1]} : vector<1x48xf32> to vector<1x16xf32>
    %419 = arith.addf %417, %418 : vector<1x16xf32>
    %420 = arith.negf %419 : vector<1x16xf32>
    %421 = math.exp %420 : vector<1x16xf32>
    %cst_103 = arith.constant 1.000000e+00 : f32
    %422 = vector.broadcast %cst_103 : f32 to vector<1x16xf32>
    %423 = arith.addf %422, %421 : vector<1x16xf32>
    %424 = arith.divf %422, %423 : vector<1x16xf32>
    %425 = vector.extract_strided_slice %408 {offsets = [0, 32], sizes = [1, 16], strides = [1, 1]} : vector<1x48xf32> to vector<1x16xf32>
    %426 = vector.extract_strided_slice %405 {offsets = [0, 32], sizes = [1, 16], strides = [1, 1]} : vector<1x48xf32> to vector<1x16xf32>
    %427 = arith.mulf %416, %426 : vector<1x16xf32>
    %428 = arith.addf %425, %427 : vector<1x16xf32>
    %429 = math.tanh %428 : vector<1x16xf32>
    %cst_104 = arith.constant 1.000000e+00 : f32
    %430 = vector.broadcast %cst_104 : f32 to vector<1x16xf32>
    %431 = arith.subf %430, %424 : vector<1x16xf32>
    %432 = arith.mulf %431, %429 : vector<1x16xf32>
    %433 = arith.mulf %424, %362 : vector<1x16xf32>
    %434 = arith.addf %432, %433 : vector<1x16xf32>
    %435 = vector.extract_strided_slice %182 {offsets = [4, 0], sizes = [1, 48], strides = [1, 1]} : vector<8x48xf32> to vector<1x48xf32>
    %436 = vector.extract_strided_slice %435 {offsets = [0, 0], sizes = [1, 16], strides = [1, 1]} : vector<1x48xf32> to vector<1x16xf32>
    %437 = vector.extract_strided_slice %407 {offsets = [0, 0], sizes = [1, 16], strides = [1, 1]} : vector<1x48xf32> to vector<1x16xf32>
    %438 = arith.addf %436, %437 : vector<1x16xf32>
    %439 = arith.negf %438 : vector<1x16xf32>
    %440 = math.exp %439 : vector<1x16xf32>
    %cst_105 = arith.constant 1.000000e+00 : f32
    %441 = vector.broadcast %cst_105 : f32 to vector<1x16xf32>
    %442 = arith.addf %441, %440 : vector<1x16xf32>
    %443 = arith.divf %441, %442 : vector<1x16xf32>
    %444 = vector.extract_strided_slice %435 {offsets = [0, 16], sizes = [1, 16], strides = [1, 1]} : vector<1x48xf32> to vector<1x16xf32>
    %445 = vector.extract_strided_slice %407 {offsets = [0, 16], sizes = [1, 16], strides = [1, 1]} : vector<1x48xf32> to vector<1x16xf32>
    %446 = arith.addf %444, %445 : vector<1x16xf32>
    %447 = arith.negf %446 : vector<1x16xf32>
    %448 = math.exp %447 : vector<1x16xf32>
    %cst_106 = arith.constant 1.000000e+00 : f32
    %449 = vector.broadcast %cst_106 : f32 to vector<1x16xf32>
    %450 = arith.addf %449, %448 : vector<1x16xf32>
    %451 = arith.divf %449, %450 : vector<1x16xf32>
    %452 = vector.extract_strided_slice %435 {offsets = [0, 32], sizes = [1, 16], strides = [1, 1]} : vector<1x48xf32> to vector<1x16xf32>
    %453 = vector.extract_strided_slice %407 {offsets = [0, 32], sizes = [1, 16], strides = [1, 1]} : vector<1x48xf32> to vector<1x16xf32>
    %454 = arith.mulf %443, %453 : vector<1x16xf32>
    %455 = arith.addf %452, %454 : vector<1x16xf32>
    %456 = math.tanh %455 : vector<1x16xf32>
    %cst_107 = arith.constant 1.000000e+00 : f32
    %457 = vector.broadcast %cst_107 : f32 to vector<1x16xf32>
    %458 = arith.subf %457, %451 : vector<1x16xf32>
    %459 = arith.mulf %458, %456 : vector<1x16xf32>
    %460 = arith.mulf %451, %389 : vector<1x16xf32>
    %461 = arith.addf %459, %460 : vector<1x16xf32>
    %c3_i32 = arith.constant 3 : i32
    %462 = vector.broadcast %c3_i32 : i32 to vector<8x1xi32>
    %463 = arith.cmpi eq, %183, %462 : vector<8x1xi32>
    %464 = vector.shape_cast %463 : vector<8x1xi1> to vector<8x1xi1>
    %465 = vector.broadcast %464 : vector<8x1xi1> to vector<8x16xi1>
    %466 = vector.shape_cast %434 : vector<1x16xf32> to vector<1x16xf32>
    %467 = vector.broadcast %466 : vector<1x16xf32> to vector<8x16xf32>
    %468 = arith.select %465, %467, %396 : vector<8x16xi1>, vector<8x16xf32>
    %c4_i32 = arith.constant 4 : i32
    %469 = vector.broadcast %c4_i32 : i32 to vector<8x1xi32>
    %470 = arith.cmpi eq, %183, %469 : vector<8x1xi32>
    %471 = vector.shape_cast %470 : vector<8x1xi1> to vector<8x1xi1>
    %472 = vector.broadcast %471 : vector<8x1xi1> to vector<8x16xi1>
    %473 = vector.shape_cast %461 : vector<1x16xf32> to vector<1x16xf32>
    %474 = vector.broadcast %473 : vector<1x16xf32> to vector<8x16xf32>
    %475 = arith.select %472, %474, %403 : vector<8x16xi1>, vector<8x16xf32>
    %cst_108 = arith.constant dense<0.000000e+00> : vector<1x48xf32>
    %476 = tpu.matmul %434, %23, %cst_108 {dimension_numbers = #tpu.dot_dimension_numbers<[1], [0], [0], [1], [0, 0, 1, 1], [], []>} : vector<1x16xf32>, vector<16x48xf32>, vector<1x48xf32> -> vector<1x48xf32>
    %477 = arith.addf %476, %25 : vector<1x48xf32>
    %cst_109 = arith.constant dense<0.000000e+00> : vector<1x48xf32>
    %478 = tpu.matmul %461, %24, %cst_109 {dimension_numbers = #tpu.dot_dimension_numbers<[1], [0], [0], [1], [0, 0, 1, 1], [], []>} : vector<1x16xf32>, vector<16x48xf32>, vector<1x48xf32> -> vector<1x48xf32>
    %479 = arith.addf %478, %26 : vector<1x48xf32>
    %480 = vector.extract_strided_slice %181 {offsets = [4, 0], sizes = [1, 48], strides = [1, 1]} : vector<8x48xf32> to vector<1x48xf32>
    %481 = vector.extract_strided_slice %480 {offsets = [0, 0], sizes = [1, 16], strides = [1, 1]} : vector<1x48xf32> to vector<1x16xf32>
    %482 = vector.extract_strided_slice %477 {offsets = [0, 0], sizes = [1, 16], strides = [1, 1]} : vector<1x48xf32> to vector<1x16xf32>
    %483 = arith.addf %481, %482 : vector<1x16xf32>
    %484 = arith.negf %483 : vector<1x16xf32>
    %485 = math.exp %484 : vector<1x16xf32>
    %cst_110 = arith.constant 1.000000e+00 : f32
    %486 = vector.broadcast %cst_110 : f32 to vector<1x16xf32>
    %487 = arith.addf %486, %485 : vector<1x16xf32>
    %488 = arith.divf %486, %487 : vector<1x16xf32>
    %489 = vector.extract_strided_slice %480 {offsets = [0, 16], sizes = [1, 16], strides = [1, 1]} : vector<1x48xf32> to vector<1x16xf32>
    %490 = vector.extract_strided_slice %477 {offsets = [0, 16], sizes = [1, 16], strides = [1, 1]} : vector<1x48xf32> to vector<1x16xf32>
    %491 = arith.addf %489, %490 : vector<1x16xf32>
    %492 = arith.negf %491 : vector<1x16xf32>
    %493 = math.exp %492 : vector<1x16xf32>
    %cst_111 = arith.constant 1.000000e+00 : f32
    %494 = vector.broadcast %cst_111 : f32 to vector<1x16xf32>
    %495 = arith.addf %494, %493 : vector<1x16xf32>
    %496 = arith.divf %494, %495 : vector<1x16xf32>
    %497 = vector.extract_strided_slice %480 {offsets = [0, 32], sizes = [1, 16], strides = [1, 1]} : vector<1x48xf32> to vector<1x16xf32>
    %498 = vector.extract_strided_slice %477 {offsets = [0, 32], sizes = [1, 16], strides = [1, 1]} : vector<1x48xf32> to vector<1x16xf32>
    %499 = arith.mulf %488, %498 : vector<1x16xf32>
    %500 = arith.addf %497, %499 : vector<1x16xf32>
    %501 = math.tanh %500 : vector<1x16xf32>
    %cst_112 = arith.constant 1.000000e+00 : f32
    %502 = vector.broadcast %cst_112 : f32 to vector<1x16xf32>
    %503 = arith.subf %502, %496 : vector<1x16xf32>
    %504 = arith.mulf %503, %501 : vector<1x16xf32>
    %505 = arith.mulf %496, %434 : vector<1x16xf32>
    %506 = arith.addf %504, %505 : vector<1x16xf32>
    %507 = vector.extract_strided_slice %182 {offsets = [3, 0], sizes = [1, 48], strides = [1, 1]} : vector<8x48xf32> to vector<1x48xf32>
    %508 = vector.extract_strided_slice %507 {offsets = [0, 0], sizes = [1, 16], strides = [1, 1]} : vector<1x48xf32> to vector<1x16xf32>
    %509 = vector.extract_strided_slice %479 {offsets = [0, 0], sizes = [1, 16], strides = [1, 1]} : vector<1x48xf32> to vector<1x16xf32>
    %510 = arith.addf %508, %509 : vector<1x16xf32>
    %511 = arith.negf %510 : vector<1x16xf32>
    %512 = math.exp %511 : vector<1x16xf32>
    %cst_113 = arith.constant 1.000000e+00 : f32
    %513 = vector.broadcast %cst_113 : f32 to vector<1x16xf32>
    %514 = arith.addf %513, %512 : vector<1x16xf32>
    %515 = arith.divf %513, %514 : vector<1x16xf32>
    %516 = vector.extract_strided_slice %507 {offsets = [0, 16], sizes = [1, 16], strides = [1, 1]} : vector<1x48xf32> to vector<1x16xf32>
    %517 = vector.extract_strided_slice %479 {offsets = [0, 16], sizes = [1, 16], strides = [1, 1]} : vector<1x48xf32> to vector<1x16xf32>
    %518 = arith.addf %516, %517 : vector<1x16xf32>
    %519 = arith.negf %518 : vector<1x16xf32>
    %520 = math.exp %519 : vector<1x16xf32>
    %cst_114 = arith.constant 1.000000e+00 : f32
    %521 = vector.broadcast %cst_114 : f32 to vector<1x16xf32>
    %522 = arith.addf %521, %520 : vector<1x16xf32>
    %523 = arith.divf %521, %522 : vector<1x16xf32>
    %524 = vector.extract_strided_slice %507 {offsets = [0, 32], sizes = [1, 16], strides = [1, 1]} : vector<1x48xf32> to vector<1x16xf32>
    %525 = vector.extract_strided_slice %479 {offsets = [0, 32], sizes = [1, 16], strides = [1, 1]} : vector<1x48xf32> to vector<1x16xf32>
    %526 = arith.mulf %515, %525 : vector<1x16xf32>
    %527 = arith.addf %524, %526 : vector<1x16xf32>
    %528 = math.tanh %527 : vector<1x16xf32>
    %cst_115 = arith.constant 1.000000e+00 : f32
    %529 = vector.broadcast %cst_115 : f32 to vector<1x16xf32>
    %530 = arith.subf %529, %523 : vector<1x16xf32>
    %531 = arith.mulf %530, %528 : vector<1x16xf32>
    %532 = arith.mulf %523, %461 : vector<1x16xf32>
    %533 = arith.addf %531, %532 : vector<1x16xf32>
    %c4_i32_116 = arith.constant 4 : i32
    %534 = vector.broadcast %c4_i32_116 : i32 to vector<8x1xi32>
    %535 = arith.cmpi eq, %183, %534 : vector<8x1xi32>
    %536 = vector.shape_cast %535 : vector<8x1xi1> to vector<8x1xi1>
    %537 = vector.broadcast %536 : vector<8x1xi1> to vector<8x16xi1>
    %538 = vector.shape_cast %506 : vector<1x16xf32> to vector<1x16xf32>
    %539 = vector.broadcast %538 : vector<1x16xf32> to vector<8x16xf32>
    %540 = arith.select %537, %539, %468 : vector<8x16xi1>, vector<8x16xf32>
    %c3_i32_117 = arith.constant 3 : i32
    %541 = vector.broadcast %c3_i32_117 : i32 to vector<8x1xi32>
    %542 = arith.cmpi eq, %183, %541 : vector<8x1xi32>
    %543 = vector.shape_cast %542 : vector<8x1xi1> to vector<8x1xi1>
    %544 = vector.broadcast %543 : vector<8x1xi1> to vector<8x16xi1>
    %545 = vector.shape_cast %533 : vector<1x16xf32> to vector<1x16xf32>
    %546 = vector.broadcast %545 : vector<1x16xf32> to vector<8x16xf32>
    %547 = arith.select %544, %546, %475 : vector<8x16xi1>, vector<8x16xf32>
    %cst_118 = arith.constant dense<0.000000e+00> : vector<1x48xf32>
    %548 = tpu.matmul %506, %23, %cst_118 {dimension_numbers = #tpu.dot_dimension_numbers<[1], [0], [0], [1], [0, 0, 1, 1], [], []>} : vector<1x16xf32>, vector<16x48xf32>, vector<1x48xf32> -> vector<1x48xf32>
    %549 = arith.addf %548, %25 : vector<1x48xf32>
    %cst_119 = arith.constant dense<0.000000e+00> : vector<1x48xf32>
    %550 = tpu.matmul %533, %24, %cst_119 {dimension_numbers = #tpu.dot_dimension_numbers<[1], [0], [0], [1], [0, 0, 1, 1], [], []>} : vector<1x16xf32>, vector<16x48xf32>, vector<1x48xf32> -> vector<1x48xf32>
    %551 = arith.addf %550, %26 : vector<1x48xf32>
    %552 = vector.extract_strided_slice %181 {offsets = [5, 0], sizes = [1, 48], strides = [1, 1]} : vector<8x48xf32> to vector<1x48xf32>
    %553 = vector.extract_strided_slice %552 {offsets = [0, 0], sizes = [1, 16], strides = [1, 1]} : vector<1x48xf32> to vector<1x16xf32>
    %554 = vector.extract_strided_slice %549 {offsets = [0, 0], sizes = [1, 16], strides = [1, 1]} : vector<1x48xf32> to vector<1x16xf32>
    %555 = arith.addf %553, %554 : vector<1x16xf32>
    %556 = arith.negf %555 : vector<1x16xf32>
    %557 = math.exp %556 : vector<1x16xf32>
    %cst_120 = arith.constant 1.000000e+00 : f32
    %558 = vector.broadcast %cst_120 : f32 to vector<1x16xf32>
    %559 = arith.addf %558, %557 : vector<1x16xf32>
    %560 = arith.divf %558, %559 : vector<1x16xf32>
    %561 = vector.extract_strided_slice %552 {offsets = [0, 16], sizes = [1, 16], strides = [1, 1]} : vector<1x48xf32> to vector<1x16xf32>
    %562 = vector.extract_strided_slice %549 {offsets = [0, 16], sizes = [1, 16], strides = [1, 1]} : vector<1x48xf32> to vector<1x16xf32>
    %563 = arith.addf %561, %562 : vector<1x16xf32>
    %564 = arith.negf %563 : vector<1x16xf32>
    %565 = math.exp %564 : vector<1x16xf32>
    %cst_121 = arith.constant 1.000000e+00 : f32
    %566 = vector.broadcast %cst_121 : f32 to vector<1x16xf32>
    %567 = arith.addf %566, %565 : vector<1x16xf32>
    %568 = arith.divf %566, %567 : vector<1x16xf32>
    %569 = vector.extract_strided_slice %552 {offsets = [0, 32], sizes = [1, 16], strides = [1, 1]} : vector<1x48xf32> to vector<1x16xf32>
    %570 = vector.extract_strided_slice %549 {offsets = [0, 32], sizes = [1, 16], strides = [1, 1]} : vector<1x48xf32> to vector<1x16xf32>
    %571 = arith.mulf %560, %570 : vector<1x16xf32>
    %572 = arith.addf %569, %571 : vector<1x16xf32>
    %573 = math.tanh %572 : vector<1x16xf32>
    %cst_122 = arith.constant 1.000000e+00 : f32
    %574 = vector.broadcast %cst_122 : f32 to vector<1x16xf32>
    %575 = arith.subf %574, %568 : vector<1x16xf32>
    %576 = arith.mulf %575, %573 : vector<1x16xf32>
    %577 = arith.mulf %568, %506 : vector<1x16xf32>
    %578 = arith.addf %576, %577 : vector<1x16xf32>
    %579 = vector.extract_strided_slice %182 {offsets = [2, 0], sizes = [1, 48], strides = [1, 1]} : vector<8x48xf32> to vector<1x48xf32>
    %580 = vector.extract_strided_slice %579 {offsets = [0, 0], sizes = [1, 16], strides = [1, 1]} : vector<1x48xf32> to vector<1x16xf32>
    %581 = vector.extract_strided_slice %551 {offsets = [0, 0], sizes = [1, 16], strides = [1, 1]} : vector<1x48xf32> to vector<1x16xf32>
    %582 = arith.addf %580, %581 : vector<1x16xf32>
    %583 = arith.negf %582 : vector<1x16xf32>
    %584 = math.exp %583 : vector<1x16xf32>
    %cst_123 = arith.constant 1.000000e+00 : f32
    %585 = vector.broadcast %cst_123 : f32 to vector<1x16xf32>
    %586 = arith.addf %585, %584 : vector<1x16xf32>
    %587 = arith.divf %585, %586 : vector<1x16xf32>
    %588 = vector.extract_strided_slice %579 {offsets = [0, 16], sizes = [1, 16], strides = [1, 1]} : vector<1x48xf32> to vector<1x16xf32>
    %589 = vector.extract_strided_slice %551 {offsets = [0, 16], sizes = [1, 16], strides = [1, 1]} : vector<1x48xf32> to vector<1x16xf32>
    %590 = arith.addf %588, %589 : vector<1x16xf32>
    %591 = arith.negf %590 : vector<1x16xf32>
    %592 = math.exp %591 : vector<1x16xf32>
    %cst_124 = arith.constant 1.000000e+00 : f32
    %593 = vector.broadcast %cst_124 : f32 to vector<1x16xf32>
    %594 = arith.addf %593, %592 : vector<1x16xf32>
    %595 = arith.divf %593, %594 : vector<1x16xf32>
    %596 = vector.extract_strided_slice %579 {offsets = [0, 32], sizes = [1, 16], strides = [1, 1]} : vector<1x48xf32> to vector<1x16xf32>
    %597 = vector.extract_strided_slice %551 {offsets = [0, 32], sizes = [1, 16], strides = [1, 1]} : vector<1x48xf32> to vector<1x16xf32>
    %598 = arith.mulf %587, %597 : vector<1x16xf32>
    %599 = arith.addf %596, %598 : vector<1x16xf32>
    %600 = math.tanh %599 : vector<1x16xf32>
    %cst_125 = arith.constant 1.000000e+00 : f32
    %601 = vector.broadcast %cst_125 : f32 to vector<1x16xf32>
    %602 = arith.subf %601, %595 : vector<1x16xf32>
    %603 = arith.mulf %602, %600 : vector<1x16xf32>
    %604 = arith.mulf %595, %533 : vector<1x16xf32>
    %605 = arith.addf %603, %604 : vector<1x16xf32>
    %c5_i32_126 = arith.constant 5 : i32
    %606 = vector.broadcast %c5_i32_126 : i32 to vector<8x1xi32>
    %607 = arith.cmpi eq, %183, %606 : vector<8x1xi32>
    %608 = vector.shape_cast %607 : vector<8x1xi1> to vector<8x1xi1>
    %609 = vector.broadcast %608 : vector<8x1xi1> to vector<8x16xi1>
    %610 = vector.shape_cast %578 : vector<1x16xf32> to vector<1x16xf32>
    %611 = vector.broadcast %610 : vector<1x16xf32> to vector<8x16xf32>
    %612 = arith.select %609, %611, %540 : vector<8x16xi1>, vector<8x16xf32>
    %c2_i32_127 = arith.constant 2 : i32
    %613 = vector.broadcast %c2_i32_127 : i32 to vector<8x1xi32>
    %614 = arith.cmpi eq, %183, %613 : vector<8x1xi32>
    %615 = vector.shape_cast %614 : vector<8x1xi1> to vector<8x1xi1>
    %616 = vector.broadcast %615 : vector<8x1xi1> to vector<8x16xi1>
    %617 = vector.shape_cast %605 : vector<1x16xf32> to vector<1x16xf32>
    %618 = vector.broadcast %617 : vector<1x16xf32> to vector<8x16xf32>
    %619 = arith.select %616, %618, %547 : vector<8x16xi1>, vector<8x16xf32>
    %cst_128 = arith.constant dense<0.000000e+00> : vector<1x48xf32>
    %620 = tpu.matmul %578, %23, %cst_128 {dimension_numbers = #tpu.dot_dimension_numbers<[1], [0], [0], [1], [0, 0, 1, 1], [], []>} : vector<1x16xf32>, vector<16x48xf32>, vector<1x48xf32> -> vector<1x48xf32>
    %621 = arith.addf %620, %25 : vector<1x48xf32>
    %cst_129 = arith.constant dense<0.000000e+00> : vector<1x48xf32>
    %622 = tpu.matmul %605, %24, %cst_129 {dimension_numbers = #tpu.dot_dimension_numbers<[1], [0], [0], [1], [0, 0, 1, 1], [], []>} : vector<1x16xf32>, vector<16x48xf32>, vector<1x48xf32> -> vector<1x48xf32>
    %623 = arith.addf %622, %26 : vector<1x48xf32>
    %624 = vector.extract_strided_slice %181 {offsets = [6, 0], sizes = [1, 48], strides = [1, 1]} : vector<8x48xf32> to vector<1x48xf32>
    %625 = vector.extract_strided_slice %624 {offsets = [0, 0], sizes = [1, 16], strides = [1, 1]} : vector<1x48xf32> to vector<1x16xf32>
    %626 = vector.extract_strided_slice %621 {offsets = [0, 0], sizes = [1, 16], strides = [1, 1]} : vector<1x48xf32> to vector<1x16xf32>
    %627 = arith.addf %625, %626 : vector<1x16xf32>
    %628 = arith.negf %627 : vector<1x16xf32>
    %629 = math.exp %628 : vector<1x16xf32>
    %cst_130 = arith.constant 1.000000e+00 : f32
    %630 = vector.broadcast %cst_130 : f32 to vector<1x16xf32>
    %631 = arith.addf %630, %629 : vector<1x16xf32>
    %632 = arith.divf %630, %631 : vector<1x16xf32>
    %633 = vector.extract_strided_slice %624 {offsets = [0, 16], sizes = [1, 16], strides = [1, 1]} : vector<1x48xf32> to vector<1x16xf32>
    %634 = vector.extract_strided_slice %621 {offsets = [0, 16], sizes = [1, 16], strides = [1, 1]} : vector<1x48xf32> to vector<1x16xf32>
    %635 = arith.addf %633, %634 : vector<1x16xf32>
    %636 = arith.negf %635 : vector<1x16xf32>
    %637 = math.exp %636 : vector<1x16xf32>
    %cst_131 = arith.constant 1.000000e+00 : f32
    %638 = vector.broadcast %cst_131 : f32 to vector<1x16xf32>
    %639 = arith.addf %638, %637 : vector<1x16xf32>
    %640 = arith.divf %638, %639 : vector<1x16xf32>
    %641 = vector.extract_strided_slice %624 {offsets = [0, 32], sizes = [1, 16], strides = [1, 1]} : vector<1x48xf32> to vector<1x16xf32>
    %642 = vector.extract_strided_slice %621 {offsets = [0, 32], sizes = [1, 16], strides = [1, 1]} : vector<1x48xf32> to vector<1x16xf32>
    %643 = arith.mulf %632, %642 : vector<1x16xf32>
    %644 = arith.addf %641, %643 : vector<1x16xf32>
    %645 = math.tanh %644 : vector<1x16xf32>
    %cst_132 = arith.constant 1.000000e+00 : f32
    %646 = vector.broadcast %cst_132 : f32 to vector<1x16xf32>
    %647 = arith.subf %646, %640 : vector<1x16xf32>
    %648 = arith.mulf %647, %645 : vector<1x16xf32>
    %649 = arith.mulf %640, %578 : vector<1x16xf32>
    %650 = arith.addf %648, %649 : vector<1x16xf32>
    %651 = vector.extract_strided_slice %182 {offsets = [1, 0], sizes = [1, 48], strides = [1, 1]} : vector<8x48xf32> to vector<1x48xf32>
    %652 = vector.extract_strided_slice %651 {offsets = [0, 0], sizes = [1, 16], strides = [1, 1]} : vector<1x48xf32> to vector<1x16xf32>
    %653 = vector.extract_strided_slice %623 {offsets = [0, 0], sizes = [1, 16], strides = [1, 1]} : vector<1x48xf32> to vector<1x16xf32>
    %654 = arith.addf %652, %653 : vector<1x16xf32>
    %655 = arith.negf %654 : vector<1x16xf32>
    %656 = math.exp %655 : vector<1x16xf32>
    %cst_133 = arith.constant 1.000000e+00 : f32
    %657 = vector.broadcast %cst_133 : f32 to vector<1x16xf32>
    %658 = arith.addf %657, %656 : vector<1x16xf32>
    %659 = arith.divf %657, %658 : vector<1x16xf32>
    %660 = vector.extract_strided_slice %651 {offsets = [0, 16], sizes = [1, 16], strides = [1, 1]} : vector<1x48xf32> to vector<1x16xf32>
    %661 = vector.extract_strided_slice %623 {offsets = [0, 16], sizes = [1, 16], strides = [1, 1]} : vector<1x48xf32> to vector<1x16xf32>
    %662 = arith.addf %660, %661 : vector<1x16xf32>
    %663 = arith.negf %662 : vector<1x16xf32>
    %664 = math.exp %663 : vector<1x16xf32>
    %cst_134 = arith.constant 1.000000e+00 : f32
    %665 = vector.broadcast %cst_134 : f32 to vector<1x16xf32>
    %666 = arith.addf %665, %664 : vector<1x16xf32>
    %667 = arith.divf %665, %666 : vector<1x16xf32>
    %668 = vector.extract_strided_slice %651 {offsets = [0, 32], sizes = [1, 16], strides = [1, 1]} : vector<1x48xf32> to vector<1x16xf32>
    %669 = vector.extract_strided_slice %623 {offsets = [0, 32], sizes = [1, 16], strides = [1, 1]} : vector<1x48xf32> to vector<1x16xf32>
    %670 = arith.mulf %659, %669 : vector<1x16xf32>
    %671 = arith.addf %668, %670 : vector<1x16xf32>
    %672 = math.tanh %671 : vector<1x16xf32>
    %cst_135 = arith.constant 1.000000e+00 : f32
    %673 = vector.broadcast %cst_135 : f32 to vector<1x16xf32>
    %674 = arith.subf %673, %667 : vector<1x16xf32>
    %675 = arith.mulf %674, %672 : vector<1x16xf32>
    %676 = arith.mulf %667, %605 : vector<1x16xf32>
    %677 = arith.addf %675, %676 : vector<1x16xf32>
    %c6_i32_136 = arith.constant 6 : i32
    %678 = vector.broadcast %c6_i32_136 : i32 to vector<8x1xi32>
    %679 = arith.cmpi eq, %183, %678 : vector<8x1xi32>
    %680 = vector.shape_cast %679 : vector<8x1xi1> to vector<8x1xi1>
    %681 = vector.broadcast %680 : vector<8x1xi1> to vector<8x16xi1>
    %682 = vector.shape_cast %650 : vector<1x16xf32> to vector<1x16xf32>
    %683 = vector.broadcast %682 : vector<1x16xf32> to vector<8x16xf32>
    %684 = arith.select %681, %683, %612 : vector<8x16xi1>, vector<8x16xf32>
    %c1_i32_137 = arith.constant 1 : i32
    %685 = vector.broadcast %c1_i32_137 : i32 to vector<8x1xi32>
    %686 = arith.cmpi eq, %183, %685 : vector<8x1xi32>
    %687 = vector.shape_cast %686 : vector<8x1xi1> to vector<8x1xi1>
    %688 = vector.broadcast %687 : vector<8x1xi1> to vector<8x16xi1>
    %689 = vector.shape_cast %677 : vector<1x16xf32> to vector<1x16xf32>
    %690 = vector.broadcast %689 : vector<1x16xf32> to vector<8x16xf32>
    %691 = arith.select %688, %690, %619 : vector<8x16xi1>, vector<8x16xf32>
    %cst_138 = arith.constant dense<0.000000e+00> : vector<1x48xf32>
    %692 = tpu.matmul %650, %23, %cst_138 {dimension_numbers = #tpu.dot_dimension_numbers<[1], [0], [0], [1], [0, 0, 1, 1], [], []>} : vector<1x16xf32>, vector<16x48xf32>, vector<1x48xf32> -> vector<1x48xf32>
    %693 = arith.addf %692, %25 : vector<1x48xf32>
    %cst_139 = arith.constant dense<0.000000e+00> : vector<1x48xf32>
    %694 = tpu.matmul %677, %24, %cst_139 {dimension_numbers = #tpu.dot_dimension_numbers<[1], [0], [0], [1], [0, 0, 1, 1], [], []>} : vector<1x16xf32>, vector<16x48xf32>, vector<1x48xf32> -> vector<1x48xf32>
    %695 = arith.addf %694, %26 : vector<1x48xf32>
    %696 = vector.extract_strided_slice %181 {offsets = [7, 0], sizes = [1, 48], strides = [1, 1]} : vector<8x48xf32> to vector<1x48xf32>
    %697 = vector.extract_strided_slice %696 {offsets = [0, 0], sizes = [1, 16], strides = [1, 1]} : vector<1x48xf32> to vector<1x16xf32>
    %698 = vector.extract_strided_slice %693 {offsets = [0, 0], sizes = [1, 16], strides = [1, 1]} : vector<1x48xf32> to vector<1x16xf32>
    %699 = arith.addf %697, %698 : vector<1x16xf32>
    %700 = arith.negf %699 : vector<1x16xf32>
    %701 = math.exp %700 : vector<1x16xf32>
    %cst_140 = arith.constant 1.000000e+00 : f32
    %702 = vector.broadcast %cst_140 : f32 to vector<1x16xf32>
    %703 = arith.addf %702, %701 : vector<1x16xf32>
    %704 = arith.divf %702, %703 : vector<1x16xf32>
    %705 = vector.extract_strided_slice %696 {offsets = [0, 16], sizes = [1, 16], strides = [1, 1]} : vector<1x48xf32> to vector<1x16xf32>
    %706 = vector.extract_strided_slice %693 {offsets = [0, 16], sizes = [1, 16], strides = [1, 1]} : vector<1x48xf32> to vector<1x16xf32>
    %707 = arith.addf %705, %706 : vector<1x16xf32>
    %708 = arith.negf %707 : vector<1x16xf32>
    %709 = math.exp %708 : vector<1x16xf32>
    %cst_141 = arith.constant 1.000000e+00 : f32
    %710 = vector.broadcast %cst_141 : f32 to vector<1x16xf32>
    %711 = arith.addf %710, %709 : vector<1x16xf32>
    %712 = arith.divf %710, %711 : vector<1x16xf32>
    %713 = vector.extract_strided_slice %696 {offsets = [0, 32], sizes = [1, 16], strides = [1, 1]} : vector<1x48xf32> to vector<1x16xf32>
    %714 = vector.extract_strided_slice %693 {offsets = [0, 32], sizes = [1, 16], strides = [1, 1]} : vector<1x48xf32> to vector<1x16xf32>
    %715 = arith.mulf %704, %714 : vector<1x16xf32>
    %716 = arith.addf %713, %715 : vector<1x16xf32>
    %717 = math.tanh %716 : vector<1x16xf32>
    %cst_142 = arith.constant 1.000000e+00 : f32
    %718 = vector.broadcast %cst_142 : f32 to vector<1x16xf32>
    %719 = arith.subf %718, %712 : vector<1x16xf32>
    %720 = arith.mulf %719, %717 : vector<1x16xf32>
    %721 = arith.mulf %712, %650 : vector<1x16xf32>
    %722 = arith.addf %720, %721 : vector<1x16xf32>
    %723 = vector.extract_strided_slice %182 {offsets = [0, 0], sizes = [1, 48], strides = [1, 1]} : vector<8x48xf32> to vector<1x48xf32>
    %724 = vector.extract_strided_slice %723 {offsets = [0, 0], sizes = [1, 16], strides = [1, 1]} : vector<1x48xf32> to vector<1x16xf32>
    %725 = vector.extract_strided_slice %695 {offsets = [0, 0], sizes = [1, 16], strides = [1, 1]} : vector<1x48xf32> to vector<1x16xf32>
    %726 = arith.addf %724, %725 : vector<1x16xf32>
    %727 = arith.negf %726 : vector<1x16xf32>
    %728 = math.exp %727 : vector<1x16xf32>
    %cst_143 = arith.constant 1.000000e+00 : f32
    %729 = vector.broadcast %cst_143 : f32 to vector<1x16xf32>
    %730 = arith.addf %729, %728 : vector<1x16xf32>
    %731 = arith.divf %729, %730 : vector<1x16xf32>
    %732 = vector.extract_strided_slice %723 {offsets = [0, 16], sizes = [1, 16], strides = [1, 1]} : vector<1x48xf32> to vector<1x16xf32>
    %733 = vector.extract_strided_slice %695 {offsets = [0, 16], sizes = [1, 16], strides = [1, 1]} : vector<1x48xf32> to vector<1x16xf32>
    %734 = arith.addf %732, %733 : vector<1x16xf32>
    %735 = arith.negf %734 : vector<1x16xf32>
    %736 = math.exp %735 : vector<1x16xf32>
    %cst_144 = arith.constant 1.000000e+00 : f32
    %737 = vector.broadcast %cst_144 : f32 to vector<1x16xf32>
    %738 = arith.addf %737, %736 : vector<1x16xf32>
    %739 = arith.divf %737, %738 : vector<1x16xf32>
    %740 = vector.extract_strided_slice %723 {offsets = [0, 32], sizes = [1, 16], strides = [1, 1]} : vector<1x48xf32> to vector<1x16xf32>
    %741 = vector.extract_strided_slice %695 {offsets = [0, 32], sizes = [1, 16], strides = [1, 1]} : vector<1x48xf32> to vector<1x16xf32>
    %742 = arith.mulf %731, %741 : vector<1x16xf32>
    %743 = arith.addf %740, %742 : vector<1x16xf32>
    %744 = math.tanh %743 : vector<1x16xf32>
    %cst_145 = arith.constant 1.000000e+00 : f32
    %745 = vector.broadcast %cst_145 : f32 to vector<1x16xf32>
    %746 = arith.subf %745, %739 : vector<1x16xf32>
    %747 = arith.mulf %746, %744 : vector<1x16xf32>
    %748 = arith.mulf %739, %677 : vector<1x16xf32>
    %749 = arith.addf %747, %748 : vector<1x16xf32>
    %c7_i32_146 = arith.constant 7 : i32
    %750 = vector.broadcast %c7_i32_146 : i32 to vector<8x1xi32>
    %751 = arith.cmpi eq, %183, %750 : vector<8x1xi32>
    %752 = vector.shape_cast %751 : vector<8x1xi1> to vector<8x1xi1>
    %753 = vector.broadcast %752 : vector<8x1xi1> to vector<8x16xi1>
    %754 = vector.shape_cast %722 : vector<1x16xf32> to vector<1x16xf32>
    %755 = vector.broadcast %754 : vector<1x16xf32> to vector<8x16xf32>
    %756 = arith.select %753, %755, %684 : vector<8x16xi1>, vector<8x16xf32>
    %c0_i32_147 = arith.constant 0 : i32
    %757 = vector.broadcast %c0_i32_147 : i32 to vector<8x1xi32>
    %758 = arith.cmpi eq, %183, %757 : vector<8x1xi32>
    %759 = vector.shape_cast %758 : vector<8x1xi1> to vector<8x1xi1>
    %760 = vector.broadcast %759 : vector<8x1xi1> to vector<8x16xi1>
    %761 = vector.shape_cast %749 : vector<1x16xf32> to vector<1x16xf32>
    %762 = vector.broadcast %761 : vector<1x16xf32> to vector<8x16xf32>
    %763 = arith.select %760, %762, %691 : vector<8x16xi1>, vector<8x16xf32>
    %cst_148 = arith.constant dense<0.000000e+00> : vector<8x5xf32>
    %764 = tpu.matmul %756, %27, %cst_148 {dimension_numbers = #tpu.dot_dimension_numbers<[1], [0], [0], [1], [0, 0, 1, 1], [], []>} : vector<8x16xf32>, vector<16x5xf32>, vector<8x5xf32> -> vector<8x5xf32>
    %cst_149 = arith.constant dense<0.000000e+00> : vector<8x5xf32>
    %765 = tpu.matmul %763, %28, %cst_149 {dimension_numbers = #tpu.dot_dimension_numbers<[1], [0], [0], [1], [0, 0, 1, 1], [], []>} : vector<8x16xf32>, vector<16x5xf32>, vector<8x5xf32> -> vector<8x5xf32>
    %766 = arith.addf %764, %765 : vector<8x5xf32>
    %767 = vector.broadcast %12 : vector<1x5xf32> to vector<8x5xf32>
    %768 = arith.addf %766, %767 : vector<8x5xf32>
    %769 = tpu.iota {dimensions = array<i32: 0>} : vector<5x5xi32>
    %770 = tpu.iota {dimensions = array<i32: 1>} : vector<5x5xi32>
    %771 = arith.cmpi eq, %769, %770 : vector<5x5xi32>
    %772 = vector.extract_strided_slice %768 {offsets = [0, 0], sizes = [1, 5], strides = [1, 1]} : vector<8x5xf32> to vector<1x5xf32>
    %773 = arith.addf %13, %772 : vector<1x5xf32>
    %774 = vector.shape_cast %773 : vector<1x5xf32> to vector<1x5xf32>
    %775 = vector.broadcast %774 : vector<1x5xf32> to vector<5x5xf32>
    %cst_150 = arith.constant 0.000000e+00 : f32
    %776 = vector.broadcast %cst_150 : f32 to vector<5x5xf32>
    %777 = arith.select %771, %775, %776 : vector<5x5xi1>, vector<5x5xf32>
    %cst_151 = arith.constant dense<0.000000e+00> : vector<5xf32>
    %778 = vector.multi_reduction <add>, %777, %cst_151 [1] : vector<5x5xf32> to vector<5xf32>
    %779 = vector.shape_cast %778 : vector<5xf32> to vector<5x1xf32>
    %780 = vector.broadcast %779 : vector<5x1xf32> to vector<5x5xf32>
    %781 = arith.addf %780, %15 : vector<5x5xf32>
    %cst_152 = arith.constant dense<0xFF800000> : vector<5xf32>
    %782 = vector.multi_reduction <maximumf>, %781, %cst_152 [0] : vector<5x5xf32> to vector<5xf32>
    %783 = vector.shape_cast %782 : vector<5xf32> to vector<1x5xf32>
    %784 = vector.broadcast %783 : vector<1x5xf32> to vector<5x5xf32>
    %785 = arith.cmpf oge, %781, %784 : vector<5x5xf32>
    %c5_i32_153 = arith.constant 5 : i32
    %786 = vector.broadcast %c5_i32_153 : i32 to vector<5x5xi32>
    %787 = arith.select %785, %769, %786 : vector<5x5xi1>, vector<5x5xi32>
    %cst_154 = arith.constant dense<2147483647> : vector<5xi32>
    %788 = vector.multi_reduction <minsi>, %787, %cst_154 [0] : vector<5x5xi32> to vector<5xi32>
    %789 = vector.shape_cast %788 : vector<5xi32> to vector<1x5xi32>
    %790 = arith.index_cast %arg0 : i32 to index
    %c1_155 = arith.constant 1 : index
    %791 = memref.load %arg1[%790, %c1_155] : memref<2x8xi32, #tpu.memory_space<smem>>
    %c0_i32_156 = arith.constant 0 : i32
    %792 = arith.cmpi sgt, %791, %c0_i32_156 : i32
    %793 = vector.extract_strided_slice %768 {offsets = [1, 0], sizes = [1, 5], strides = [1, 1]} : vector<8x5xf32> to vector<1x5xf32>
    %794 = arith.addf %783, %793 : vector<1x5xf32>
    %795 = arith.select %792, %794, %773 : vector<1x5xf32>
    %796 = vector.shape_cast %795 : vector<1x5xf32> to vector<1x5xf32>
    %797 = vector.broadcast %796 : vector<1x5xf32> to vector<5x5xf32>
    %cst_157 = arith.constant 0.000000e+00 : f32
    %798 = vector.broadcast %cst_157 : f32 to vector<5x5xf32>
    %799 = arith.select %771, %797, %798 : vector<5x5xi1>, vector<5x5xf32>
    %cst_158 = arith.constant dense<0.000000e+00> : vector<5xf32>
    %800 = vector.multi_reduction <add>, %799, %cst_158 [1] : vector<5x5xf32> to vector<5xf32>
    %801 = vector.shape_cast %800 : vector<5xf32> to vector<5x1xf32>
    %802 = vector.broadcast %801 : vector<5x1xf32> to vector<5x5xf32>
    %803 = arith.addf %802, %15 : vector<5x5xf32>
    %cst_159 = arith.constant dense<0xFF800000> : vector<5xf32>
    %804 = vector.multi_reduction <maximumf>, %803, %cst_159 [0] : vector<5x5xf32> to vector<5xf32>
    %805 = vector.shape_cast %804 : vector<5xf32> to vector<1x5xf32>
    %806 = vector.broadcast %805 : vector<1x5xf32> to vector<5x5xf32>
    %807 = arith.cmpf oge, %803, %806 : vector<5x5xf32>
    %c5_i32_160 = arith.constant 5 : i32
    %808 = vector.broadcast %c5_i32_160 : i32 to vector<5x5xi32>
    %809 = arith.select %807, %769, %808 : vector<5x5xi1>, vector<5x5xi32>
    %cst_161 = arith.constant dense<2147483647> : vector<5xi32>
    %810 = vector.multi_reduction <minsi>, %809, %cst_161 [0] : vector<5x5xi32> to vector<5xi32>
    %811 = vector.shape_cast %810 : vector<5xi32> to vector<1x5xi32>
    %812 = arith.index_cast %arg0 : i32 to index
    %c2_162 = arith.constant 2 : index
    %813 = memref.load %arg1[%812, %c2_162] : memref<2x8xi32, #tpu.memory_space<smem>>
    %c0_i32_163 = arith.constant 0 : i32
    %814 = arith.cmpi sgt, %813, %c0_i32_163 : i32
    %815 = vector.extract_strided_slice %768 {offsets = [2, 0], sizes = [1, 5], strides = [1, 1]} : vector<8x5xf32> to vector<1x5xf32>
    %816 = arith.addf %805, %815 : vector<1x5xf32>
    %817 = arith.select %814, %816, %795 : vector<1x5xf32>
    %818 = vector.shape_cast %817 : vector<1x5xf32> to vector<1x5xf32>
    %819 = vector.broadcast %818 : vector<1x5xf32> to vector<5x5xf32>
    %cst_164 = arith.constant 0.000000e+00 : f32
    %820 = vector.broadcast %cst_164 : f32 to vector<5x5xf32>
    %821 = arith.select %771, %819, %820 : vector<5x5xi1>, vector<5x5xf32>
    %cst_165 = arith.constant dense<0.000000e+00> : vector<5xf32>
    %822 = vector.multi_reduction <add>, %821, %cst_165 [1] : vector<5x5xf32> to vector<5xf32>
    %823 = vector.shape_cast %822 : vector<5xf32> to vector<5x1xf32>
    %824 = vector.broadcast %823 : vector<5x1xf32> to vector<5x5xf32>
    %825 = arith.addf %824, %15 : vector<5x5xf32>
    %cst_166 = arith.constant dense<0xFF800000> : vector<5xf32>
    %826 = vector.multi_reduction <maximumf>, %825, %cst_166 [0] : vector<5x5xf32> to vector<5xf32>
    %827 = vector.shape_cast %826 : vector<5xf32> to vector<1x5xf32>
    %828 = vector.broadcast %827 : vector<1x5xf32> to vector<5x5xf32>
    %829 = arith.cmpf oge, %825, %828 : vector<5x5xf32>
    %c5_i32_167 = arith.constant 5 : i32
    %830 = vector.broadcast %c5_i32_167 : i32 to vector<5x5xi32>
    %831 = arith.select %829, %769, %830 : vector<5x5xi1>, vector<5x5xi32>
    %cst_168 = arith.constant dense<2147483647> : vector<5xi32>
    %832 = vector.multi_reduction <minsi>, %831, %cst_168 [0] : vector<5x5xi32> to vector<5xi32>
    %833 = vector.shape_cast %832 : vector<5xi32> to vector<1x5xi32>
    %834 = arith.index_cast %arg0 : i32 to index
    %c3_169 = arith.constant 3 : index
    %835 = memref.load %arg1[%834, %c3_169] : memref<2x8xi32, #tpu.memory_space<smem>>
    %c0_i32_170 = arith.constant 0 : i32
    %836 = arith.cmpi sgt, %835, %c0_i32_170 : i32
    %837 = vector.extract_strided_slice %768 {offsets = [3, 0], sizes = [1, 5], strides = [1, 1]} : vector<8x5xf32> to vector<1x5xf32>
    %838 = arith.addf %827, %837 : vector<1x5xf32>
    %839 = arith.select %836, %838, %817 : vector<1x5xf32>
    %840 = vector.shape_cast %839 : vector<1x5xf32> to vector<1x5xf32>
    %841 = vector.broadcast %840 : vector<1x5xf32> to vector<5x5xf32>
    %cst_171 = arith.constant 0.000000e+00 : f32
    %842 = vector.broadcast %cst_171 : f32 to vector<5x5xf32>
    %843 = arith.select %771, %841, %842 : vector<5x5xi1>, vector<5x5xf32>
    %cst_172 = arith.constant dense<0.000000e+00> : vector<5xf32>
    %844 = vector.multi_reduction <add>, %843, %cst_172 [1] : vector<5x5xf32> to vector<5xf32>
    %845 = vector.shape_cast %844 : vector<5xf32> to vector<5x1xf32>
    %846 = vector.broadcast %845 : vector<5x1xf32> to vector<5x5xf32>
    %847 = arith.addf %846, %15 : vector<5x5xf32>
    %cst_173 = arith.constant dense<0xFF800000> : vector<5xf32>
    %848 = vector.multi_reduction <maximumf>, %847, %cst_173 [0] : vector<5x5xf32> to vector<5xf32>
    %849 = vector.shape_cast %848 : vector<5xf32> to vector<1x5xf32>
    %850 = vector.broadcast %849 : vector<1x5xf32> to vector<5x5xf32>
    %851 = arith.cmpf oge, %847, %850 : vector<5x5xf32>
    %c5_i32_174 = arith.constant 5 : i32
    %852 = vector.broadcast %c5_i32_174 : i32 to vector<5x5xi32>
    %853 = arith.select %851, %769, %852 : vector<5x5xi1>, vector<5x5xi32>
    %cst_175 = arith.constant dense<2147483647> : vector<5xi32>
    %854 = vector.multi_reduction <minsi>, %853, %cst_175 [0] : vector<5x5xi32> to vector<5xi32>
    %855 = vector.shape_cast %854 : vector<5xi32> to vector<1x5xi32>
    %856 = arith.index_cast %arg0 : i32 to index
    %c4_176 = arith.constant 4 : index
    %857 = memref.load %arg1[%856, %c4_176] : memref<2x8xi32, #tpu.memory_space<smem>>
    %c0_i32_177 = arith.constant 0 : i32
    %858 = arith.cmpi sgt, %857, %c0_i32_177 : i32
    %859 = vector.extract_strided_slice %768 {offsets = [4, 0], sizes = [1, 5], strides = [1, 1]} : vector<8x5xf32> to vector<1x5xf32>
    %860 = arith.addf %849, %859 : vector<1x5xf32>
    %861 = arith.select %858, %860, %839 : vector<1x5xf32>
    %862 = vector.shape_cast %861 : vector<1x5xf32> to vector<1x5xf32>
    %863 = vector.broadcast %862 : vector<1x5xf32> to vector<5x5xf32>
    %cst_178 = arith.constant 0.000000e+00 : f32
    %864 = vector.broadcast %cst_178 : f32 to vector<5x5xf32>
    %865 = arith.select %771, %863, %864 : vector<5x5xi1>, vector<5x5xf32>
    %cst_179 = arith.constant dense<0.000000e+00> : vector<5xf32>
    %866 = vector.multi_reduction <add>, %865, %cst_179 [1] : vector<5x5xf32> to vector<5xf32>
    %867 = vector.shape_cast %866 : vector<5xf32> to vector<5x1xf32>
    %868 = vector.broadcast %867 : vector<5x1xf32> to vector<5x5xf32>
    %869 = arith.addf %868, %15 : vector<5x5xf32>
    %cst_180 = arith.constant dense<0xFF800000> : vector<5xf32>
    %870 = vector.multi_reduction <maximumf>, %869, %cst_180 [0] : vector<5x5xf32> to vector<5xf32>
    %871 = vector.shape_cast %870 : vector<5xf32> to vector<1x5xf32>
    %872 = vector.broadcast %871 : vector<1x5xf32> to vector<5x5xf32>
    %873 = arith.cmpf oge, %869, %872 : vector<5x5xf32>
    %c5_i32_181 = arith.constant 5 : i32
    %874 = vector.broadcast %c5_i32_181 : i32 to vector<5x5xi32>
    %875 = arith.select %873, %769, %874 : vector<5x5xi1>, vector<5x5xi32>
    %cst_182 = arith.constant dense<2147483647> : vector<5xi32>
    %876 = vector.multi_reduction <minsi>, %875, %cst_182 [0] : vector<5x5xi32> to vector<5xi32>
    %877 = vector.shape_cast %876 : vector<5xi32> to vector<1x5xi32>
    %878 = arith.index_cast %arg0 : i32 to index
    %c5_183 = arith.constant 5 : index
    %879 = memref.load %arg1[%878, %c5_183] : memref<2x8xi32, #tpu.memory_space<smem>>
    %c0_i32_184 = arith.constant 0 : i32
    %880 = arith.cmpi sgt, %879, %c0_i32_184 : i32
    %881 = vector.extract_strided_slice %768 {offsets = [5, 0], sizes = [1, 5], strides = [1, 1]} : vector<8x5xf32> to vector<1x5xf32>
    %882 = arith.addf %871, %881 : vector<1x5xf32>
    %883 = arith.select %880, %882, %861 : vector<1x5xf32>
    %884 = vector.shape_cast %883 : vector<1x5xf32> to vector<1x5xf32>
    %885 = vector.broadcast %884 : vector<1x5xf32> to vector<5x5xf32>
    %cst_185 = arith.constant 0.000000e+00 : f32
    %886 = vector.broadcast %cst_185 : f32 to vector<5x5xf32>
    %887 = arith.select %771, %885, %886 : vector<5x5xi1>, vector<5x5xf32>
    %cst_186 = arith.constant dense<0.000000e+00> : vector<5xf32>
    %888 = vector.multi_reduction <add>, %887, %cst_186 [1] : vector<5x5xf32> to vector<5xf32>
    %889 = vector.shape_cast %888 : vector<5xf32> to vector<5x1xf32>
    %890 = vector.broadcast %889 : vector<5x1xf32> to vector<5x5xf32>
    %891 = arith.addf %890, %15 : vector<5x5xf32>
    %cst_187 = arith.constant dense<0xFF800000> : vector<5xf32>
    %892 = vector.multi_reduction <maximumf>, %891, %cst_187 [0] : vector<5x5xf32> to vector<5xf32>
    %893 = vector.shape_cast %892 : vector<5xf32> to vector<1x5xf32>
    %894 = vector.broadcast %893 : vector<1x5xf32> to vector<5x5xf32>
    %895 = arith.cmpf oge, %891, %894 : vector<5x5xf32>
    %c5_i32_188 = arith.constant 5 : i32
    %896 = vector.broadcast %c5_i32_188 : i32 to vector<5x5xi32>
    %897 = arith.select %895, %769, %896 : vector<5x5xi1>, vector<5x5xi32>
    %cst_189 = arith.constant dense<2147483647> : vector<5xi32>
    %898 = vector.multi_reduction <minsi>, %897, %cst_189 [0] : vector<5x5xi32> to vector<5xi32>
    %899 = vector.shape_cast %898 : vector<5xi32> to vector<1x5xi32>
    %900 = arith.index_cast %arg0 : i32 to index
    %c6_190 = arith.constant 6 : index
    %901 = memref.load %arg1[%900, %c6_190] : memref<2x8xi32, #tpu.memory_space<smem>>
    %c0_i32_191 = arith.constant 0 : i32
    %902 = arith.cmpi sgt, %901, %c0_i32_191 : i32
    %903 = vector.extract_strided_slice %768 {offsets = [6, 0], sizes = [1, 5], strides = [1, 1]} : vector<8x5xf32> to vector<1x5xf32>
    %904 = arith.addf %893, %903 : vector<1x5xf32>
    %905 = arith.select %902, %904, %883 : vector<1x5xf32>
    %906 = vector.shape_cast %905 : vector<1x5xf32> to vector<1x5xf32>
    %907 = vector.broadcast %906 : vector<1x5xf32> to vector<5x5xf32>
    %cst_192 = arith.constant 0.000000e+00 : f32
    %908 = vector.broadcast %cst_192 : f32 to vector<5x5xf32>
    %909 = arith.select %771, %907, %908 : vector<5x5xi1>, vector<5x5xf32>
    %cst_193 = arith.constant dense<0.000000e+00> : vector<5xf32>
    %910 = vector.multi_reduction <add>, %909, %cst_193 [1] : vector<5x5xf32> to vector<5xf32>
    %911 = vector.shape_cast %910 : vector<5xf32> to vector<5x1xf32>
    %912 = vector.broadcast %911 : vector<5x1xf32> to vector<5x5xf32>
    %913 = arith.addf %912, %15 : vector<5x5xf32>
    %cst_194 = arith.constant dense<0xFF800000> : vector<5xf32>
    %914 = vector.multi_reduction <maximumf>, %913, %cst_194 [0] : vector<5x5xf32> to vector<5xf32>
    %915 = vector.shape_cast %914 : vector<5xf32> to vector<1x5xf32>
    %916 = vector.broadcast %915 : vector<1x5xf32> to vector<5x5xf32>
    %917 = arith.cmpf oge, %913, %916 : vector<5x5xf32>
    %c5_i32_195 = arith.constant 5 : i32
    %918 = vector.broadcast %c5_i32_195 : i32 to vector<5x5xi32>
    %919 = arith.select %917, %769, %918 : vector<5x5xi1>, vector<5x5xi32>
    %cst_196 = arith.constant dense<2147483647> : vector<5xi32>
    %920 = vector.multi_reduction <minsi>, %919, %cst_196 [0] : vector<5x5xi32> to vector<5xi32>
    %921 = vector.shape_cast %920 : vector<5xi32> to vector<1x5xi32>
    %922 = arith.index_cast %arg0 : i32 to index
    %c7_197 = arith.constant 7 : index
    %923 = memref.load %arg1[%922, %c7_197] : memref<2x8xi32, #tpu.memory_space<smem>>
    %c0_i32_198 = arith.constant 0 : i32
    %924 = arith.cmpi sgt, %923, %c0_i32_198 : i32
    %925 = vector.extract_strided_slice %768 {offsets = [7, 0], sizes = [1, 5], strides = [1, 1]} : vector<8x5xf32> to vector<1x5xf32>
    %926 = arith.addf %915, %925 : vector<1x5xf32>
    %927 = arith.select %924, %926, %905 : vector<1x5xf32>
    %928 = arith.addf %927, %14 : vector<1x5xf32>
    %929 = tpu.iota {dimensions = array<i32: 1>} : vector<1x5xi32>
    %930 = tpu.iota {dimensions = array<i32: 1>} : vector<1x8xi32>
    %cst_199 = arith.constant dense<0xFF800000> : vector<1xf32>
    %931 = vector.multi_reduction <maximumf>, %928, %cst_199 [1] : vector<1x5xf32> to vector<1xf32>
    %932 = vector.shape_cast %931 : vector<1xf32> to vector<1x1xf32>
    %933 = vector.broadcast %932 : vector<1x1xf32> to vector<1x5xf32>
    %934 = arith.cmpf oge, %928, %933 : vector<1x5xf32>
    %c5_i32_200 = arith.constant 5 : i32
    %935 = vector.broadcast %c5_i32_200 : i32 to vector<1x5xi32>
    %936 = arith.select %934, %929, %935 : vector<1x5xi1>, vector<1x5xi32>
    %cst_201 = arith.constant dense<2147483647> : vector<1xi32>
    %937 = vector.multi_reduction <minsi>, %936, %cst_201 [1] : vector<1x5xi32> to vector<1xi32>
    %938 = vector.shape_cast %937 : vector<1xi32> to vector<1x1xi32>
    %939 = arith.index_cast %arg0 : i32 to index
    %940 = memref.load %arg2[%939] : memref<2xi32, #tpu.memory_space<smem>>
    %c0_i32_202 = arith.constant 0 : i32
    %941 = vector.broadcast %c0_i32_202 : i32 to vector<1x1xi32>
    %c0_i32_203 = arith.constant 0 : i32
    %942 = vector.broadcast %c0_i32_203 : i32 to vector<1x8xi32>
    %943 = vector.broadcast %941 : vector<1x1xi32> to vector<1x5xi32>
    %944 = arith.cmpi eq, %929, %943 : vector<1x5xi32>
    %c0_i32_204 = arith.constant 0 : i32
    %945 = vector.broadcast %c0_i32_204 : i32 to vector<1x5xi32>
    %946 = arith.select %944, %921, %945 : vector<1x5xi1>, vector<1x5xi32>
    %cst_205 = arith.constant dense<-2147483648> : vector<1xi32>
    %947 = vector.multi_reduction <maxsi>, %946, %cst_205 [1] : vector<1x5xi32> to vector<1xi32>
    %948 = vector.shape_cast %947 : vector<1xi32> to vector<1x1xi32>
    %c7_i32_206 = arith.constant 7 : i32
    %949 = arith.cmpi eq, %940, %c7_i32_206 : i32
    %c7_i32_207 = arith.constant 7 : i32
    %950 = arith.cmpi sgt, %940, %c7_i32_207 : i32
    %951 = arith.select %950, %948, %941 : vector<1x1xi32>
    %952 = arith.select %949, %938, %951 : vector<1x1xi32>
    %c7_i32_208 = arith.constant 7 : i32
    %953 = vector.broadcast %c7_i32_208 : i32 to vector<1x8xi32>
    %954 = arith.cmpi eq, %930, %953 : vector<1x8xi32>
    %955 = vector.shape_cast %952 : vector<1x1xi32> to vector<1x1xi32>
    %956 = vector.broadcast %955 : vector<1x1xi32> to vector<1x8xi32>
    %957 = arith.select %954, %956, %942 : vector<1x8xi1>, vector<1x8xi32>
    %958 = vector.broadcast %952 : vector<1x1xi32> to vector<1x5xi32>
    %959 = arith.cmpi eq, %929, %958 : vector<1x5xi32>
    %c0_i32_209 = arith.constant 0 : i32
    %960 = vector.broadcast %c0_i32_209 : i32 to vector<1x5xi32>
    %961 = arith.select %959, %921, %960 : vector<1x5xi1>, vector<1x5xi32>
    %cst_210 = arith.constant dense<-2147483648> : vector<1xi32>
    %962 = vector.multi_reduction <maxsi>, %961, %cst_210 [1] : vector<1x5xi32> to vector<1xi32>
    %963 = vector.shape_cast %962 : vector<1xi32> to vector<1x1xi32>
    %c6_i32_211 = arith.constant 6 : i32
    %964 = arith.cmpi eq, %940, %c6_i32_211 : i32
    %c6_i32_212 = arith.constant 6 : i32
    %965 = arith.cmpi sgt, %940, %c6_i32_212 : i32
    %966 = arith.select %965, %963, %941 : vector<1x1xi32>
    %967 = arith.select %964, %938, %966 : vector<1x1xi32>
    %c6_i32_213 = arith.constant 6 : i32
    %968 = vector.broadcast %c6_i32_213 : i32 to vector<1x8xi32>
    %969 = arith.cmpi eq, %930, %968 : vector<1x8xi32>
    %970 = vector.shape_cast %967 : vector<1x1xi32> to vector<1x1xi32>
    %971 = vector.broadcast %970 : vector<1x1xi32> to vector<1x8xi32>
    %972 = arith.select %969, %971, %957 : vector<1x8xi1>, vector<1x8xi32>
    %973 = vector.broadcast %967 : vector<1x1xi32> to vector<1x5xi32>
    %974 = arith.cmpi eq, %929, %973 : vector<1x5xi32>
    %c0_i32_214 = arith.constant 0 : i32
    %975 = vector.broadcast %c0_i32_214 : i32 to vector<1x5xi32>
    %976 = arith.select %974, %899, %975 : vector<1x5xi1>, vector<1x5xi32>
    %cst_215 = arith.constant dense<-2147483648> : vector<1xi32>
    %977 = vector.multi_reduction <maxsi>, %976, %cst_215 [1] : vector<1x5xi32> to vector<1xi32>
    %978 = vector.shape_cast %977 : vector<1xi32> to vector<1x1xi32>
    %c5_i32_216 = arith.constant 5 : i32
    %979 = arith.cmpi eq, %940, %c5_i32_216 : i32
    %c5_i32_217 = arith.constant 5 : i32
    %980 = arith.cmpi sgt, %940, %c5_i32_217 : i32
    %981 = arith.select %980, %978, %941 : vector<1x1xi32>
    %982 = arith.select %979, %938, %981 : vector<1x1xi32>
    %c5_i32_218 = arith.constant 5 : i32
    %983 = vector.broadcast %c5_i32_218 : i32 to vector<1x8xi32>
    %984 = arith.cmpi eq, %930, %983 : vector<1x8xi32>
    %985 = vector.shape_cast %982 : vector<1x1xi32> to vector<1x1xi32>
    %986 = vector.broadcast %985 : vector<1x1xi32> to vector<1x8xi32>
    %987 = arith.select %984, %986, %972 : vector<1x8xi1>, vector<1x8xi32>
    %988 = vector.broadcast %982 : vector<1x1xi32> to vector<1x5xi32>
    %989 = arith.cmpi eq, %929, %988 : vector<1x5xi32>
    %c0_i32_219 = arith.constant 0 : i32
    %990 = vector.broadcast %c0_i32_219 : i32 to vector<1x5xi32>
    %991 = arith.select %989, %877, %990 : vector<1x5xi1>, vector<1x5xi32>
    %cst_220 = arith.constant dense<-2147483648> : vector<1xi32>
    %992 = vector.multi_reduction <maxsi>, %991, %cst_220 [1] : vector<1x5xi32> to vector<1xi32>
    %993 = vector.shape_cast %992 : vector<1xi32> to vector<1x1xi32>
    %c4_i32_221 = arith.constant 4 : i32
    %994 = arith.cmpi eq, %940, %c4_i32_221 : i32
    %c4_i32_222 = arith.constant 4 : i32
    %995 = arith.cmpi sgt, %940, %c4_i32_222 : i32
    %996 = arith.select %995, %993, %941 : vector<1x1xi32>
    %997 = arith.select %994, %938, %996 : vector<1x1xi32>
    %c4_i32_223 = arith.constant 4 : i32
    %998 = vector.broadcast %c4_i32_223 : i32 to vector<1x8xi32>
    %999 = arith.cmpi eq, %930, %998 : vector<1x8xi32>
    %1000 = vector.shape_cast %997 : vector<1x1xi32> to vector<1x1xi32>
    %1001 = vector.broadcast %1000 : vector<1x1xi32> to vector<1x8xi32>
    %1002 = arith.select %999, %1001, %987 : vector<1x8xi1>, vector<1x8xi32>
    %1003 = vector.broadcast %997 : vector<1x1xi32> to vector<1x5xi32>
    %1004 = arith.cmpi eq, %929, %1003 : vector<1x5xi32>
    %c0_i32_224 = arith.constant 0 : i32
    %1005 = vector.broadcast %c0_i32_224 : i32 to vector<1x5xi32>
    %1006 = arith.select %1004, %855, %1005 : vector<1x5xi1>, vector<1x5xi32>
    %cst_225 = arith.constant dense<-2147483648> : vector<1xi32>
    %1007 = vector.multi_reduction <maxsi>, %1006, %cst_225 [1] : vector<1x5xi32> to vector<1xi32>
    %1008 = vector.shape_cast %1007 : vector<1xi32> to vector<1x1xi32>
    %c3_i32_226 = arith.constant 3 : i32
    %1009 = arith.cmpi eq, %940, %c3_i32_226 : i32
    %c3_i32_227 = arith.constant 3 : i32
    %1010 = arith.cmpi sgt, %940, %c3_i32_227 : i32
    %1011 = arith.select %1010, %1008, %941 : vector<1x1xi32>
    %1012 = arith.select %1009, %938, %1011 : vector<1x1xi32>
    %c3_i32_228 = arith.constant 3 : i32
    %1013 = vector.broadcast %c3_i32_228 : i32 to vector<1x8xi32>
    %1014 = arith.cmpi eq, %930, %1013 : vector<1x8xi32>
    %1015 = vector.shape_cast %1012 : vector<1x1xi32> to vector<1x1xi32>
    %1016 = vector.broadcast %1015 : vector<1x1xi32> to vector<1x8xi32>
    %1017 = arith.select %1014, %1016, %1002 : vector<1x8xi1>, vector<1x8xi32>
    %1018 = vector.broadcast %1012 : vector<1x1xi32> to vector<1x5xi32>
    %1019 = arith.cmpi eq, %929, %1018 : vector<1x5xi32>
    %c0_i32_229 = arith.constant 0 : i32
    %1020 = vector.broadcast %c0_i32_229 : i32 to vector<1x5xi32>
    %1021 = arith.select %1019, %833, %1020 : vector<1x5xi1>, vector<1x5xi32>
    %cst_230 = arith.constant dense<-2147483648> : vector<1xi32>
    %1022 = vector.multi_reduction <maxsi>, %1021, %cst_230 [1] : vector<1x5xi32> to vector<1xi32>
    %1023 = vector.shape_cast %1022 : vector<1xi32> to vector<1x1xi32>
    %c2_i32_231 = arith.constant 2 : i32
    %1024 = arith.cmpi eq, %940, %c2_i32_231 : i32
    %c2_i32_232 = arith.constant 2 : i32
    %1025 = arith.cmpi sgt, %940, %c2_i32_232 : i32
    %1026 = arith.select %1025, %1023, %941 : vector<1x1xi32>
    %1027 = arith.select %1024, %938, %1026 : vector<1x1xi32>
    %c2_i32_233 = arith.constant 2 : i32
    %1028 = vector.broadcast %c2_i32_233 : i32 to vector<1x8xi32>
    %1029 = arith.cmpi eq, %930, %1028 : vector<1x8xi32>
    %1030 = vector.shape_cast %1027 : vector<1x1xi32> to vector<1x1xi32>
    %1031 = vector.broadcast %1030 : vector<1x1xi32> to vector<1x8xi32>
    %1032 = arith.select %1029, %1031, %1017 : vector<1x8xi1>, vector<1x8xi32>
    %1033 = vector.broadcast %1027 : vector<1x1xi32> to vector<1x5xi32>
    %1034 = arith.cmpi eq, %929, %1033 : vector<1x5xi32>
    %c0_i32_234 = arith.constant 0 : i32
    %1035 = vector.broadcast %c0_i32_234 : i32 to vector<1x5xi32>
    %1036 = arith.select %1034, %811, %1035 : vector<1x5xi1>, vector<1x5xi32>
    %cst_235 = arith.constant dense<-2147483648> : vector<1xi32>
    %1037 = vector.multi_reduction <maxsi>, %1036, %cst_235 [1] : vector<1x5xi32> to vector<1xi32>
    %1038 = vector.shape_cast %1037 : vector<1xi32> to vector<1x1xi32>
    %c1_i32_236 = arith.constant 1 : i32
    %1039 = arith.cmpi eq, %940, %c1_i32_236 : i32
    %c1_i32_237 = arith.constant 1 : i32
    %1040 = arith.cmpi sgt, %940, %c1_i32_237 : i32
    %1041 = arith.select %1040, %1038, %941 : vector<1x1xi32>
    %1042 = arith.select %1039, %938, %1041 : vector<1x1xi32>
    %c1_i32_238 = arith.constant 1 : i32
    %1043 = vector.broadcast %c1_i32_238 : i32 to vector<1x8xi32>
    %1044 = arith.cmpi eq, %930, %1043 : vector<1x8xi32>
    %1045 = vector.shape_cast %1042 : vector<1x1xi32> to vector<1x1xi32>
    %1046 = vector.broadcast %1045 : vector<1x1xi32> to vector<1x8xi32>
    %1047 = arith.select %1044, %1046, %1032 : vector<1x8xi1>, vector<1x8xi32>
    %1048 = vector.broadcast %1042 : vector<1x1xi32> to vector<1x5xi32>
    %1049 = arith.cmpi eq, %929, %1048 : vector<1x5xi32>
    %c0_i32_239 = arith.constant 0 : i32
    %1050 = vector.broadcast %c0_i32_239 : i32 to vector<1x5xi32>
    %1051 = arith.select %1049, %789, %1050 : vector<1x5xi1>, vector<1x5xi32>
    %cst_240 = arith.constant dense<-2147483648> : vector<1xi32>
    %1052 = vector.multi_reduction <maxsi>, %1051, %cst_240 [1] : vector<1x5xi32> to vector<1xi32>
    %1053 = vector.shape_cast %1052 : vector<1xi32> to vector<1x1xi32>
    %c0_i32_241 = arith.constant 0 : i32
    %1054 = arith.cmpi eq, %940, %c0_i32_241 : i32
    %c0_i32_242 = arith.constant 0 : i32
    %1055 = arith.cmpi sgt, %940, %c0_i32_242 : i32
    %1056 = arith.select %1055, %1053, %941 : vector<1x1xi32>
    %1057 = arith.select %1054, %938, %1056 : vector<1x1xi32>
    %c0_i32_243 = arith.constant 0 : i32
    %1058 = vector.broadcast %c0_i32_243 : i32 to vector<1x8xi32>
    %1059 = arith.cmpi eq, %930, %1058 : vector<1x8xi32>
    %1060 = vector.shape_cast %1057 : vector<1x1xi32> to vector<1x1xi32>
    %1061 = vector.broadcast %1060 : vector<1x1xi32> to vector<1x8xi32>
    %1062 = arith.select %1059, %1061, %1047 : vector<1x8xi1>, vector<1x8xi32>
    %c0_244 = arith.constant 0 : index
    %c0_245 = arith.constant 0 : index
    %c0_246 = arith.constant 0 : index
    %1063 = vector.load %arg13[%c0_244, %c0_245, %c0_246] : memref<1x1x8xi32, #tpu.memory_space<vmem>>, vector<1x1x8xi32>
    %1064 = vector.shape_cast %1063 : vector<1x1x8xi32> to vector<1x8xi32>
    %1065 = vector.shape_cast %1062 : vector<1x8xi32> to vector<1x1x8xi32>
    tpu.vector_store %arg13[%c0_244, %c0_245, %c0_246], %1065 {strides = array<i32>} : memref<1x1x8xi32, #tpu.memory_space<vmem>>, vector<1x1x8xi32>,
    return
  }
  func.func @transform_0(%arg0: i32, %arg1: memref<2x8xi32, #tpu.memory_space<smem>>, %arg2: memref<2xi32, #tpu.memory_space<smem>>) -> (i32, i32, i32) {
    %c0_i32 = arith.constant 0 : i32
    %c0_i32_0 = arith.constant 0 : i32
    %c0_i32_1 = arith.constant 0 : i32
    return %arg0, %c0_i32, %c0_i32_0 : i32, i32, i32
  }
  func.func @transform_1(%arg0: i32, %arg1: memref<2x8xi32, #tpu.memory_space<smem>>, %arg2: memref<2xi32, #tpu.memory_space<smem>>) -> (i32, i32, i32) {
    %c0_i32 = arith.constant 0 : i32
    %c0_i32_0 = arith.constant 0 : i32
    %c0_i32_1 = arith.constant 0 : i32
    return %arg0, %c0_i32, %c0_i32_0 : i32, i32, i32
  }
  func.func @transform_2(%arg0: i32, %arg1: memref<2x8xi32, #tpu.memory_space<smem>>, %arg2: memref<2xi32, #tpu.memory_space<smem>>) -> (i32, i32) {
    %c0_i32 = arith.constant 0 : i32
    %c0_i32_0 = arith.constant 0 : i32
    %c0_i32_1 = arith.constant 0 : i32
    return %c0_i32, %c0_i32_0 : i32, i32
  }
  func.func @transform_3(%arg0: i32, %arg1: memref<2x8xi32, #tpu.memory_space<smem>>, %arg2: memref<2xi32, #tpu.memory_space<smem>>) -> (i32, i32) {
    %c0_i32 = arith.constant 0 : i32
    %c0_i32_0 = arith.constant 0 : i32
    %c0_i32_1 = arith.constant 0 : i32
    return %c0_i32, %c0_i32_0 : i32, i32
  }
  func.func @transform_4(%arg0: i32, %arg1: memref<2x8xi32, #tpu.memory_space<smem>>, %arg2: memref<2xi32, #tpu.memory_space<smem>>) -> (i32, i32) {
    %c0_i32 = arith.constant 0 : i32
    %c0_i32_0 = arith.constant 0 : i32
    %c0_i32_1 = arith.constant 0 : i32
    return %c0_i32, %c0_i32_0 : i32, i32
  }
  func.func @transform_5(%arg0: i32, %arg1: memref<2x8xi32, #tpu.memory_space<smem>>, %arg2: memref<2xi32, #tpu.memory_space<smem>>) -> (i32, i32) {
    %c0_i32 = arith.constant 0 : i32
    %c0_i32_0 = arith.constant 0 : i32
    %c0_i32_1 = arith.constant 0 : i32
    return %c0_i32, %c0_i32_0 : i32, i32
  }
  func.func @transform_6(%arg0: i32, %arg1: memref<2x8xi32, #tpu.memory_space<smem>>, %arg2: memref<2xi32, #tpu.memory_space<smem>>) -> (i32, i32) {
    %c0_i32 = arith.constant 0 : i32
    %c0_i32_0 = arith.constant 0 : i32
    %c0_i32_1 = arith.constant 0 : i32
    return %c0_i32, %c0_i32_0 : i32, i32
  }
  func.func @transform_7(%arg0: i32, %arg1: memref<2x8xi32, #tpu.memory_space<smem>>, %arg2: memref<2xi32, #tpu.memory_space<smem>>) -> (i32, i32) {
    %c0_i32 = arith.constant 0 : i32
    %c0_i32_0 = arith.constant 0 : i32
    %c0_i32_1 = arith.constant 0 : i32
    return %c0_i32, %c0_i32_0 : i32, i32
  }
  func.func @transform_8(%arg0: i32, %arg1: memref<2x8xi32, #tpu.memory_space<smem>>, %arg2: memref<2xi32, #tpu.memory_space<smem>>) -> (i32, i32) {
    %c0_i32 = arith.constant 0 : i32
    %c0_i32_0 = arith.constant 0 : i32
    %c0_i32_1 = arith.constant 0 : i32
    return %c0_i32, %c0_i32_0 : i32, i32
  }
  func.func @transform_9(%arg0: i32, %arg1: memref<2x8xi32, #tpu.memory_space<smem>>, %arg2: memref<2xi32, #tpu.memory_space<smem>>) -> (i32, i32) {
    %c0_i32 = arith.constant 0 : i32
    %c0_i32_0 = arith.constant 0 : i32
    %c0_i32_1 = arith.constant 0 : i32
    return %c0_i32, %c0_i32_0 : i32, i32
  }
  func.func @transform_10(%arg0: i32, %arg1: memref<2x8xi32, #tpu.memory_space<smem>>, %arg2: memref<2xi32, #tpu.memory_space<smem>>) -> (i32, i32, i32) {
    %c0_i32 = arith.constant 0 : i32
    %c0_i32_0 = arith.constant 0 : i32
    %c0_i32_1 = arith.constant 0 : i32
    return %arg0, %c0_i32, %c0_i32_0 : i32, i32, i32
  }
}

</mosaic_0001>

<bundles_post_ra>
// kernel: bert_gru_crf_forward.1
= control target key start
LH: loop header
LB: loop body
LE: loop exit
PB: predicated region body
PF: predicated region fallthrough
CT: control target
= control target key end

     0   :  { %s3043_s27 = smov [#allocation3]   ;;  %s3044_s28 = smov [#allocation4]   ;;  %s3884_s0 = inlined_call_operand.vmem [shape: s32[2,8], index: 0, kind: input, shape index: {}]   ;;  %s3885_s2 = inlined_call_operand.vmem [shape: f32[2,8,32], index: 2, kind: input, shape index: {}]   ;;  %s3886_s3 = inlined_call_operand.vmem [shape: f32[2,1,8], index: 3, kind: input, shape index: {}]   ;;  %s3887_s4 = inlined_call_operand.vmem [shape: bf16[32,96], index: 4, kind: input, shape index: {}]   ;;  %s3888_s5 = inlined_call_operand.vmem [shape: bf16[32,32], index: 5, kind: input, shape index: {}]   ;;  %s3889_s6 = inlined_call_operand.vmem [shape: bf16[32,64], index: 6, kind: input, shape index: {}]   ;;  %s3890_s7 = inlined_call_operand.vmem [shape: bf16[64,32], index: 7, kind: input, shape index: {}]   ;;  %s3891_s8 = inlined_call_operand.vmem [shape: bf16[32,96], index: 8, kind: input, shape index: {}]   ;;  %s3892_s9 = inlined_call_operand.vmem [shape: f32[32,48], index: 9, kind: input, shape index: {}]   ;;  %s3893_s10 = inlined_call_operand.vmem [shape: f32[32,5], index: 10, kind: input, shape index: {}]   ;;  %s3894_s11 = inlined_call_operand.vmem [shape: f32[24,128], index: 11, kind: input, shape index: {}]   ;;  %s3895_s12 = inlined_call_operand.hbm [shape: s32[2,1,8], index: 12, kind: output, shape index: {}]   ;;  %s3896_s1 = inlined_call_operand.vmem [shape: s32[2], index: 1, kind: input, shape index: {}]  }
   0x1   :  { %s18_s23 = sshll.u32 %s3884_s0, 4  ;;  %s23_s26 = sshll.u32 %s3896_s1, 4  ;;  %s19_s23 = int_to_ptr.vmem [resolvable:$true] %s18_s23  ;;  %s24_s26 = int_to_ptr.vmem [resolvable:$true] %s23_s26 }
   0x2   :  { %21 = dma.vmem_to_smem %s19_s23, 32, %s3043_s27, [#allocation2] }
   0x3   :  { %26 = dma.vmem_to_smem %s24_s26, 16, %s3044_s28, [#allocation2] }
   0x4   :  { %3021 = dma.done.wait [#allocation2], 48 }
   0x5   :  { %3022 = vsyncadd [#allocation2], 4294967248 }
   0x6   :  { %29 = sfence }
   0x7   :  { %30 = vsyncpa [#allocation6], 0 }
   0x8   :  { %32 = vsyncpa [#allocation6 + $0x1], 0  ;;  %s3125_s29 = smov 0   ;;  %s3127_s30 = smov 0  }
   0x9   :  { %s3129_s0 = smov 0   ;;  %s3131_s13 = smov 0  }
   0xa LB: > { %s3146_s1 = sadd.s32 4294967295, %s3041_s13   ;;  %s2664_s14 = sadd.s32 4294967294, %s3041_s13   ;;  %s3041_s13 = sphi %s3131_s13, %s3916_s13   ;;  %s3037_s0 = sphi %s3129_s0, %s3915_s0   ;;  %s3033_s30 = sphi %s3127_s30, %s3914_s30   ;;  %s3029_s29 = sphi %s3125_s29, %s3913_s29  }
   0xb   : > { %s3150_s15 = sadd.s32 1, %s3041_s13   ;;  %s265_s16 = sadd.s32 1, %s3037_s0 }
   0xc   : > { %s262_s17 = ssub.s32 %s3041_s13, %s3150_s15  ;;  %p275_p0 = scmp.ne.s32.totalorder %s3037_s0, %s3033_s30 }
   0xd   : > { %p263_p1 = scmp.eq.s32.totalorder %s262_s17, 0  ;;  %p276_p2 = scmp.eq.s32.totalorder %s3146_s1, 1 }
   0xe   : > { %p281_p3 = scmp.ne.s32.totalorder %s3033_s30, %s3029_s29  ;;  %p282_p4 = scmp.eq.s32.totalorder %s2664_s14, 1 }
   0xf   : > { %s3161_s18 = scalar_select %p263_p1, %s3037_s0, %s265_s16  }
  0x10   : > { %p3163_p5 = por %p276_p2, %p275_p0  ;;  %p3167_p6 = por %p282_p4, %p281_p3 }
  0x11   : > { %p2667_p7 = scmp.ge.s32.totalorder %s3041_s13, 1  ;;  %p337_p8 = scmp.lt.s32.totalorder %s3041_s13, 3 }
  0x13   : > { %p338_p9 = pnand %p2667_p7, %p337_p8 }
  0x14   : > { %p376_p10 = scmp.lt.s32.totalorder (!%p338_p9), %s3146_s1, 1  ;;  %s3046_s26 = smov (!%p338_p9), 80  }
  0x15   : > { %341 = sbr.rel (%p338_p9) target bundleno = 10370 (0x2882), region = 60  ;;  %s3897_s27 = smov (!%p338_p9), 64  }
  0x16   : > { %s3901_s28 = smov (!%p338_p9), 96   ;;  %s3052_s14 = smov (!%p338_p9), 16  }
  0x17   : > { %s3907_s16 = smov (!%p338_p9), 48  }
  0x1a   : > { %s3175_s21 = scalar_select %p376_p10, %s3146_s1, 1  ;;  %vm436_vm0 = vcmask 261120   ;;  %v3045_v2 = vmov 32.0   ;;  %v2765_v14 = vld [vmem:[%s3887_s4 + $0x8] sm:$0xff]  ;;  %v2764_v15 = vld [vmem:[%s3887_s4] sm:$0xff]  ;;  %vm503_vm5 = vcmask 130048  }
  0x1b   : > { %2838 = vrcp.f32 %v3045_v2  ;;  %493 = vmatpush.bf16.msra.mxu0 %v2765_v14  ;;  %v2826_v25 = vld [vmem:[%s3894_s11] ss:$0 sm:$0xff]  ;;  %v2827_v28 = vld [vmem:[%s3894_s11 + $0x1] ss:$0 sm:$0xff]  ;;  %v2828_v32 = vld [vmem:[%s3894_s11 + $0x2] ss:$0 sm:$0xff] }
  0x1c   : > { %s2668_s22 = sshll.u32 %s3175_s21, 3  ;;  %s382_s17 = scalar_lea.vmem %s3886_s3, %s3175_s21  ;;  %vm533_vm6 = vcmask 64512   ;;  %v2766_v57 = vld [vmem:[%s3888_s5] sm:$0xff]  ;;  %vm779_vm10 = vcmask 523264  }
  0x1d   : > { %s379_s25 = scalar_lea.vmem %s3885_s2, %s2668_s22  ;;  %v433_v39 = vld [vmem:[%s382_s17] sm:$0x1]  ;;  %s3903_s22 = smov 48   ;;  %588 = vmatpush.bf16.msra.mxu3 %v2766_v57  ;;  %v2829_v14 = vld [vmem:[%s3894_s11 + $0x3] ss:$0 sm:$0xff] }
  0x1e   : > { %v432_v0 = vld [vmem:[%s379_s25] sm:$0xff]  ;;  %v434_v40 = vsub.f32 1.0, %v433_v39  ;;  %s3899_s21 = smov 112   ;;  %s3909_s25 = smov 112  }
  0x1f   : > { %v437_v1 = vsel %vm436_vm0, %v432_v0, 0.0  ;;  %494 = vmatpush.bf16.msra.mxu0 %v2764_v15  ;;  %v2831_v39 = vld [vmem:[%s3894_s11 + $0x5] ss:$0 sm:$0xff]  ;;  %s3910_s17 = smov 64  }
  0x20   : > { %438 = vadd.xlane.f32.xlu0 %v437_v1  ;;  %v435_v41 = vmul.f32 -1e+09, %v434_v40 }
  0x21   : > { %v2839_v3 = vpop.eup %2838 }
  0x22   : > { %v441_v4 = vmul.f32 32.0, %v2839_v3  ;;  %vm445_vm1 = vweird.f32 %v2839_v3  ;;  %v530_v42 = vperm.slane %v435_v41, 0 }
  0x24   : > { %v442_v5 = vsub.f32 1.0, %v441_v4 }
  0x26   : > { %v443_v6 = vmul.f32 %v2839_v3, %v442_v5 }
  0x28   : > { %v444_v7 = vadd.f32 %v2839_v3, %v443_v6 }
  0x2a   : > { %v3182_v8 = vsel %vm445_vm1, %v2839_v3, %v444_v7  ;;  %v2767_v7 = vld [vmem:[%s3888_s5 + $0x8] sm:$0xff] }
  0x93   : > { %v439_v9 = vpop.xlane.xlu0 %438 }
  0x94   : > { %v447_v10 = vmul.f32 %v3182_v8, %v439_v9 }
  0x96   : > { %v448_v11 = vsub.f32 %v432_v0, %v447_v10 }
  0x98   : > { %v449_v12 = vmul.f32 %v448_v11, %v448_v11 }
  0x9a   : > { %v450_v13 = vsel %vm436_vm0, %v449_v12, 0.0 }
  0x9b   : > { %451 = vadd.xlane.f32.xlu0 %v450_v13 }
 0x10e   : > { %v452_v16 = vpop.xlane.xlu0 %451 }
 0x10f   : > { %v453_v17 = vmul.f32 %v452_v16, %v3182_v8 }
 0x111   : > { %v454_v18 = vadd.f32 1e-12, %v453_v17 }
 0x113   : > { %2840 = vrsqrt.f32 %v454_v18  ;;  %vm461_vm3 = vweird.f32 %v454_v18 }
 0x119   : > { %v2841_v19 = vpop.eup %2840 }
 0x11a   : > { %v456_v20 = vmul.f32 %v2841_v19, %v454_v18  ;;  %vm462_vm2 = vweird.f32 %v2841_v19 }
 0x11b   : > { %vm463_vm4 = vmor %vm461_vm3, %vm462_vm2 }
 0x11c   : > { %v457_v21 = vmul.f32 %v2841_v19, %v456_v20 }
 0x11e   : > { %v458_v22 = vmul.f32 0.5, %v457_v21 }
 0x120   : > { %v459_v23 = vsub.f32 1.5, %v458_v22 }
 0x122   : > { %v460_v24 = vmul.f32 %v2841_v19, %v459_v23 }
 0x124   : > { %v464_v26 = vsel %vm463_vm4, %v2841_v19, %v460_v24 }
 0x125   : > { %v465_v27 = vmul.f32 %v464_v26, %v448_v11  ;;  %v2769_v26 = vld [vmem:[%s3889_s6 + $0x8] sm:$0xff] }
 0x127   : > { %v467_v29 = vmul.f32 %v2826_v25, %v465_v27  ;;  %v2768_v27 = vld [vmem:[%s3889_s6] sm:$0xff] }
 0x129   : > { %v3199_v30 = vadd.f32 %v2827_v28, %v467_v29 }
 0x12b   : > { %v470_v31 = vpack.c.bf16 %v3199_v30, %v3199_v30 }
 0x12d   : > { %2677 = vmatmul.msk.bf16.vlgmr.msra.gmra.mxu0 %vm436_vm0, %v470_v31 }
 0x1aa   : > { %v496_v33 = vpop.f32.mrf.mxu0 }
 0x1ab   : > { %v497_v34 = vadd.f32 %v2828_v32, %v496_v33 }
 0x1ad   : > { %598 = vrot.lane.b32.xlu0 %v497_v34, %s3046_s26  ;;  %545 = vrot.lane.b32.xlu2 %v497_v34, %s3897_s27 }
 0x1ae   : > { %501 = vrot.lane.b32.xlu1 %v497_v34, %s3901_s28  ;;  %s3053_s28 = smov 32  }
 0x1b2   : > { %v498_v35 = vpop.f32.mrf.mxu0 }
 0x207   : > { %v546_v36 = vpop.permute.xlu2 %545 }
 0x208   : > { %566 = vmatpush.msra.mxu2 %v546_v36 }
 0x21f   : > { %v599_v37 = vpop.permute.xlu0 %598 }
 0x220   : > { %v502_v38 = vpop.permute.xlu1 %501  ;;  %2686 = vmatpush.xpose.msk.msrb.mxu2 %vm503_vm5, %v599_v37  ;;  %v2830_v37 = vld [vmem:[%s3894_s11 + $0x4] ss:$0 sm:$0xff] }
 0x221   : > { %2678 = vmatpush.xpose.msk.msra.mxu1 %vm503_vm5, %v502_v38 }
 0x224   : > { %2679 = vmatmul.msk.f32.vlgmr.msra.gmra.mxu1 %vm503_vm5, %v497_v34 }
 0x2a1   : > { %v525_v43 = vpop.f32.mrf.mxu1 }
 0x2a2   : > { %v528_v44 = vmul.f32 0.25, %v525_v43 }
 0x2a4   : > { %v532_v45 = vadd.f32 %v530_v42, %v528_v44  ;;  %v2773_v44 = vld [vmem:[%s3890_s7 + $0x18] sm:$0xff] }
 0x2a5   : > { %787 = vmatpush.bf16.msrb.mxu3 %v2773_v44 }
 0x2a6   : > { %v534_v46 = vsel %vm533_vm6, %v532_v45, -inf }
 0x2a7   : > { %535 = vmax.xlane.f32.xlu1 %v534_v46  ;;  %v2771_v46 = vld [vmem:[%s3890_s7 + $0x8] sm:$0xff] }
 0x2c0   : > { %637 = vrot.lane.b32.xlu1 %v497_v34, %s3903_s22  ;;  %s3908_s22 = smov 96  }
 0x31a   : > { %v536_v47 = vpop.xlane.xlu1 %535 }
 0x31b   : > { %v537_v48 = vsub.f32 %v532_v45, %v536_v47  ;;  %v2772_v45 = vld [vmem:[%s3890_s7 + $0x10] sm:$0xff]  ;;  %v2770_v47 = vld [vmem:[%s3890_s7] sm:$0xff] }
 0x31c   : > { %788 = vmatpush.bf16.msrb.mxu3 %v2772_v45 }
 0x31d   : > { %v538_v49 = vmul.f32 1.442695, %v537_v48  ;;  %v2832_v48 = vld [vmem:[%s3894_s11 + $0x6] ss:$0 sm:$0xff] }
 0x31f   : > { %2842 = vpow2.f32 %v538_v49 }
 0x320   : > { %789 = vmatpush.bf16.msrb.mxu3 %v2771_v46 }
 0x324   : > { %790 = vmatpush.bf16.msrb.mxu3 %v2770_v47 }
 0x325   : > { %v2843_v50 = vpop.eup %2842 }
 0x326   : > { %v540_v51 = vsel %vm533_vm6, %v2843_v50, 0.0 }
 0x327   : > { %541 = vadd.xlane.f32.xlu2 %v540_v51 }
 0x332   : > { %v638_v52 = vpop.permute.xlu1 %637 }
 0x333   : > { %658 = vmatpush.msrb.mxu1 %v638_v52 }
 0x335   : > { %737 = vmatpush.bf16.msra.mxu1 %v2769_v26 }
 0x339   : > { %738 = vmatpush.bf16.msra.mxu1 %v2768_v27 }
 0x33f   : > { %596 = vrot.lane.b32.xlu2 %v497_v34, %s3899_s21 }
 0x39a   : > { %v542_v53 = vpop.xlane.xlu2 %541 }
 0x39b   : > { %2844 = vrcp.f32 %v542_v53 }
 0x3a1   : > { %v2845_v54 = vpop.eup %2844 }
 0x3a2   : > { %v544_v55 = vmul.f32 %v2845_v54, %v2843_v50  ;;  %v597_v56 = vpop.permute.xlu2 %596 }
 0x3a4   : > { %2680 = vmatmul.msk.f32.vlgmr.msra.gmra.mxu2 %vm533_vm6, %v544_v55 }
 0x3a5   : > { %680 = vmatpush.bf16.msra.mxu2 %v2767_v7  ;;  %v3051_v7 = vmov 0.0  }
 0x3ac   : > { %2687 = vmatmul.msk.f32.vlgmr.msrb.gmra.mxu2 %vm503_vm5, %v597_v56 }
 0x427   : > { %v568_v58 = vpop.f32.mrf.mxu2 }
 0x428   : > { %v571_v59 = vpack.c.bf16 %v568_v58, %v568_v58 }
 0x42a   : > { %2685 = vmatmul.msk.bf16.vlgmr.msra.gmra.mxu3 %vm503_vm5, %v571_v59 }
 0x42f   : > { %v621_v60 = vpop.f32.mrf.mxu2 }
 0x430   : > { %v624_v61 = vmul.f32 0.25, %v621_v60 }
 0x432   : > { %v625_v62 = vadd.f32 %v624_v61, %v530_v42 }
 0x434   : > { %v626_v63 = vsel %vm533_vm6, %v625_v62, -inf }
 0x435   : > { %627 = vmax.xlane.f32.xlu0 %v626_v63 }
 0x4a8   : > { %v628_v0 = vpop.xlane.xlu0 %627 }
 0x4a9   : > { %v629_v1 = vsub.f32 %v625_v62, %v628_v0  ;;  %v2833_v62 = vld [vmem:[%s3894_s11 + $0x7] ss:$0 sm:$0xff] }
 0x4ab   : > { %v630_v2 = vmul.f32 1.442695, %v629_v1 }
 0x4ad   : > { %2846 = vpow2.f32 %v630_v2  ;;  %v590_v3 = vpop.f32.mrf.mxu3 }
 0x4ae   : > { %v595_v15 = vadd.f32 %v2829_v14, %v590_v3  ;;  %v3302_v14 = vld [vmem:[%s3892_s9 + $0x8] sm:$0xff] }
 0x4af   : > { %872 = vmatpush.msrb.mxu2 %v3302_v14  ;;  %1013 = vmatpush.msra.mxu3 %v3302_v14 }
 0x4b3   : > { %v2847_v4 = vpop.eup %2846 }
 0x4b4   : > { %v632_v5 = vsel %vm533_vm6, %v2847_v4, 0.0 }
 0x4b5   : > { %v592_v6 = vpop.f32.mrf.mxu3  ;;  %633 = vadd.xlane.f32.xlu2 %v632_v5  ;;  %v3282_v5 = vld [vmem:[%s3892_s9 + $0x10] sm:$0xff] }
 0x4b6   : > { %v3287_v6 = vld [vmem:[%s3894_s11 + $0xb] sm:$0x1] }
 0x528   : > { %v634_v9 = vpop.xlane.xlu2 %633 }
 0x529   : > { %2848 = vrcp.f32 %v634_v9 }
 0x52f   : > { %v2849_v10 = vpop.eup %2848 }
 0x530   : > { %v636_v11 = vmul.f32 %v2849_v10, %v2847_v4  ;;  %v3277_v4 = vld [vmem:[%s3892_s9 + $0x18] sm:$0xff] }
 0x532   : > { %2688 = vmatmul.msk.f32.vlgmr.msrb.gmra.mxu1 %vm533_vm6, %v636_v11 }
 0x533   : > { %896 = vmatpush.msrb.mxu1 %v3277_v4 }
 0x535   : > { %897 = vmatpush.msrb.mxu1 %v3282_v5 }
 0x5af   : > { %v660_v12 = vpop.f32.mrf.mxu1 }
 0x5b0   : > { %v663_v13 = vpack.c.bf16 %v660_v12, %v660_v12 }
 0x5b2   : > { %2693 = vmatmul.msk.bf16.vlgmr.msra.gmra.mxu2 %vm503_vm5, %v663_v13 }
 0x635   : > { %v682_v16 = vpop.f32.mrf.mxu2 }
 0x636   : > { %v686_v17 = vadd.f32 %v682_v16, %v595_v15  ;;  %v2775_v15 = vld [vmem:[%s3891_s8 + $0x8] sm:$0xff]  ;;  %v3312_v16 = vld [vmem:[%s3892_s9] sm:$0xff] }
 0x637   : > { %846 = vmatpush.bf16.msrb.mxu0 %v2775_v15  ;;  %873 = vmatpush.msrb.mxu2 %v3312_v16 }
 0x638   : > { %v687_v18 = vadd.f32 %v686_v17, %v3199_v30  ;;  %v2774_v17 = vld [vmem:[%s3891_s8] sm:$0xff]  ;;  %874 = vmatmul.f32.vlgmr.msrb.gmra.mxu2 %v3051_v7  ;;  %1014 = vmatpush.msra.mxu3 %v3312_v16 }
 0x639   : > { %1163 = vmatpush.msra.mxu2 %v3302_v14 }
 0x63a   : > { %v688_v19 = vsel %vm436_vm0, %v687_v18, 0.0 }
 0x63b   : > { %689 = vadd.xlane.f32.xlu1 %v688_v19  ;;  %847 = vmatpush.bf16.msrb.mxu0 %v2774_v17 }
 0x63c   : > { %1164 = vmatpush.msra.mxu2 %v3312_v16 }
 0x63d   : > { %v684_v20 = vpop.f32.mrf.mxu2 }
 0x63e   : > { %1463 = vmatpush.msrb.mxu2 %v3302_v14 }
 0x63f   : > { %1039 = vmatpush.msra.mxu0 %v3277_v4 }
 0x640   : > { %1464 = vmatpush.msrb.mxu2 %v3312_v16 }
 0x641   : > { %1040 = vmatpush.msra.mxu0 %v3282_v5 }
 0x6ae   : > { %v690_v21 = vpop.xlane.xlu1 %689 }
 0x6af   : > { %v691_v22 = vmul.f32 %v690_v21, %v3182_v8 }
 0x6b1   : > { %v692_v23 = vsub.f32 %v687_v18, %v691_v22 }
 0x6b3   : > { %v693_v24 = vmul.f32 %v692_v23, %v692_v23 }
 0x6b5   : > { %v694_v25 = vsel %vm436_vm0, %v693_v24, 0.0 }
 0x6b6   : > { %695 = vadd.xlane.f32.xlu0 %v694_v25 }
 0x729   : > { %v696_v28 = vpop.xlane.xlu0 %695 }
 0x72a   : > { %v697_v29 = vmul.f32 %v696_v28, %v3182_v8 }
 0x72c   : > { %v698_v30 = vadd.f32 1e-12, %v697_v29 }
 0x72e   : > { %2850 = vrsqrt.f32 %v698_v30  ;;  %vm705_vm8 = vweird.f32 %v698_v30 }
 0x734   : > { %v2851_v31 = vpop.eup %2850 }
 0x735   : > { %v700_v32 = vmul.f32 %v2851_v31, %v698_v30  ;;  %vm706_vm7 = vweird.f32 %v2851_v31 }
 0x736   : > { %vm707_vm9 = vmor %vm705_vm8, %vm706_vm7 }
 0x737   : > { %v701_v33 = vmul.f32 %v2851_v31, %v700_v32 }
 0x739   : > { %v702_v34 = vmul.f32 0.5, %v701_v33  ;;  %v2835_v33 = vld [vmem:[%s3894_s11 + $0x9] ss:$0 sm:$0xff] }
 0x73b   : > { %v703_v35 = vsub.f32 1.5, %v702_v34 }
 0x73d   : > { %v704_v36 = vmul.f32 %v2851_v31, %v703_v35 }
 0x73f   : > { %v708_v38 = vsel %vm707_vm9, %v2851_v31, %v704_v36 }
 0x740   : > { %v709_v40 = vmul.f32 %v708_v38, %v692_v23 }
 0x742   : > { %v711_v41 = vmul.f32 %v2830_v37, %v709_v40  ;;  %v2836_v37 = vld [vmem:[%s3894_s11 + $0xa] ss:$0 sm:$0xff] }
 0x744   : > { %v713_v42 = vadd.f32 %v2831_v39, %v711_v41 }
 0x746   : > { %v714_v43 = vpack.c.bf16 %v713_v42, %v713_v42 }
 0x748   : > { %2702 = vmatmul.msk.bf16.vlgmr.msra.gmra.mxu1 %vm436_vm0, %v714_v43 }
 0x749   : > { %1189 = vmatpush.msra.mxu1 %v3277_v4 }
 0x74b   : > { %1190 = vmatpush.msra.mxu1 %v3282_v5 }
 0x758   : > { %898 = vmatmul.f32.vlgmr.msrb.gmra.mxu1 %v3051_v7 }
 0x759   : > { %1489 = vmatpush.msrb.mxu1 %v3277_v4 }
 0x75b   : > { %1490 = vmatpush.msrb.mxu1 %v3282_v5 }
 0x7c5   : > { %v740_v49 = vpop.f32.mrf.mxu1 }
 0x7c6   : > { %v741_v50 = vadd.f32 %v2832_v48, %v740_v49 }
 0x7c8   : > { %v744_v51 = vmul.f32 %v741_v50, %v741_v50 }
 0x7ca   : > { %v745_v52 = vmul.f32 %v744_v51, %v741_v50 }
 0x7cc   : > { %v746_v53 = vmul.f32 0.044715, %v745_v52 }
 0x7cd   : > { %v742_v54 = vpop.f32.mrf.mxu1 }
 0x7ce   : > { %v747_v55 = vadd.f32 %v746_v53, %v741_v50 }
 0x7d0   : > { %v748_v56 = vmul.f32 0.7978846, %v747_v55 }
 0x7d2   : > { %2852 = vtanh.f32 %v748_v56 }
 0x7d5   : > { %v899_v18 = vpop.f32.mrf.mxu1 }
 0x7d8   : > { %v2853_v57 = vpop.eup %2852 }
 0x7d9   : > { %v750_v58 = vadd.f32 1.0, %v2853_v57 }
 0x7db   : > { %v751_v59 = vmul.f32 0.5, %v750_v58  ;;  %v875_v58 = vpop.f32.mrf.mxu2 }
 0x7dd   : > { %v752_v60 = vmul.f32 %v751_v59, %v741_v50  ;;  %v876_v59 = vadd.f32 %v875_v58, %v3287_v6 }
 0x7df   : > { %v753_v61 = vpack.c.bf16 %v752_v60, %v752_v60 }
 0x7e1   : > { %2719 = vmatmul.msk.bf16.vlgmr.msrb.gmra.mxu3 %vm779_vm10, %v753_v61 }
 0x7e2   : > { %1313 = vmatpush.msrb.mxu3 %v3302_v14 }
 0x7e4   : > { %1314 = vmatpush.msrb.mxu3 %v3312_v16 }
 0x864   : > { %v792_v63 = vpop.f32.mrf.mxu3 }
 0x865   : > { %v793_v0 = vadd.f32 %v2833_v62, %v792_v63 }
 0x867   : > { %v796_v1 = vadd.f32 %v793_v0, %v713_v42 }
 0x869   : > { %v797_v2 = vsel %vm436_vm0, %v796_v1, 0.0 }
 0x86a   : > { %798 = vadd.xlane.f32.xlu2 %v797_v2 }
 0x86c   : > { %v794_v3 = vpop.f32.mrf.mxu3 }
 0x882   : > { %879 = vrot.lane.b32.xlu2 %v3287_v6, %s3046_s26 }
 0x8dd   : > { %v799_v9 = vpop.xlane.xlu2 %798 }
 0x8de   : > { %v800_v10 = vmul.f32 %v799_v9, %v3182_v8 }
 0x8e0   : > { %v801_v11 = vsub.f32 %v796_v1, %v800_v10 }
 0x8e2   : > { %v802_v12 = vmul.f32 %v801_v11, %v801_v11 }
 0x8e4   : > { %v803_v13 = vsel %vm436_vm0, %v802_v12, 0.0 }
 0x8e5   : > { %804 = vadd.xlane.f32.xlu0 %v803_v13  ;;  %v3325_v19 = vpop.permute.xlu2 %879 }
 0x8e6   : > { %v900_v21 = vadd.f32 %v899_v18, %v3325_v19 }
 0x8e8   : > { %v942_v23 = vrot.slane %v900_v21, 1 }
 0x8ea   : > { %966 = vrot.lane.b32.xlu2 %v942_v23, %s3052_s14 }
 0x8f9   : > { %943 = vrot.lane.b32.xlu0 %v942_v23, %s3907_s16 }
 0x944   : > { %v967_v55 = vpop.permute.xlu2 %966 }
 0x958   : > { %v805_v20 = vpop.xlane.xlu0 %804 }
 0x959   : > { %v806_v22 = vmul.f32 %v805_v20, %v3182_v8  ;;  %v2834_v8 = vld [vmem:[%s3894_s11 + $0x8] ss:$0 sm:$0xff] }
 0x95b   : > { %v807_v24 = vadd.f32 1e-12, %v806_v22 }
 0x95d   : > { %2854 = vrsqrt.f32 %v807_v24  ;;  %vm814_vm12 = vweird.f32 %v807_v24 }
 0x963   : > { %v2855_v25 = vpop.eup %2854 }
 0x964   : > { %v809_v26 = vmul.f32 %v2855_v25, %v807_v24  ;;  %vm815_vm11 = vweird.f32 %v2855_v25 }
 0x965   : > { %vm816_vm13 = vmor %vm814_vm12, %vm815_vm11 }
 0x966   : > { %v810_v27 = vmul.f32 %v2855_v25, %v809_v26 }
 0x968   : > { %v811_v28 = vmul.f32 0.5, %v810_v27 }
 0x96a   : > { %v812_v29 = vsub.f32 1.5, %v811_v28 }
 0x96b   : > { %v944_v39 = vpop.permute.xlu0 %943 }
 0x96c   : > { %v813_v30 = vmul.f32 %v2855_v25, %v812_v29 }
 0x96e   : > { %v817_v31 = vsel %vm816_vm13, %v2855_v25, %v813_v30 }
 0x96f   : > { %v818_v32 = vmul.f32 %v817_v31, %v801_v11 }
 0x971   : > { %v820_v34 = vmul.f32 %v2834_v8, %v818_v32 }
 0x973   : > { %v822_v35 = vadd.f32 %v2835_v33, %v820_v34 }
 0x975   : > { %v823_v36 = vpack.c.bf16 %v822_v35, %v822_v35 }
 0x977   : > { %2728 = vmatmul.msk.bf16.vlgmr.msrb.gmra.mxu0 %vm436_vm0, %v823_v36 }
 0x978   : > { %1339 = vmatpush.msrb.mxu0 %v3277_v4 }
 0x97a   : > { %1340 = vmatpush.msrb.mxu0 %v3282_v5 }
 0x9f4   : > { %v849_v38 = vpop.f32.mrf.mxu0 }
 0x9f5   : > { %v3345_v40 = vadd.f32 %v2836_v37, %v849_v38 }
 0x9f7   : > { %v946_v41 = vadd.f32 %v944_v39, %v3345_v40  ;;  %v902_v63 = vadd.f32 %v876_v59, %v3345_v40 }
 0x9f9   : > { %v2730_v42 = vmul.f32 -1.442695, %v946_v41  ;;  %v2729_v0 = vmul.f32 -1.442695, %v902_v63 }
 0x9fb   : > { %2856 = vpow2.f32 %v2730_v42 }
 0x9fc   : > { %v851_v43 = vpop.f32.mrf.mxu0 }
 0xa01   : > { %v2857_v44 = vpop.eup %2856 }
 0xa02   : > { %v950_v45 = vadd.f32 1.0, %v2857_v44 }
 0xa04   : > { %2858 = vrcp.f32 %v950_v45  ;;  %v962_v49 = vand.u32 2147483648, %v950_v45  ;;  %v960_v51 = vand.u32 2147483647, %v950_v45  ;;  %vm956_vm15 = vweird.f32 %v950_v45 }
 0xa06   : > { %v963_v53 = vor.u32 1.1754944e-38, %v962_v49  ;;  %vm961_vm1 = vcmp.eq.f32.partialorder %v960_v51, 8.507059e+37 }
 0xa0a   : > { %v2859_v46 = vpop.eup %2858 }
 0xa0b   : > { %v952_v47 = vmul.f32 %v2859_v46, %v950_v45  ;;  %vm957_vm14 = vweird.f32 %v2859_v46 }
 0xa0c   : > { %vm958_vm0 = vmor %vm956_vm15, %vm957_vm14 }
 0xa0d   : > { %v953_v48 = vsub.f32 1.0, %v952_v47 }
 0xa0f   : > { %v954_v50 = vmul.f32 %v2859_v46, %v953_v48 }
 0xa11   : > { %v955_v52 = vadd.f32 %v2859_v46, %v954_v50 }
 0xa13   : > { %v959_v54 = vsel %vm958_vm0, %v2859_v46, %v955_v52 }
 0xa14   : > { %v964_v56 = vsel %vm961_vm1, %v963_v53, %v959_v54 }
 0xa15   : > { %v969_v57 = vmul.f32 %v967_v55, %v964_v56  ;;  %v976_v10 = vsub.f32 1.0, %v964_v56  ;;  %v982_v13 = vmul.f32 0.0, %v964_v56 }
 0xa17   : > { %971 = vrot.lane.b32.xlu0 %v969_v57, %s3053_s28 }
 0xa1f   : > { %923 = vrot.lane.b32.xlu0 %v876_v59, %s3908_s22 }
 0xa89   : > { %v972_v60 = vpop.permute.xlu0 %971 }
 0xa8a   : > { %v974_v61 = vadd.f32 %v972_v60, %v3345_v40 }
 0xa8c   : > { %2860 = vtanh.f32 %v974_v61 }
 0xa8d   : > { %2862 = vpow2.f32 %v2729_v0 }
 0xa91   : > { %v924_v24 = vpop.permute.xlu0 %923 }
 0xa92   : > { %v2861_v62 = vpop.eup %2860 }
 0xa93   : > { %978 = vrot.lane.b32.xlu1 %v2861_v62, %s3909_s25  ;;  %v2863_v1 = vpop.eup %2862 }
 0xa94   : > { %v906_v2 = vadd.f32 1.0, %v2863_v1 }
 0xa96   : > { %2864 = vrcp.f32 %v906_v2  ;;  %v918_v21 = vand.u32 2147483648, %v906_v2  ;;  %vm912_vm3 = vweird.f32 %v906_v2  ;;  %v916_v22 = vand.u32 2147483647, %v906_v2 }
 0xa98   : > { %v919_v25 = vor.u32 1.1754944e-38, %v918_v21  ;;  %vm917_vm6 = vcmp.eq.f32.partialorder %v916_v22, 8.507059e+37 }
 0xa9c   : > { %v2865_v3 = vpop.eup %2864 }
 0xa9d   : > { %v908_v7 = vmul.f32 %v2865_v3, %v906_v2  ;;  %vm913_vm2 = vweird.f32 %v2865_v3 }
 0xa9e   : > { %vm914_vm4 = vmor %vm912_vm3, %vm913_vm2 }
 0xa9f   : > { %v909_v9 = vsub.f32 1.0, %v908_v7 }
 0xaa1   : > { %v910_v12 = vmul.f32 %v2865_v3, %v909_v9 }
 0xaa3   : > { %v911_v18 = vadd.f32 %v2865_v3, %v910_v12 }
 0xaa5   : > { %v915_v23 = vsel %vm914_vm4, %v2865_v3, %v911_v18 }
 0xaa6   : > { %v920_v26 = vsel %vm917_vm6, %v919_v25, %v915_v23 }
 0xaa7   : > { %v926_v27 = vmul.f32 %v924_v24, %v920_v26  ;;  %v933_v34 = vsub.f32 1.0, %v920_v26  ;;  %v939_v36 = vmul.f32 0.0, %v920_v26  ;;  %v853_v26 = vlaneseq }
 0xb05   : > { %v979_v11 = vpop.permute.xlu1 %978 }
 0xb06   : > { %v981_v15 = vmul.f32 %v979_v11, %v976_v10 }
 0xb08   : > { %v3354_v17 = vadd.f32 %v982_v13, %v981_v15 }
 0xb0a   : > { %v1020_v20 = vrot.slane %v3354_v17, 7  ;;  %v1129_v54 = vrot.slane %v3354_v17, 1 }
 0xb0c   : > { %1021 = vrot.lane.b32.xlu2 %v1020_v20, %s3910_s17 }
 0xb14   : > { %928 = vrot.lane.b32.xlu2 %v926_v27, %s3053_s28  ;;  %v3384_v27 = vshrl.u32 %v853_v26, 7 }
 0xb16   : > { %vm989_vm15 = vcmp.eq.s32.totalorder %v3384_v27, 7  ;;  %vm1138_vm0 = vcmp.eq.s32.totalorder %v3384_v27, 6  ;;  %vm984_vm1 = vcmp.eq.s32.totalorder %v3384_v27, 0  ;;  %vm1133_vm2 = vcmp.eq.s32.totalorder %v3384_v27, 1 }
 0xb66   : > { %v1022_v28 = vpop.permute.xlu2 %1021 }
 0xb67   : > { %2732 = vmatmul.msk.f32.vlgmr.msra.gmra.mxu0 %vm503_vm5, %v1022_v28 }
 0xb68   : > { %1633 = vmatpush.msra.mxu0 %v3277_v4 }
 0xb6a   : > { %1634 = vmatpush.msra.mxu0 %v3282_v5 }
 0xb6e   : > { %v929_v29 = vpop.permute.xlu2 %928 }
 0xb6f   : > { %v931_v30 = vadd.f32 %v929_v29, %v3345_v40 }
 0xb71   : > { %2866 = vtanh.f32 %v931_v30 }
 0xb77   : > { %v2867_v8 = vpop.eup %2866 }
 0xb78   : > { %935 = vrot.lane.b32.xlu0 %v2867_v8, %s3909_s25  ;;  %v992_v8 = vperm.slane %v3354_v17, 7 }
 0xbe4   : > { %v1042_v31 = vpop.f32.mrf.mxu0 }
 0xbe5   : > { %v1043_v32 = vadd.f32 %v1042_v31, %v3325_v19 }
 0xbe7   : > { %v1089_v33 = vrot.slane %v1043_v32, 2 }
 0xbe9   : > { %1113 = vrot.lane.b32.xlu1 %v1089_v33, %s3052_s14  ;;  %1090 = vrot.lane.b32.xlu2 %v1089_v33, %s3907_s16 }
 0xbea   : > { %v936_v35 = vpop.permute.xlu0 %935 }
 0xbeb   : > { %v938_v37 = vmul.f32 %v936_v35, %v933_v34  ;;  %v993_v34 = vsel %vm989_vm15, %v992_v8, 0.0 }
 0xbed   : > { %v3367_v38 = vadd.f32 %v939_v36, %v938_v37 }
 0xbef   : > { %995 = vrot.lane.b32.xlu0 %v3367_v38, %s3909_s25  ;;  %v1084_v23 = vrot.slane %v3367_v38, 7 }
 0xc43   : > { %v1091_v39 = vpop.permute.xlu2 %1090 }
 0xc44   : > { %v1093_v41 = vadd.f32 %v1091_v39, %v3345_v40 }
 0xc46   : > { %v2734_v42 = vmul.f32 -1.442695, %v1093_v41 }
 0xc48   : > { %2868 = vpow2.f32 %v2734_v42 }
 0xc4e   : > { %v2869_v43 = vpop.eup %2868 }
 0xc4f   : > { %v1097_v44 = vadd.f32 1.0, %v2869_v43 }
 0xc51   : > { %2870 = vrcp.f32 %v1097_v44  ;;  %v1109_v48 = vand.u32 2147483648, %v1097_v44  ;;  %v1107_v50 = vand.u32 2147483647, %v1097_v44  ;;  %vm1103_vm8 = vweird.f32 %v1097_v44 }
 0xc53   : > { %v1110_v52 = vor.u32 1.1754944e-38, %v1109_v48  ;;  %vm1108_vm10 = vcmp.eq.f32.partialorder %v1107_v50, 8.507059e+37 }
 0xc57   : > { %v2871_v45 = vpop.eup %2870 }
 0xc58   : > { %v1099_v46 = vmul.f32 %v2871_v45, %v1097_v44  ;;  %vm1104_vm7 = vweird.f32 %v2871_v45 }
 0xc59   : > { %vm1105_vm9 = vmor %vm1103_vm8, %vm1104_vm7 }
 0xc5a   : > { %v1100_v47 = vsub.f32 1.0, %v1099_v46 }
 0xc5b   : > { %v1114_v55 = vpop.permute.xlu1 %1113 }
 0xc5c   : > { %v1101_v49 = vmul.f32 %v2871_v45, %v1100_v47 }
 0xc5e   : > { %v1102_v51 = vadd.f32 %v2871_v45, %v1101_v49  ;;  %v987_v49 = vperm.slane %v3367_v38, 0 }
 0xc60   : > { %v1106_v53 = vsel %vm1105_vm9, %v2871_v45, %v1102_v51 }
 0xc61   : > { %v1111_v56 = vsel %vm1108_vm10, %v1110_v52, %v1106_v53  ;;  %v996_v57 = vpop.permute.xlu0 %995  ;;  %v988_v53 = vsel %vm984_vm1, %v987_v49, 0.0 }
 0xc62   : > { %v1116_v58 = vmul.f32 %v1114_v55, %v1111_v56  ;;  %2731 = vmatmul.msk.f32.vlgmr.msra.gmra.mxu3 %vm503_vm5, %v996_v57  ;;  %v1131_v59 = vmul.f32 %v1129_v54, %v1111_v56  ;;  %v1123_v28 = vsub.f32 1.0, %v1111_v56 }
 0xc63   : > { %1607 = vmatpush.msra.mxu3 %v3302_v14 }
 0xc64   : > { %1118 = vrot.lane.b32.xlu2 %v1116_v58, %s3053_s28 }
 0xc65   : > { %1608 = vmatpush.msra.mxu3 %v3312_v16 }
 0xcbe   : > { %v1119_v60 = vpop.permute.xlu2 %1118 }
 0xcbf   : > { %v1121_v61 = vadd.f32 %v1119_v60, %v3345_v40 }
 0xcc1   : > { %2872 = vtanh.f32 %v1121_v61 }
 0xcc7   : > { %v2873_v62 = vpop.eup %2872 }
 0xcc8   : > { %1125 = vrot.lane.b32.xlu0 %v2873_v62, %s3909_s25 }
 0xce5   : > { %v1016_v63 = vpop.f32.mrf.mxu3 }
 0xce6   : > { %v1017_v0 = vadd.f32 %v1016_v63, %v3287_v6 }
 0xce8   : > { %v1046_v1 = vrot.slane %v1017_v0, 7 }
 0xcea   : > { %v1048_v2 = vadd.f32 %v1046_v1, %v3345_v40  ;;  %1068 = vrot.lane.b32.xlu2 %v1046_v1, %s3908_s22 }
 0xcec   : > { %v2733_v3 = vmul.f32 -1.442695, %v1048_v2 }
 0xcee   : > { %2874 = vpow2.f32 %v2733_v3 }
 0xcf4   : > { %v2875_v7 = vpop.eup %2874 }
 0xcf5   : > { %v1052_v9 = vadd.f32 1.0, %v2875_v7 }
 0xcf7   : > { %2876 = vrcp.f32 %v1052_v9  ;;  %v1064_v13 = vand.u32 2147483648, %v1052_v9  ;;  %v1062_v18 = vand.u32 2147483647, %v1052_v9  ;;  %vm1058_vm12 = vweird.f32 %v1052_v9 }
 0xcf9   : > { %v1065_v21 = vor.u32 1.1754944e-38, %v1064_v13  ;;  %vm1063_vm14 = vcmp.eq.f32.partialorder %v1062_v18, 8.507059e+37 }
 0xcfd   : > { %v2877_v10 = vpop.eup %2876 }
 0xcfe   : > { %v1054_v11 = vmul.f32 %v2877_v10, %v1052_v9  ;;  %vm1059_vm11 = vweird.f32 %v2877_v10 }
 0xcff   : > { %vm1060_vm13 = vmor %vm1058_vm12, %vm1059_vm11  ;;  %vm1288_vm12 = vcmp.eq.s32.totalorder %v3384_v27, 5 }
 0xd00   : > { %v1055_v12 = vsub.f32 1.0, %v1054_v11 }
 0xd02   : > { %v1056_v15 = vmul.f32 %v2877_v10, %v1055_v12 }
 0xd04   : > { %v1057_v20 = vadd.f32 %v2877_v10, %v1056_v15 }
 0xd06   : > { %v1061_v22 = vsel %vm1060_vm13, %v2877_v10, %v1057_v20  ;;  %vm1283_vm13 = vcmp.eq.s32.totalorder %v3384_v27, 2 }
 0xd07   : > { %v1066_v24 = vsel %vm1063_vm14, %v1065_v21, %v1061_v22 }
 0xd08   : > { %v1086_v25 = vmul.f32 %v1084_v23, %v1066_v24  ;;  %v1078_v46 = vsub.f32 1.0, %v1066_v24 }
 0xd3a   : > { %v1126_v29 = vpop.permute.xlu0 %1125 }
 0xd3b   : > { %v1128_v30 = vmul.f32 %v1126_v29, %v1123_v28 }
 0xd3d   : > { %v3388_v31 = vadd.f32 %v1131_v59, %v1128_v30 }
 0xd3f   : > { %v1141_v32 = vperm.slane %v3388_v31, 6  ;;  %v1170_v33 = vrot.slane %v3388_v31, 6  ;;  %v1279_v9 = vrot.slane %v3388_v31, 1 }
 0xd41   : > { %v3397_v35 = vsel %vm1138_vm0, %v1141_v32, %v993_v34  ;;  %1171 = vrot.lane.b32.xlu1 %v1170_v33, %s3910_s17 }
 0xd44   : > { %v1069_v17 = vpop.permute.xlu2 %1068 }
 0xd45   : > { %v1071_v36 = vmul.f32 %v1069_v17, %v1066_v24 }
 0xd47   : > { %1073 = vrot.lane.b32.xlu0 %v1071_v36, %s3053_s28 }
 0xdb3   : > { %v1172_v37 = vpop.permute.xlu1 %1171 }
 0xdb4   : > { %2736 = vmatmul.msk.f32.vlgmr.msra.gmra.mxu1 %vm503_vm5, %v1172_v37 }
 0xdb5   : > { %1777 = vmatpush.msra.mxu1 %v3277_v4 }
 0xdb7   : > { %1778 = vmatpush.msra.mxu1 %v3282_v5 }
 0xdb9   : > { %v1074_v39 = vpop.permute.xlu0 %1073 }
 0xdba   : > { %v1076_v41 = vadd.f32 %v1074_v39, %v3345_v40 }
 0xdbc   : > { %2878 = vtanh.f32 %v1076_v41 }
 0xdc2   : > { %v2879_v42 = vpop.eup %2878 }
 0xdc3   : > { %1080 = vrot.lane.b32.xlu1 %v2879_v42, %s3909_s25 }
 0xe31   : > { %v1192_v43 = vpop.f32.mrf.mxu1 }
 0xe32   : > { %v1193_v44 = vadd.f32 %v1192_v43, %v3325_v19 }
 0xe34   : > { %v1239_v45 = vrot.slane %v1193_v44, 3 }
 0xe35   : > { %v1081_v47 = vpop.permute.xlu1 %1080 }
 0xe36   : > { %v1083_v48 = vmul.f32 %v1081_v47, %v1078_v46  ;;  %1240 = vrot.lane.b32.xlu0 %v1239_v45, %s3907_s16  ;;  %1263 = vrot.lane.b32.xlu1 %v1239_v45, %s3052_s14 }
 0xe38   : > { %v3410_v50 = vadd.f32 %v1086_v25, %v1083_v48 }
 0xe3a   : > { %v1136_v51 = vperm.slane %v3410_v50, 1  ;;  %v1144_v52 = vrot.slane %v3410_v50, 1 }
 0xe3c   : > { %1145 = vrot.lane.b32.xlu2 %v1144_v52, %s3909_s25  ;;  %v3421_v54 = vsel %vm1133_vm2, %v1136_v51, %v988_v53 }
 0xe96   : > { %v1146_v38 = vpop.permute.xlu2 %1145 }
 0xe97   : > { %2735 = vmatmul.msk.f32.vlgmr.msra.gmra.mxu2 %vm503_vm5, %v1146_v38 }
 0xe98   : > { %1751 = vmatpush.msra.mxu2 %v3302_v14 }
 0xe9a   : > { %1752 = vmatpush.msra.mxu2 %v3312_v16 }
 0xea8   : > { %v1241_v55 = vpop.permute.xlu0 %1240  ;;  %v1264_v10 = vpop.permute.xlu1 %1263 }
 0xea9   : > { %v1243_v56 = vadd.f32 %v1241_v55, %v3345_v40 }
 0xeab   : > { %v2738_v57 = vmul.f32 -1.442695, %v1243_v56 }
 0xead   : > { %2880 = vpow2.f32 %v2738_v57 }
 0xeb3   : > { %v2881_v58 = vpop.eup %2880 }
 0xeb4   : > { %v1247_v59 = vadd.f32 1.0, %v2881_v58  ;;  %v1234_v58 = vrot.slane %v3410_v50, 7 }
 0xeb6   : > { %2882 = vrcp.f32 %v1247_v59  ;;  %v1259_v63 = vand.u32 2147483648, %v1247_v59  ;;  %v1257_v1 = vand.u32 2147483647, %v1247_v59  ;;  %vm1253_vm4 = vweird.f32 %v1247_v59 }
 0xeb8   : > { %v1260_v3 = vor.u32 1.1754944e-38, %v1259_v63  ;;  %vm1258_vm7 = vcmp.eq.f32.partialorder %v1257_v1, 8.507059e+37 }
 0xebc   : > { %v2883_v60 = vpop.eup %2882 }
 0xebd   : > { %v1249_v61 = vmul.f32 %v2883_v60, %v1247_v59  ;;  %vm1254_vm3 = vweird.f32 %v2883_v60 }
 0xebe   : > { %vm1255_vm6 = vmor %vm1253_vm4, %vm1254_vm3 }
 0xebf   : > { %v1250_v62 = vsub.f32 1.0, %v1249_v61 }
 0xec1   : > { %v1251_v0 = vmul.f32 %v2883_v60, %v1250_v62 }
 0xec3   : > { %v1252_v2 = vadd.f32 %v2883_v60, %v1251_v0 }
 0xec5   : > { %v1256_v7 = vsel %vm1255_vm6, %v2883_v60, %v1252_v2 }
 0xec6   : > { %v1261_v11 = vsel %vm1258_vm7, %v1260_v3, %v1256_v7 }
 0xec7   : > { %v1266_v12 = vmul.f32 %v1264_v10, %v1261_v11  ;;  %v1281_v13 = vmul.f32 %v1279_v9, %v1261_v11  ;;  %v1273_v43 = vsub.f32 1.0, %v1261_v11 }
 0xec9   : > { %1268 = vrot.lane.b32.xlu2 %v1266_v12, %s3053_s28 }
 0xf1a   : > { %v1166_v15 = vpop.f32.mrf.mxu2 }
 0xf1b   : > { %v1167_v18 = vadd.f32 %v1166_v15, %v3287_v6 }
 0xf1d   : > { %v1196_v20 = vrot.slane %v1167_v18, 6 }
 0xf1f   : > { %1218 = vrot.lane.b32.xlu1 %v1196_v20, %s3908_s22  ;;  %v1198_v24 = vadd.f32 %v1196_v20, %v3345_v40 }
 0xf21   : > { %v2737_v25 = vmul.f32 -1.442695, %v1198_v24 }
 0xf23   : > { %v1269_v21 = vpop.permute.xlu2 %1268 }
 0xf24   : > { %v1271_v22 = vadd.f32 %v1269_v21, %v3345_v40 }
 0xf26   : > { %2884 = vtanh.f32 %v1271_v22 }
 0xf27   : > { %2886 = vpow2.f32 %v2737_v25 }
 0xf2c   : > { %v2885_v23 = vpop.eup %2884 }
 0xf2d   : > { %1275 = vrot.lane.b32.xlu0 %v2885_v23, %s3909_s25  ;;  %v2887_v28 = vpop.eup %2886 }
 0xf2e   : > { %v1202_v29 = vadd.f32 1.0, %v2887_v28 }
 0xf30   : > { %2888 = vrcp.f32 %v1202_v29  ;;  %v1214_v34 = vand.u32 2147483648, %v1202_v29  ;;  %vm1208_vm9 = vweird.f32 %v1202_v29  ;;  %v1212_v17 = vand.u32 2147483647, %v1202_v29 }
 0xf32   : > { %v1215_v37 = vor.u32 1.1754944e-38, %v1214_v34  ;;  %vm1213_vm11 = vcmp.eq.f32.partialorder %v1212_v17, 8.507059e+37 }
 0xf36   : > { %v2889_v30 = vpop.eup %2888 }
 0xf37   : > { %v1204_v8 = vmul.f32 %v2889_v30, %v1202_v29  ;;  %vm1209_vm8 = vweird.f32 %v2889_v30 }
 0xf38   : > { %vm1210_vm10 = vmor %vm1208_vm9, %vm1209_vm8 }
 0xf39   : > { %v1205_v31 = vsub.f32 1.0, %v1204_v8 }
 0xf3b   : > { %v1206_v32 = vmul.f32 %v2889_v30, %v1205_v31 }
 0xf3d   : > { %v1207_v33 = vadd.f32 %v2889_v30, %v1206_v32 }
 0xf3f   : > { %v1211_v36 = vsel %vm1210_vm10, %v2889_v30, %v1207_v33 }
 0xf40   : > { %v1216_v39 = vsel %vm1213_vm11, %v1215_v37, %v1211_v36  ;;  %vm1438_vm11 = vcmp.eq.s32.totalorder %v3384_v27, 4 }
 0xf41   : > { %v1228_v57 = vsub.f32 1.0, %v1216_v39  ;;  %v1236_v60 = vmul.f32 %v1234_v58, %v1216_v39 }
 0xf91   : > { %v1219_v41 = vpop.permute.xlu1 %1218 }
 0xf92   : > { %v1221_v42 = vmul.f32 %v1219_v41, %v1216_v39 }
 0xf94   : > { %1223 = vrot.lane.b32.xlu0 %v1221_v42, %s3053_s28 }
 0xf9f   : > { %v1276_v44 = vpop.permute.xlu0 %1275 }
 0xfa0   : > { %v1278_v45 = vmul.f32 %v1276_v44, %v1273_v43 }
 0xfa2   : > { %v1282_v46 = vadd.f32 %v1281_v13, %v1278_v45 }
 0xfa4   : > { %v1291_v47 = vperm.slane %v1282_v46, 5  ;;  %v1320_v48 = vrot.slane %v1282_v46, 5  ;;  %v1429_v18 = vrot.slane %v1282_v46, 1 }
 0xfa6   : > { %v3439_v49 = vsel %vm1288_vm12, %v1291_v47, %v3397_v35  ;;  %1321 = vrot.lane.b32.xlu2 %v1320_v48, %s3910_s17 }
0x1000   : > { %v1322_v51 = vpop.permute.xlu2 %1321 }
0x1001   : > { %2740 = vmatmul.msk.f32.vlgmr.msrb.gmra.mxu0 %vm503_vm5, %v1322_v51 }
0x1002   : > { %1921 = vmatpush.msrb.mxu0 %v3277_v4 }
0x1004   : > { %1922 = vmatpush.msrb.mxu0 %v3282_v5 }
0x1006   : > { %v1224_v52 = vpop.permute.xlu0 %1223 }
0x1007   : > { %v1226_v53 = vadd.f32 %v1224_v52, %v3345_v40 }
0x1009   : > { %2890 = vtanh.f32 %v1226_v53 }
0x100f   : > { %v2891_v38 = vpop.eup %2890 }
0x1010   : > { %1230 = vrot.lane.b32.xlu1 %v2891_v38, %s3909_s25 }
0x107e   : > { %v1342_v55 = vpop.f32.mrf.mxu0 }
0x107f   : > { %v1343_v35 = vadd.f32 %v1342_v55, %v3325_v19 }
0x1081   : > { %v1389_v56 = vrot.slane %v1343_v35, 4 }
0x1082   : > { %v1231_v59 = vpop.permute.xlu1 %1230 }
0x1083   : > { %v1233_v61 = vmul.f32 %v1231_v59, %v1228_v57  ;;  %1390 = vrot.lane.b32.xlu0 %v1389_v56, %s3907_s16  ;;  %1413 = vrot.lane.b32.xlu1 %v1389_v56, %s3052_s14 }
0x1085   : > { %v3451_v4 = vadd.f32 %v1236_v60, %v1233_v61 }
0x1087   : > { %v1286_v5 = vperm.slane %v3451_v4, 2  ;;  %v1294_v62 = vrot.slane %v3451_v4, 2 }
0x1089   : > { %1295 = vrot.lane.b32.xlu2 %v1294_v62, %s3909_s25  ;;  %v3460_v50 = vsel %vm1283_vm13, %v1286_v5, %v3421_v54 }
0x10e3   : > { %v1296_v63 = vpop.permute.xlu2 %1295 }
0x10e4   : > { %2739 = vmatmul.msk.f32.vlgmr.msrb.gmra.mxu3 %vm503_vm5, %v1296_v63 }
0x10e5   : > { %1895 = vmatpush.msrb.mxu3 %v3302_v14 }
0x10e7   : > { %1896 = vmatpush.msrb.mxu3 %v3312_v16 }
0x10f5   : > { %v1391_v0 = vpop.permute.xlu0 %1390  ;;  %v1414_v20 = vpop.permute.xlu1 %1413 }
0x10f6   : > { %v1393_v1 = vadd.f32 %v1391_v0, %v3345_v40  ;;  %v1384_v0 = vrot.slane %v3451_v4, 7 }
0x10f8   : > { %v2742_v2 = vmul.f32 -1.442695, %v1393_v1 }
0x10fa   : > { %2892 = vpow2.f32 %v2742_v2 }
0x1100   : > { %v2893_v3 = vpop.eup %2892 }
0x1101   : > { %v1397_v7 = vadd.f32 1.0, %v2893_v3 }
0x1103   : > { %2894 = vrcp.f32 %v1397_v7  ;;  %v1409_v54 = vand.u32 2147483648, %v1397_v7  ;;  %v1407_v13 = vand.u32 2147483647, %v1397_v7  ;;  %vm1403_vm3 = vweird.f32 %v1397_v7 }
0x1105   : > { %v1410_v14 = vor.u32 1.1754944e-38, %v1409_v54  ;;  %vm1408_vm6 = vcmp.eq.f32.partialorder %v1407_v13, 8.507059e+37 }
0x1109   : > { %v2895_v9 = vpop.eup %2894 }
0x110a   : > { %v1399_v10 = vmul.f32 %v2895_v9, %v1397_v7  ;;  %vm1404_vm14 = vweird.f32 %v2895_v9 }
0x110b   : > { %vm1405_vm4 = vmor %vm1403_vm3, %vm1404_vm14  ;;  %vm1433_vm14 = vcmp.eq.s32.totalorder %v3384_v27, 3 }
0x110c   : > { %v1400_v11 = vsub.f32 1.0, %v1399_v10 }
0x110e   : > { %v1401_v12 = vmul.f32 %v2895_v9, %v1400_v11 }
0x1110   : > { %v1402_v15 = vadd.f32 %v2895_v9, %v1401_v12 }
0x1112   : > { %v1406_v16 = vsel %vm1405_vm4, %v2895_v9, %v1402_v15 }
0x1113   : > { %v1411_v21 = vsel %vm1408_vm6, %v1410_v14, %v1406_v16 }
0x1114   : > { %v1416_v22 = vmul.f32 %v1414_v20, %v1411_v21  ;;  %v1431_v23 = vmul.f32 %v1429_v18, %v1411_v21  ;;  %v1423_v51 = vsub.f32 1.0, %v1411_v21 }
0x1116   : > { %1418 = vrot.lane.b32.xlu2 %v1416_v22, %s3053_s28 }
0x1167   : > { %v1316_v24 = vpop.f32.mrf.mxu3 }
0x1168   : > { %v1317_v25 = vadd.f32 %v1316_v24, %v3287_v6 }
0x116a   : > { %v1346_v28 = vrot.slane %v1317_v25, 5 }
0x116c   : > { %1368 = vrot.lane.b32.xlu1 %v1346_v28, %s3908_s22  ;;  %v1348_v31 = vadd.f32 %v1346_v28, %v3345_v40 }
0x116e   : > { %v2741_v32 = vmul.f32 -1.442695, %v1348_v31 }
0x1170   : > { %v1419_v29 = vpop.permute.xlu2 %1418 }
0x1171   : > { %v1421_v30 = vadd.f32 %v1419_v29, %v3345_v40 }
0x1173   : > { %2896 = vtanh.f32 %v1421_v30 }
0x1174   : > { %2898 = vpow2.f32 %v2741_v32 }
0x1179   : > { %v2897_v8 = vpop.eup %2896 }
0x117a   : > { %1425 = vrot.lane.b32.xlu0 %v2897_v8, %s3909_s25  ;;  %v2899_v33 = vpop.eup %2898 }
0x117b   : > { %v1352_v34 = vadd.f32 1.0, %v2899_v33 }
0x117d   : > { %2900 = vrcp.f32 %v1352_v34  ;;  %v1364_v42 = vand.u32 2147483648, %v1352_v34  ;;  %vm1358_vm8 = vweird.f32 %v1352_v34  ;;  %v1362_v43 = vand.u32 2147483647, %v1352_v34 }
0x117f   : > { %v1365_v45 = vor.u32 1.1754944e-38, %v1364_v42  ;;  %vm1363_vm10 = vcmp.eq.f32.partialorder %v1362_v43, 8.507059e+37 }
0x1183   : > { %v2901_v17 = vpop.eup %2900 }
0x1184   : > { %v1354_v36 = vmul.f32 %v2901_v17, %v1352_v34  ;;  %vm1359_vm7 = vweird.f32 %v2901_v17 }
0x1185   : > { %vm1360_vm9 = vmor %vm1358_vm8, %vm1359_vm7 }
0x1186   : > { %v1355_v37 = vsub.f32 1.0, %v1354_v36 }
0x1188   : > { %v1356_v39 = vmul.f32 %v2901_v17, %v1355_v37 }
0x118a   : > { %v1357_v41 = vadd.f32 %v2901_v17, %v1356_v39 }
0x118c   : > { %v1361_v44 = vsel %vm1360_vm9, %v2901_v17, %v1357_v41 }
0x118d   : > { %v1366_v46 = vsel %vm1363_vm10, %v1365_v45, %v1361_v44 }
0x118e   : > { %v1378_v63 = vsub.f32 1.0, %v1366_v46 }
0x11de   : > { %v1369_v47 = vpop.permute.xlu1 %1368 }
0x11df   : > { %v1371_v48 = vmul.f32 %v1369_v47, %v1366_v46 }
0x11e1   : > { %1373 = vrot.lane.b32.xlu0 %v1371_v48, %s3053_s28 }
0x11ec   : > { %v1426_v52 = vpop.permute.xlu0 %1425 }
0x11ed   : > { %v1428_v53 = vmul.f32 %v1426_v52, %v1423_v51 }
0x11ef   : > { %v1432_v38 = vadd.f32 %v1431_v23, %v1428_v53 }
0x11f1   : > { %v1441_v55 = vperm.slane %v1432_v38, 4  ;;  %v1470_v35 = vrot.slane %v1432_v38, 4  ;;  %v1579_v25 = vrot.slane %v1432_v38, 1 }
0x11f3   : > { %1471 = vrot.lane.b32.xlu2 %v1470_v35, %s3910_s17  ;;  %v3478_v56 = vsel %vm1438_vm11, %v1441_v55, %v3439_v49  ;;  %v1386_v49 = vmul.f32 %v1384_v0, %v1366_v46 }
0x124d   : > { %v1472_v57 = vpop.permute.xlu2 %1471 }
0x124e   : > { %2744 = vmatmul.msk.f32.vlgmr.msrb.gmra.mxu1 %vm503_vm5, %v1472_v57 }
0x1253   : > { %v1374_v58 = vpop.permute.xlu0 %1373 }
0x1254   : > { %v1376_v59 = vadd.f32 %v1374_v58, %v3345_v40 }
0x1256   : > { %2902 = vtanh.f32 %v1376_v59 }
0x125c   : > { %v2903_v60 = vpop.eup %2902 }
0x125d   : > { %1380 = vrot.lane.b32.xlu1 %v2903_v60, %s3909_s25 }
0x12cb   : > { %v1492_v61 = vpop.f32.mrf.mxu1 }
0x12cc   : > { %v1493_v5 = vadd.f32 %v1492_v61, %v3325_v19 }
0x12ce   : > { %v1539_v62 = vrot.slane %v1493_v5, 5 }
0x12cf   : > { %v1381_v1 = vpop.permute.xlu1 %1380 }
0x12d0   : > { %v1383_v2 = vmul.f32 %v1381_v1, %v1378_v63  ;;  %1540 = vrot.lane.b32.xlu0 %v1539_v62, %s3907_s16  ;;  %1563 = vrot.lane.b32.xlu1 %v1539_v62, %s3052_s14 }
0x12d2   : > { %v3487_v3 = vadd.f32 %v1386_v49, %v1383_v2 }
0x12d4   : > { %v1436_v7 = vperm.slane %v3487_v3, 3  ;;  %v1444_v9 = vrot.slane %v3487_v3, 3  ;;  %v1534_v2 = vrot.slane %v3487_v3, 7 }
0x12d6   : > { %1445 = vrot.lane.b32.xlu2 %v1444_v9, %s3909_s25  ;;  %v3496_v4 = vsel %vm1433_vm14, %v1436_v7, %v3460_v50 }
0x1330   : > { %v1446_v10 = vpop.permute.xlu2 %1445 }
0x1331   : > { %2743 = vmatmul.msk.f32.vlgmr.msrb.gmra.mxu2 %vm503_vm5, %v1446_v10 }
0x1342   : > { %v1541_v11 = vpop.permute.xlu0 %1540  ;;  %v1564_v28 = vpop.permute.xlu1 %1563 }
0x1343   : > { %v1543_v54 = vadd.f32 %v1541_v11, %v3345_v40 }
0x1345   : > { %v2746_v12 = vmul.f32 -1.442695, %v1543_v54 }
0x1347   : > { %2904 = vpow2.f32 %v2746_v12 }
0x134d   : > { %v2905_v13 = vpop.eup %2904 }
0x134e   : > { %v1547_v15 = vadd.f32 1.0, %v2905_v13 }
0x1350   : > { %2906 = vrcp.f32 %v1547_v15  ;;  %v1559_v20 = vand.u32 2147483648, %v1547_v15  ;;  %v1557_v22 = vand.u32 2147483647, %v1547_v15  ;;  %vm1553_vm4 = vweird.f32 %v1547_v15 }
0x1352   : > { %v1560_v23 = vor.u32 1.1754944e-38, %v1559_v20  ;;  %vm1558_vm7 = vcmp.eq.f32.partialorder %v1557_v22, 8.507059e+37 }
0x1356   : > { %v2907_v14 = vpop.eup %2906 }
0x1357   : > { %v1549_v16 = vmul.f32 %v2907_v14, %v1547_v15  ;;  %vm1554_vm3 = vweird.f32 %v2907_v14 }
0x1358   : > { %vm1555_vm6 = vmor %vm1553_vm4, %vm1554_vm3 }
0x1359   : > { %v1550_v18 = vsub.f32 1.0, %v1549_v16 }
0x135b   : > { %v1551_v21 = vmul.f32 %v2907_v14, %v1550_v18 }
0x135d   : > { %v1552_v50 = vadd.f32 %v2907_v14, %v1551_v21 }
0x135f   : > { %v1556_v24 = vsel %vm1555_vm6, %v2907_v14, %v1552_v50 }
0x1360   : > { %v1561_v29 = vsel %vm1558_vm7, %v1560_v23, %v1556_v24 }
0x1361   : > { %v1566_v30 = vmul.f32 %v1564_v28, %v1561_v29  ;;  %v1581_v8 = vmul.f32 %v1579_v25, %v1561_v29  ;;  %v1573_v35 = vsub.f32 1.0, %v1561_v29 }
0x1363   : > { %1568 = vrot.lane.b32.xlu2 %v1566_v30, %s3053_s28 }
0x13b4   : > { %v1466_v31 = vpop.f32.mrf.mxu2 }
0x13b5   : > { %v1467_v32 = vadd.f32 %v1466_v31, %v3287_v6 }
0x13b7   : > { %v1496_v33 = vrot.slane %v1467_v32, 4 }
0x13b9   : > { %1518 = vrot.lane.b32.xlu0 %v1496_v33, %s3908_s22  ;;  %v1498_v37 = vadd.f32 %v1496_v33, %v3345_v40 }
0x13bb   : > { %v2745_v39 = vmul.f32 -1.442695, %v1498_v37  ;;  %v3536_v37 = vld [vmem:[%s3894_s11 + $0xb] sm:$0x1] }
0x13bd   : > { %v1569_v34 = vpop.permute.xlu2 %1568 }
0x13be   : > { %v1571_v17 = vadd.f32 %v1569_v34, %v3345_v40 }
0x13c0   : > { %2908 = vtanh.f32 %v1571_v17 }
0x13c1   : > { %2910 = vpow2.f32 %v2745_v39 }
0x13c6   : > { %v2909_v36 = vpop.eup %2908 }
0x13c7   : > { %1575 = vrot.lane.b32.xlu1 %v2909_v36, %s3909_s25  ;;  %v2911_v41 = vpop.eup %2910 }
0x13c8   : > { %v1502_v42 = vadd.f32 1.0, %v2911_v41 }
0x13ca   : > { %2912 = vrcp.f32 %v1502_v42  ;;  %v1514_v47 = vand.u32 2147483648, %v1502_v42  ;;  %vm1508_vm9 = vweird.f32 %v1502_v42  ;;  %v1512_v48 = vand.u32 2147483647, %v1502_v42 }
0x13cc   : > { %v1515_v52 = vor.u32 1.1754944e-38, %v1514_v47  ;;  %vm1513_vm3 = vcmp.eq.f32.partialorder %v1512_v48, 8.507059e+37 }
0x13d0   : > { %v2913_v43 = vpop.eup %2912 }
0x13d1   : > { %v1504_v44 = vmul.f32 %v2913_v43, %v1502_v42  ;;  %vm1509_vm8 = vweird.f32 %v2913_v43 }
0x13d2   : > { %vm1510_vm10 = vmor %vm1508_vm9, %vm1509_vm8 }
0x13d3   : > { %v1505_v6 = vsub.f32 1.0, %v1504_v44 }
0x13d5   : > { %v1506_v45 = vmul.f32 %v2913_v43, %v1505_v6 }
0x13d7   : > { %v1507_v46 = vadd.f32 %v2913_v43, %v1506_v45 }
0x13d9   : > { %v1511_v51 = vsel %vm1510_vm10, %v2913_v43, %v1507_v46 }
0x13da   : > { %v1516_v53 = vsel %vm1513_vm3, %v1515_v52, %v1511_v51 }
0x13db   : > { %v1528_v49 = vsub.f32 1.0, %v1516_v53  ;;  %v1536_v9 = vmul.f32 %v1534_v2, %v1516_v53 }
0x142b   : > { %v1519_v38 = vpop.permute.xlu0 %1518 }
0x142c   : > { %v1521_v55 = vmul.f32 %v1519_v38, %v1516_v53 }
0x142e   : > { %1523 = vrot.lane.b32.xlu2 %v1521_v55, %s3053_s28 }
0x1439   : > { %v1576_v57 = vpop.permute.xlu1 %1575 }
0x143a   : > { %v1578_v58 = vmul.f32 %v1576_v57, %v1573_v35 }
0x143c   : > { %v1582_v59 = vadd.f32 %v1581_v8, %v1578_v58 }
0x143e   : > { %v1585_v60 = vperm.slane %v1582_v59, 3  ;;  %v1614_v61 = vrot.slane %v1582_v59, 3  ;;  %v1723_v31 = vrot.slane %v1582_v59, 1 }
0x1440   : > { %1615 = vrot.lane.b32.xlu0 %v1614_v61, %s3910_s17  ;;  %v3511_v5 = vsel %vm1433_vm14, %v1585_v60, %v3478_v56 }
0x1488   : > { %v1524_v62 = vpop.permute.xlu2 %1523 }
0x1489   : > { %v1526_v63 = vadd.f32 %v1524_v62, %v3345_v40 }
0x148b   : > { %2914 = vtanh.f32 %v1526_v63 }
0x1491   : > { %v2915_v0 = vpop.eup %2914 }
0x1492   : > { %1530 = vrot.lane.b32.xlu1 %v2915_v0, %s3909_s25 }
0x14b2   : > { %v1616_v1 = vpop.permute.xlu0 %1615 }
0x14b3   : > { %2748 = vmatmul.msk.f32.vlgmr.msra.gmra.mxu0 %vm503_vm5, %v1616_v1 }
0x1504   : > { %v1531_v7 = vpop.permute.xlu1 %1530 }
0x1505   : > { %v1533_v10 = vmul.f32 %v1531_v7, %v1528_v49 }
0x1507   : > { %v3517_v11 = vadd.f32 %v1536_v9, %v1533_v10 }
0x1509   : > { %v1583_v56 = vperm.slane %v3517_v11, 4  ;;  %v1588_v54 = vrot.slane %v3517_v11, 4 }
0x150b   : > { %1589 = vrot.lane.b32.xlu2 %v1588_v54, %s3909_s25  ;;  %v3525_v12 = vsel %vm1438_vm11, %v1583_v56, %v3496_v4 }
0x1530   : > { %v1636_v13 = vpop.f32.mrf.mxu0 }
0x1531   : > { %v1637_v15 = vadd.f32 %v1636_v13, %v3325_v19 }
0x1533   : > { %v1683_v3 = vrot.slane %v1637_v15, 6  ;;  %v1678_v15 = vrot.slane %v3517_v11, 7 }
0x1535   : > { %1707 = vrot.lane.b32.xlu1 %v1683_v3, %s3052_s14  ;;  %1684 = vrot.lane.b32.xlu0 %v1683_v3, %s3907_s16 }
0x1565   : > { %v1590_v14 = vpop.permute.xlu2 %1589 }
0x1566   : > { %2747 = vmatmul.msk.f32.vlgmr.msra.gmra.mxu3 %vm503_vm5, %v1590_v14 }
0x15a7   : > { %v1685_v16 = vpop.permute.xlu0 %1684  ;;  %v1708_v32 = vpop.permute.xlu1 %1707 }
0x15a8   : > { %v1687_v18 = vadd.f32 %v1685_v16, %v3345_v40 }
0x15aa   : > { %v2750_v20 = vmul.f32 -1.442695, %v1687_v18 }
0x15ac   : > { %2916 = vpow2.f32 %v2750_v20 }
0x15b2   : > { %v2917_v21 = vpop.eup %2916 }
0x15b3   : > { %v1691_v22 = vadd.f32 1.0, %v2917_v21 }
0x15b5   : > { %2918 = vrcp.f32 %v1691_v22  ;;  %v1703_v24 = vand.u32 2147483648, %v1691_v22  ;;  %v1701_v28 = vand.u32 2147483647, %v1691_v22  ;;  %vm1697_vm14 = vweird.f32 %v1691_v22 }
0x15b7   : > { %v1704_v30 = vor.u32 1.1754944e-38, %v1703_v24  ;;  %vm1702_vm6 = vcmp.eq.f32.partialorder %v1701_v28, 8.507059e+37 }
0x15bb   : > { %v2919_v4 = vpop.eup %2918 }
0x15bc   : > { %v1693_v50 = vmul.f32 %v2919_v4, %v1691_v22  ;;  %vm1698_vm11 = vweird.f32 %v2919_v4 }
0x15bd   : > { %vm1699_vm4 = vmor %vm1697_vm14, %vm1698_vm11 }
0x15be   : > { %v1694_v23 = vsub.f32 1.0, %v1693_v50 }
0x15c0   : > { %v1695_v25 = vmul.f32 %v2919_v4, %v1694_v23 }
0x15c2   : > { %v1696_v29 = vadd.f32 %v2919_v4, %v1695_v25 }
0x15c4   : > { %v1700_v8 = vsel %vm1699_vm4, %v2919_v4, %v1696_v29 }
0x15c5   : > { %v1705_v33 = vsel %vm1702_vm6, %v1704_v30, %v1700_v8 }
0x15c6   : > { %v1710_v34 = vmul.f32 %v1708_v32, %v1705_v33  ;;  %v1725_v17 = vmul.f32 %v1723_v31, %v1705_v33  ;;  %v1717_v62 = vsub.f32 1.0, %v1705_v33 }
0x15c8   : > { %1712 = vrot.lane.b32.xlu2 %v1710_v34, %s3053_s28 }
0x15e9   : > { %v1610_v36 = vpop.f32.mrf.mxu3 }
0x15ea   : > { %v1611_v39 = vadd.f32 %v3536_v37, %v1610_v36 }
0x15ec   : > { %v1640_v41 = vrot.slane %v1611_v39, 3 }
0x15ee   : > { %1662 = vrot.lane.b32.xlu0 %v1640_v41, %s3908_s22  ;;  %v1642_v6 = vadd.f32 %v1640_v41, %v3345_v40 }
0x15f0   : > { %v2749_v45 = vmul.f32 -1.442695, %v1642_v6 }
0x1622   : > { %v1713_v42 = vpop.permute.xlu2 %1712 }
0x1623   : > { %v1715_v43 = vadd.f32 %v1713_v42, %v3345_v40 }
0x1625   : > { %2920 = vtanh.f32 %v1715_v43 }
0x1626   : > { %2922 = vpow2.f32 %v2749_v45 }
0x162b   : > { %v2921_v44 = vpop.eup %2920 }
0x162c   : > { %1719 = vrot.lane.b32.xlu1 %v2921_v44, %s3909_s25  ;;  %v2923_v46 = vpop.eup %2922 }
0x162d   : > { %v1646_v47 = vadd.f32 1.0, %v2923_v46 }
0x162f   : > { %2924 = vrcp.f32 %v1646_v47  ;;  %v1658_v55 = vand.u32 2147483648, %v1646_v47  ;;  %vm1652_vm8 = vweird.f32 %v1646_v47  ;;  %v1656_v35 = vand.u32 2147483647, %v1646_v47 }
0x1631   : > { %v1659_v58 = vor.u32 1.1754944e-38, %v1658_v55  ;;  %vm1657_vm10 = vcmp.eq.f32.partialorder %v1656_v35, 8.507059e+37 }
0x1635   : > { %v2925_v48 = vpop.eup %2924 }
0x1636   : > { %v1648_v51 = vmul.f32 %v2925_v48, %v1646_v47  ;;  %vm1653_vm7 = vweird.f32 %v2925_v48 }
0x1637   : > { %vm1654_vm9 = vmor %vm1652_vm8, %vm1653_vm7 }
0x1638   : > { %v1649_v52 = vsub.f32 1.0, %v1648_v51 }
0x163a   : > { %v1650_v53 = vmul.f32 %v2925_v48, %v1649_v52 }
0x163c   : > { %v1651_v38 = vadd.f32 %v2925_v48, %v1650_v53 }
0x163e   : > { %v1655_v57 = vsel %vm1654_vm9, %v2925_v48, %v1651_v38 }
0x163f   : > { %v1660_v59 = vsel %vm1657_vm10, %v1659_v58, %v1655_v57 }
0x1640   : > { %v1672_v13 = vsub.f32 1.0, %v1660_v59  ;;  %v1680_v14 = vmul.f32 %v1678_v15, %v1660_v59 }
0x1660   : > { %v1663_v60 = vpop.permute.xlu0 %1662 }
0x1661   : > { %v1665_v61 = vmul.f32 %v1663_v60, %v1660_v59 }
0x1663   : > { %1667 = vrot.lane.b32.xlu2 %v1665_v61, %s3053_s28 }
0x169e   : > { %v1720_v63 = vpop.permute.xlu1 %1719 }
0x169f   : > { %v1722_v0 = vmul.f32 %v1720_v63, %v1717_v62 }
0x16a1   : > { %v1726_v1 = vadd.f32 %v1725_v17, %v1722_v0 }
0x16a3   : > { %v1729_v49 = vperm.slane %v1726_v1, 2  ;;  %v1758_v2 = vrot.slane %v1726_v1, 2  ;;  %v1867_v6 = vrot.slane %v1726_v1, 1 }
0x16a5   : > { %1759 = vrot.lane.b32.xlu0 %v1758_v2, %s3910_s17  ;;  %v3548_v7 = vsel %vm1283_vm13, %v1729_v49, %v3511_v5 }
0x16bd   : > { %v1668_v9 = vpop.permute.xlu2 %1667 }
0x16be   : > { %v1670_v10 = vadd.f32 %v1668_v9, %v3345_v40 }
0x16c0   : > { %2926 = vtanh.f32 %v1670_v10 }
0x16c6   : > { %v2927_v56 = vpop.eup %2926 }
0x16c7   : > { %1674 = vrot.lane.b32.xlu1 %v2927_v56, %s3909_s25 }
0x1717   : > { %v1760_v54 = vpop.permute.xlu0 %1759 }
0x1718   : > { %2752 = vmatmul.msk.f32.vlgmr.msra.gmra.mxu1 %vm503_vm5, %v1760_v54 }
0x1739   : > { %v1675_v3 = vpop.permute.xlu1 %1674 }
0x173a   : > { %v1677_v16 = vmul.f32 %v1675_v3, %v1672_v13 }
0x173c   : > { %v3554_v18 = vadd.f32 %v1680_v14, %v1677_v16 }
0x173e   : > { %v1727_v5 = vperm.slane %v3554_v18, 5  ;;  %v1732_v20 = vrot.slane %v3554_v18, 5  ;;  %v1822_v62 = vrot.slane %v3554_v18, 7 }
0x1740   : > { %1733 = vrot.lane.b32.xlu2 %v1732_v20, %s3909_s25  ;;  %v3562_v21 = vsel %vm1288_vm12, %v1727_v5, %v3525_v12 }
0x1795   : > { %v1780_v22 = vpop.f32.mrf.mxu1 }
0x1796   : > { %v1781_v4 = vadd.f32 %v1780_v22, %v3325_v19 }
0x1798   : > { %v1827_v11 = vrot.slane %v1781_v4, 7 }
0x179a   : > { %v1734_v50 = vpop.permute.xlu2 %1733  ;;  %1851 = vrot.lane.b32.xlu1 %v1827_v11, %s3052_s14  ;;  %1828 = vrot.lane.b32.xlu0 %v1827_v11, %s3907_s16 }
0x179b   : > { %2751 = vmatmul.msk.f32.vlgmr.msra.gmra.mxu2 %vm503_vm5, %v1734_v50 }
0x180c   : > { %v1829_v23 = vpop.permute.xlu0 %1828  ;;  %v1852_v45 = vpop.permute.xlu1 %1851 }
0x180d   : > { %v1831_v24 = vadd.f32 %v1829_v23, %v3345_v40 }
0x180f   : > { %v2754_v25 = vmul.f32 -1.442695, %v1831_v24 }
0x1811   : > { %2928 = vpow2.f32 %v2754_v25 }
0x1817   : > { %v2929_v28 = vpop.eup %2928 }
0x1818   : > { %v1835_v29 = vadd.f32 1.0, %v2929_v28 }
0x181a   : > { %2930 = vrcp.f32 %v1835_v29  ;;  %v1847_v17 = vand.u32 2147483648, %v1835_v29  ;;  %v1845_v41 = vand.u32 2147483647, %v1835_v29  ;;  %vm1841_vm13 = vweird.f32 %v1835_v29 }
0x181c   : > { %v1848_v43 = vor.u32 1.1754944e-38, %v1847_v17  ;;  %vm1846_vm11 = vcmp.eq.f32.partialorder %v1845_v41, 8.507059e+37 }
0x181e   : > { %v1754_v12 = vpop.f32.mrf.mxu2 }
0x181f   : > { %v1755_v30 = vadd.f32 %v3536_v37, %v1754_v12 }
0x1820   : > { %v2931_v8 = vpop.eup %2930 }
0x1821   : > { %v1837_v31 = vmul.f32 %v2931_v8, %v1835_v29  ;;  %v1784_v32 = vrot.slane %v1755_v30, 2  ;;  %vm1842_vm12 = vweird.f32 %v2931_v8 }
0x1822   : > { %vm1843_vm3 = vmor %vm1841_vm13, %vm1842_vm12 }
0x1823   : > { %v1838_v33 = vsub.f32 1.0, %v1837_v31  ;;  %v1786_v34 = vadd.f32 %v1784_v32, %v3345_v40  ;;  %1806 = vrot.lane.b32.xlu2 %v1784_v32, %s3908_s22 }
0x1825   : > { %v2753_v36 = vmul.f32 -1.442695, %v1786_v34  ;;  %v1839_v39 = vmul.f32 %v2931_v8, %v1838_v33 }
0x1827   : > { %2932 = vpow2.f32 %v2753_v36  ;;  %v1840_v42 = vadd.f32 %v2931_v8, %v1839_v39 }
0x1829   : > { %v1844_v44 = vsel %vm1843_vm3, %v2931_v8, %v1840_v42 }
0x182a   : > { %v1849_v46 = vsel %vm1846_vm11, %v1848_v43, %v1844_v44 }
0x182b   : > { %v1854_v47 = vmul.f32 %v1852_v45, %v1849_v46  ;;  %v1869_v48 = vmul.f32 %v1867_v6, %v1849_v46  ;;  %v1861_v15 = vsub.f32 1.0, %v1849_v46 }
0x182d   : > { %v2933_v51 = vpop.eup %2932  ;;  %1856 = vrot.lane.b32.xlu0 %v1854_v47, %s3053_s28 }
0x182e   : > { %v1790_v52 = vadd.f32 1.0, %v2933_v51 }
0x1830   : > { %2934 = vrcp.f32 %v1790_v52  ;;  %v1802_v35 = vand.u32 2147483648, %v1790_v52  ;;  %v1800_v58 = vand.u32 2147483647, %v1790_v52  ;;  %vm1796_vm4 = vweird.f32 %v1790_v52 }
0x1832   : > { %v1803_v60 = vor.u32 1.1754944e-38, %v1802_v35  ;;  %vm1801_vm7 = vcmp.eq.f32.partialorder %v1800_v58, 8.507059e+37 }
0x1836   : > { %v2935_v53 = vpop.eup %2934 }
0x1837   : > { %v1792_v38 = vmul.f32 %v2935_v53, %v1790_v52  ;;  %vm1797_vm14 = vweird.f32 %v2935_v53 }
0x1838   : > { %vm1798_vm6 = vmor %vm1796_vm4, %vm1797_vm14 }
0x1839   : > { %v1793_v55 = vsub.f32 1.0, %v1792_v38 }
0x183b   : > { %v1794_v57 = vmul.f32 %v2935_v53, %v1793_v55 }
0x183d   : > { %v1795_v59 = vadd.f32 %v2935_v53, %v1794_v57 }
0x183f   : > { %v1799_v61 = vsel %vm1798_vm6, %v2935_v53, %v1795_v59 }
0x1840   : > { %v1804_v63 = vsel %vm1801_vm7, %v1803_v60, %v1799_v61 }
0x1841   : > { %v1824_v0 = vmul.f32 %v1822_v62, %v1804_v63  ;;  %v1816_v22 = vsub.f32 1.0, %v1804_v63 }
0x187d   : > { %v1807_v1 = vpop.permute.xlu2 %1806 }
0x187e   : > { %v1809_v49 = vmul.f32 %v1807_v1, %v1804_v63 }
0x1880   : > { %1811 = vrot.lane.b32.xlu1 %v1809_v49, %s3053_s28 }
0x189f   : > { %v1857_v2 = vpop.permute.xlu0 %1856 }
0x18a0   : > { %v1859_v9 = vadd.f32 %v1857_v2, %v3345_v40 }
0x18a2   : > { %2936 = vtanh.f32 %v1859_v9 }
0x18a8   : > { %v2937_v10 = vpop.eup %2936 }
0x18a9   : > { %1863 = vrot.lane.b32.xlu2 %v2937_v10, %s3909_s25 }
0x18f2   : > { %v1812_v56 = vpop.permute.xlu1 %1811 }
0x18f3   : > { %v1814_v54 = vadd.f32 %v1812_v56, %v3345_v40 }
0x18f5   : > { %2938 = vtanh.f32 %v1814_v54 }
0x18fb   : > { %v2939_v13 = vpop.eup %2938 }
0x18fc   : > { %1818 = vrot.lane.b32.xlu0 %v2939_v13, %s3909_s25 }
0x1903   : > { %v1864_v3 = vpop.permute.xlu2 %1863 }
0x1904   : > { %v1866_v14 = vmul.f32 %v1864_v3, %v1861_v15 }
0x1906   : > { %v3579_v16 = vadd.f32 %v1869_v48, %v1866_v14 }
0x1908   : > { %v1873_v18 = vperm.slane %v3579_v16, 1  ;;  %v1902_v5 = vrot.slane %v3579_v16, 1 }
0x190a   : > { %1903 = vrot.lane.b32.xlu1 %v1902_v5, %s3910_s17  ;;  %v3589_v20 = vsel %vm1133_vm2, %v1873_v18, %v3548_v7 }
0x196e   : > { %v1819_v4 = vpop.permute.xlu0 %1818 }
0x196f   : > { %v1821_v11 = vmul.f32 %v1819_v4, %v1816_v22 }
0x1971   : > { %v1825_v50 = vadd.f32 %v1824_v0, %v1821_v11 }
0x1973   : > { %v1871_v23 = vperm.slane %v1825_v50, 6  ;;  %v1876_v24 = vrot.slane %v1825_v50, 6  ;;  %v1966_v47 = vrot.slane %v1825_v50, 7 }
0x1975   : > { %1877 = vrot.lane.b32.xlu2 %v1876_v24, %s3909_s25  ;;  %v3595_v25 = vsel %vm1138_vm0, %v1871_v23, %v3562_v21  ;;  %v430_v23 = vld [vmem:[%s3893_s10 + $0x10] sm:$0xff] }
0x197c   : > { %v1904_v28 = vpop.permute.xlu1 %1903 }
0x197d   : > { %2756 = vmatmul.msk.f32.vlgmr.msrb.gmra.mxu0 %vm503_vm5, %v1904_v28 }
0x19cf   : > { %v1878_v29 = vpop.permute.xlu2 %1877 }
0x19d0   : > { %2755 = vmatmul.msk.f32.vlgmr.msrb.gmra.mxu3 %vm503_vm5, %v1878_v29 }
0x19fa   : > { %v1924_v7 = vpop.f32.mrf.mxu0 }
0x19fb   : > { %v1925_v12 = vadd.f32 %v1924_v7, %v3325_v19  ;;  %v429_v7 = vld [vmem:[%s3893_s10 + $0x8] sm:$0xff] }
0x19fc   : > { %2061 = vmatpush.msrb.mxu1 %v429_v7 }
0x19fd   : > { %1994 = vrot.lane.b32.xlu1 %v1925_v12, %s3052_s14  ;;  %1971 = vrot.lane.b32.xlu0 %v1925_v12, %s3907_s16  ;;  %v428_v12 = vld [vmem:[%s3893_s10] sm:$0xff]  ;;  %s3658_s16 = sshll.u32 %s3146_s1, 7 }
0x19fe   : > { %2062 = vmatpush.msrb.mxu1 %v428_v12  ;;  %s2100_s24 = sadd.s32 1, %s3658_s16 }
0x19ff   : > { %s2101_s27 = sld [smem:[#allocation3 + %s2100_s24]] }
0x1a05   : > { %p2102_p11 = scmp.gt.s32.totalorder %s2101_s27, 0  ;;  %s2208_s27 = sadd.s32 4, %s3658_s16 }
0x1a06   : > { %s2209_s21 = sld [smem:[#allocation3 + %s2208_s27]] }
0x1a0c   : > { %p2210_p0 = scmp.gt.s32.totalorder %s2209_s21, 0 }
0x1a53   : > { %v1898_v30 = vpop.f32.mrf.mxu3 }
0x1a54   : > { %v1899_v8 = vadd.f32 %v3536_v37, %v1898_v30 }
0x1a56   : > { %v1928_v31 = vrot.slane %v1899_v8, 1 }
0x1a58   : > { %v1930_v21 = vadd.f32 %v1928_v31, %v3345_v40  ;;  %1950 = vrot.lane.b32.xlu2 %v1928_v31, %s3908_s22  ;;  %s2104_s22 = scalar_select %p2102_p11, 1, 0 }
0x1a5a   : > { %v2757_v32 = vmul.f32 -1.442695, %v1930_v21 }
0x1a5c   : > { %2940 = vpow2.f32 %v2757_v32 }
0x1a62   : > { %v2941_v33 = vpop.eup %2940 }
0x1a63   : > { %v1934_v34 = vadd.f32 1.0, %v2941_v33  ;;  %v3640_v33 = vand.u32 127, %v853_v26 }
0x1a65   : > { %2942 = vrcp.f32 %v1934_v34  ;;  %v1946_v41 = vand.u32 2147483648, %v1934_v34  ;;  %v1944_v37 = vand.u32 2147483647, %v1934_v34  ;;  %vm1940_vm2 = vweird.f32 %v1934_v34 }
0x1a67   : > { %v1947_v45 = vor.u32 1.1754944e-38, %v1946_v41  ;;  %vm1945_vm9 = vcmp.eq.f32.partialorder %v1944_v37, 8.507059e+37 }
0x1a6b   : > { %v2943_v17 = vpop.eup %2942 }
0x1a6c   : > { %v1936_v36 = vmul.f32 %v2943_v17, %v1934_v34  ;;  %vm1941_vm0 = vweird.f32 %v2943_v17  ;;  %v397_v34 = vld [vmem:[%s3894_s11 + $0xd] sm:$0x1] }
0x1a6d   : > { %vm1942_vm8 = vmor %vm1940_vm2, %vm1941_vm0 }
0x1a6e   : > { %v1937_v19 = vsub.f32 1.0, %v1936_v36 }
0x1a6f   : > { %v1972_v39 = vpop.permute.xlu0 %1971  ;;  %v1995_v63 = vpop.permute.xlu1 %1994 }
0x1a70   : > { %v1974_v42 = vadd.f32 %v1972_v39, %v3345_v40  ;;  %v1938_v43 = vmul.f32 %v2943_v17, %v1937_v19  ;;  %v398_v19 = vld [vmem:[%s3894_s11 + $0xe] sm:$0x1] }
0x1a72   : > { %v2758_v44 = vmul.f32 -1.442695, %v1974_v42  ;;  %v1939_v6 = vadd.f32 %v2943_v17, %v1938_v43  ;;  %v3664_v42 = vld [vmem:[%s3894_s11 + $0x10] sm:$0x1f] }
0x1a74   : > { %2944 = vpow2.f32 %v2758_v44  ;;  %v1943_v46 = vsel %vm1942_vm8, %v2943_v17, %v1939_v6 }
0x1a75   : > { %v1948_v48 = vsel %vm1945_vm9, %v1947_v45, %v1943_v46 }
0x1a76   : > { %v1968_v51 = vmul.f32 %v1966_v47, %v1948_v48  ;;  %v1960_v16 = vsub.f32 1.0, %v1948_v48 }
0x1a7a   : > { %v2945_v52 = vpop.eup %2944 }
0x1a7b   : > { %v1978_v53 = vadd.f32 1.0, %v2945_v52 }
0x1a7d   : > { %2946 = vrcp.f32 %v1978_v53  ;;  %v1990_v57 = vand.u32 2147483648, %v1978_v53  ;;  %v1988_v59 = vand.u32 2147483647, %v1978_v53  ;;  %vm1984_vm12 = vweird.f32 %v1978_v53 }
0x1a7f   : > { %v1991_v61 = vor.u32 1.1754944e-38, %v1990_v57  ;;  %vm1989_vm3 = vcmp.eq.f32.partialorder %v1988_v59, 8.507059e+37 }
0x1a83   : > { %v2947_v38 = vpop.eup %2946 }
0x1a84   : > { %v1980_v55 = vmul.f32 %v2947_v38, %v1978_v53  ;;  %vm1985_vm10 = vweird.f32 %v2947_v38 }
0x1a85   : > { %vm1986_vm13 = vmor %vm1984_vm12, %vm1985_vm10 }
0x1a86   : > { %v1981_v35 = vsub.f32 1.0, %v1980_v55 }
0x1a88   : > { %v1982_v58 = vmul.f32 %v2947_v38, %v1981_v35 }
0x1a8a   : > { %v1983_v60 = vadd.f32 %v2947_v38, %v1982_v58 }
0x1a8c   : > { %v1987_v62 = vsel %vm1986_vm13, %v2947_v38, %v1983_v60 }
0x1a8d   : > { %v1992_v0 = vsel %vm1989_vm3, %v1991_v61, %v1987_v62 }
0x1a8e   : > { %v1997_v1 = vmul.f32 %v1995_v63, %v1992_v0  ;;  %v2004_v3 = vsub.f32 1.0, %v1992_v0  ;;  %v2011_v18 = vmul.f32 %v1992_v0, %v1902_v5 }
0x1a90   : > { %1999 = vrot.lane.b32.xlu0 %v1997_v1, %s3053_s28 }
0x1ab2   : > { %v1951_v49 = vpop.permute.xlu2 %1950 }
0x1ab3   : > { %v1953_v2 = vmul.f32 %v1951_v49, %v1948_v48 }
0x1ab5   : > { %1955 = vrot.lane.b32.xlu1 %v1953_v2, %s3053_s28  ;;  %s2212_s28 = scalar_select %p2210_p0, 1, 0 }
0x1b02   : > { %v2000_v9 = vpop.permute.xlu0 %1999 }
0x1b03   : > { %v2002_v10 = vadd.f32 %v2000_v9, %v3345_v40 }
0x1b05   : > { %2948 = vtanh.f32 %v2002_v10 }
0x1b0b   : > { %v2949_v56 = vpop.eup %2948 }
0x1b0c   : > { %2006 = vrot.lane.b32.xlu2 %v2949_v56, %s3909_s25 }
0x1b27   : > { %v1956_v54 = vpop.permute.xlu1 %1955 }
0x1b28   : > { %v1958_v13 = vadd.f32 %v1956_v54, %v3345_v40  ;;  %v431_v40 = vld [vmem:[%s3893_s10 + $0x18] sm:$0xff] }
0x1b29   : > { %2036 = vmatpush.msrb.mxu2 %v431_v40 }
0x1b2a   : > { %2950 = vtanh.f32 %v1958_v13 }
0x1b2b   : > { %2037 = vmatpush.msrb.mxu2 %v430_v23 }
0x1b30   : > { %v2951_v15 = vpop.eup %2950 }
0x1b31   : > { %1962 = vrot.lane.b32.xlu0 %v2951_v15, %s3909_s25 }
0x1b66   : > { %v2007_v14 = vpop.permute.xlu2 %2006 }
0x1b67   : > { %v2009_v22 = vmul.f32 %v2007_v14, %v2004_v3 }
0x1b69   : > { %v2012_v4 = vadd.f32 %v2011_v18, %v2009_v22 }
0x1b6b   : > { %v2015_v11 = vperm.slane %v2012_v4, 0 }
0x1b6d   : > { %v2016_v50 = vsel %vm984_vm1, %v2015_v11, %v3589_v20 }
0x1b6e   : > { %2018 = vrot.lane.b32.xlu1 %v2016_v50, %s3910_s17  ;;  %s2136_s17 = sadd.s32 2, %s3658_s16 }
0x1b6f   : > { %s2137_s26 = sld [smem:[#allocation3 + %s2136_s17]] }
0x1b75   : > { %p2138_p12 = scmp.gt.s32.totalorder %s2137_s26, 0 }
0x1b77   : > { %s2140_s23 = scalar_select %p2138_p12, 1, 0 }
0x1b79   : > { %v2141_v2 = vstv %s2140_s23  ;;  %s2280_s23 = sadd.s32 6, %s3658_s16 }
0x1b7a   : > { %vm2142_vm14 = vcmp.eq.s32.totalorder %v2141_v2, 1 }
0x1ba3   : > { %v1963_v5 = vpop.permute.xlu0 %1962 }
0x1ba4   : > { %v1965_v24 = vmul.f32 %v1963_v5, %v1960_v16 }
0x1ba6   : > { %v1969_v28 = vadd.f32 %v1968_v51, %v1965_v24  ;;  %v2105_v51 = vstv %s2104_s22  ;;  %s2244_s22 = sadd.s32 5, %s3658_s16 }
0x1ba7   : > { %vm2106_vm1 = vcmp.eq.s32.totalorder %v2105_v51, 1  ;;  %s2245_s17 = sld [smem:[#allocation3 + %s2244_s22]] }
0x1ba8   : > { %v2013_v29 = vperm.slane %v1969_v28, 7 }
0x1baa   : > { %v2014_v20 = vsel %vm989_vm15, %v2013_v29, %v3595_v25  ;;  %v2837_v25 = vld [vmem:[%s3894_s11 + $0xc] ss:$0 sm:$0xff]  ;;  %vm2075_vm15 = vcmask 36864  }
0x1bab   : > { %2043 = vrot.lane.b32.xlu2 %v2014_v20, %s3909_s25  ;;  %s2172_s25 = sadd.s32 3, %s3658_s16 }
0x1bac   : > { %s2173_s14 = sld [smem:[#allocation3 + %s2172_s25]] }
0x1bad   : > { %p2246_p1 = scmp.gt.s32.totalorder %s2245_s17, 0  ;;  %s2281_s25 = sld [smem:[#allocation3 + %s2280_s23]] }
0x1baf   : > { %s2248_s26 = scalar_select %p2246_p1, 1, 0 }
0x1bb2   : > { %p2174_p13 = scmp.gt.s32.totalorder %s2173_s14, 0 }
0x1bb3   : > { %p2282_p2 = scmp.gt.s32.totalorder %s2281_s25, 0 }
0x1bb4   : > { %s2176_s24 = scalar_select %p2174_p13, 1, 0 }
0x1bb5   : > { %s2284_s14 = scalar_select %p2282_p2, 1, 0 }
0x1bb6   : > { %v2177_v16 = vstv %s2176_s24  ;;  %s2316_s24 = sadd.s32 7, %s3658_s16  ;;  %s3771_s16 = sld [smem:[#allocation4 + %s3146_s1]] }
0x1bb7   : > { %vm2178_vm6 = vcmp.eq.s32.totalorder %v2177_v16, 1  ;;  %s2317_s27 = sld [smem:[#allocation3 + %s2316_s24]] }
0x1bbc   : > { %p2372_p4 = scmp.gt.s32.totalorder %s3771_s16, 7  ;;  %p2371_p7 = scmp.eq.s32.totalorder %s3771_s16, 7 }
0x1bbd   : > { %p2318_p3 = scmp.gt.s32.totalorder %s2317_s27, 0  ;;  %p2401_p8 = scmp.gt.s32.totalorder %s3771_s16, 6 }
0x1bbe   : > { %s2373_s17 = scalar_select %p2372_p4, 1, 0 }
0x1bbf   : > { %s2320_s21 = scalar_select %p2318_p3, 1, 0 }
0x1bc0   : > { %p2400_p9 = scmp.eq.s32.totalorder %s3771_s16, 6  ;;  %p2430_p10 = scmp.gt.s32.totalorder %s3771_s16, 5 }
0x1bc1   : > { %s2402_s23 = scalar_select %p2401_p8, 1, 0 }
0x1bc2   : > { %s2406_s25 = scalar_select %p2400_p9, 1, 0 }
0x1bc3   : > { %p2429_p11 = scmp.eq.s32.totalorder %s3771_s16, 5  ;;  %p2459_p12 = scmp.gt.s32.totalorder %s3771_s16, 4 }
0x1bc4   : > { %p2458_p13 = scmp.eq.s32.totalorder %s3771_s16, 4  ;;  %p2488_p0 = scmp.gt.s32.totalorder %s3771_s16, 3 }
0x1bc5   : > { %s2435_s24 = scalar_select %p2429_p11, 1, 0 }
0x1bc6   : > { %s2460_s27 = scalar_select %p2459_p12, 1, 0 }
0x1bc7   : > { %p2487_p1 = scmp.eq.s32.totalorder %s3771_s16, 3  ;;  %p2517_p2 = scmp.gt.s32.totalorder %s3771_s16, 2 }
0x1bc8   : > { %p2516_p3 = scmp.eq.s32.totalorder %s3771_s16, 2  ;;  %p2546_p4 = scmp.gt.s32.totalorder %s3771_s16, 1 }
0x1bc9   : > { %s2493_s22 = scalar_select %p2487_p1, 1, 0 }
0x1bca   : > { %p2575_p8 = scmp.gt.s32.totalorder %s3771_s16, 0  ;;  %p2574_p9 = scmp.eq.s32.totalorder %s3771_s16, 0 }
0x1be0   : > { %v2019_v30 = vpop.permute.xlu1 %2018 }
0x1be1   : > { %2759 = vmatmul.msk.f32.vlgmr.msrb.gmra.mxu2 %vm503_vm5, %v2019_v30 }
0x1c05   : > { %v2044_v8 = vpop.permute.xlu2 %2043 }
0x1c06   : > { %2760 = vmatmul.msk.f32.vlgmr.msrb.gmra.mxu1 %vm503_vm5, %v2044_v8  ;;  %vm3650_vm5 = vcmp.eq.s32.totalorder %v3384_v27, %v3640_v33 }
0x1c64   : > { %v2039_v31 = vpop.f32.mrf.mxu2 }
0x1c83   : > { %v2064_v21 = vpop.f32.mrf.mxu1 }
0x1c84   : > { %v2065_v32 = vadd.f32 %v2064_v21, %v2039_v31 }
0x1c86   : > { %v3645_v17 = vadd.f32 %v2837_v25, %v2065_v32 }
0x1c88   : > { %v2072_v36 = vadd.f32 %v3645_v17, %v397_v34 }
0x1c8a   : > { %v2073_v39 = vperm.slane %v2072_v36, 0  ;;  %v2108_v53 = vrot.slane %v2072_v36, 7 }
0x1c8c   : > { %v2074_v26 = vsel %vm3650_vm5, %v2073_v39, 0.0  ;;  %v2213_v39 = vstv %s2212_s28  ;;  %s2489_s28 = scalar_select %p2488_p0, 1, 0 }
0x1c8d   : > { %v2076_v41 = vsel %vm2075_vm15, %v2074_v26, 0.0  ;;  %vm2214_vm0 = vcmp.eq.s32.totalorder %v2213_v39, 1 }
0x1c8e   : > { %2077 = vadd.xlane.f32.xlu0 %v2076_v41 }
0x1d01   : > { %v2078_v43 = vpop.xlane.xlu0 %2077 }
0x1d02   : > { %v3667_v37 = vadd.f32 %v2078_v43, %v3664_v42 }
0x1d04   : > { %v2080_v44 = vsel %vm2075_vm15, %v3667_v37, -inf }
0x1d05   : > { %v2081_v6 = vrot.slane %v2080_v44, 4 }
0x1d07   : > { %v2082_v45 = vmax.f32 %v2080_v44, %v2081_v6 }
0x1d09   : > { %v2083_v46 = vrot.slane %v2082_v45, 2 }
0x1d0b   : > { %v2084_v47 = vmax.f32 %v2082_v45, %v2083_v46 }
0x1d0d   : > { %v2085_v48 = vrot.slane %v2084_v47, 1 }
0x1d0f   : > { %v3671_v52 = vmax.f32 %v2084_v47, %v2085_v48 }
0x1d11   : > { %vm2087_vm11 = vcmp.ge.f32.partialorder %v3667_v37, %v3671_v52  ;;  %v2103_v38 = vadd.f32 %v3671_v52, %v3645_v17 }
0x1d13   : > { %v2110_v55 = vsel %vm2106_vm1, %v2103_v38, %v2108_v53 }
0x1d14   : > { %v2111_v35 = vperm.slane %v2110_v55, 1  ;;  %v2144_v10 = vrot.slane %v2110_v55, 7 }
0x1d16   : > { %v2112_v57 = vsel %vm3650_vm5, %v2111_v35, 0.0 }
0x1d17   : > { %v2113_v58 = vsel %vm2075_vm15, %v2112_v57, 0.0 }
0x1d18   : > { %2114 = vadd.xlane.f32.xlu1 %v2113_v58  ;;  %v2249_v58 = vstv %s2248_s26  ;;  %s2377_s26 = scalar_select %p2371_p7, 1, 0 }
0x1d19   : > { %vm2250_vm8 = vcmp.eq.s32.totalorder %v2249_v58, 1  ;;  %p2545_p7 = scmp.eq.s32.totalorder %s3771_s16, 1 }
0x1d8b   : > { %v2115_v59 = vpop.xlane.xlu1 %2114 }
0x1d8c   : > { %v3682_v60 = vadd.f32 %v2115_v59, %v3664_v42 }
0x1d8e   : > { %v2117_v61 = vsel %vm2075_vm15, %v3682_v60, -inf }
0x1d8f   : > { %v2118_v62 = vrot.slane %v2117_v61, 4 }
0x1d91   : > { %v2119_v63 = vmax.f32 %v2117_v61, %v2118_v62 }
0x1d93   : > { %v2120_v0 = vrot.slane %v2119_v63, 2 }
0x1d95   : > { %v2121_v1 = vmax.f32 %v2119_v63, %v2120_v0 }
0x1d97   : > { %v2122_v49 = vrot.slane %v2121_v1, 1 }
0x1d99   : > { %v3686_v9 = vmax.f32 %v2121_v1, %v2122_v49 }
0x1d9b   : > { %vm2124_vm4 = vcmp.ge.f32.partialorder %v3682_v60, %v3686_v9  ;;  %v2139_v56 = vadd.f32 %v3686_v9, %v3645_v17 }
0x1d9d   : > { %v2146_v54 = vsel %vm2142_vm14, %v2139_v56, %v2144_v10 }
0x1d9e   : > { %v2147_v13 = vperm.slane %v2146_v54, 2  ;;  %v2180_v24 = vrot.slane %v2146_v54, 7 }
0x1da0   : > { %v2148_v15 = vsel %vm3650_vm5, %v2147_v13, 0.0 }
0x1da1   : > { %v2149_v3 = vsel %vm2075_vm15, %v2148_v15, 0.0 }
0x1da2   : > { %2150 = vadd.xlane.f32.xlu2 %v2149_v3 }
0x1e15   : > { %v2151_v14 = vpop.xlane.xlu2 %2150 }
0x1e16   : > { %v3697_v18 = vadd.f32 %v2151_v14, %v3664_v42 }
0x1e18   : > { %v2153_v22 = vsel %vm2075_vm15, %v3697_v18, -inf }
0x1e19   : > { %v2154_v4 = vrot.slane %v2153_v22, 4 }
0x1e1b   : > { %v2155_v11 = vmax.f32 %v2153_v22, %v2154_v4  ;;  %v2285_v22 = vstv %s2284_s14  ;;  %s2431_s14 = scalar_select %p2430_p10, 1, 0 }
0x1e1c   : > { %vm2286_vm10 = vcmp.eq.s32.totalorder %v2285_v22, 1 }
0x1e1d   : > { %v2156_v50 = vrot.slane %v2155_v11, 2 }
0x1e1f   : > { %v2157_v40 = vmax.f32 %v2155_v11, %v2156_v50 }
0x1e21   : > { %v2158_v23 = vrot.slane %v2157_v40, 1 }
0x1e23   : > { %v3701_v5 = vmax.f32 %v2157_v40, %v2158_v23 }
0x1e25   : > { %vm2160_vm7 = vcmp.ge.f32.partialorder %v3697_v18, %v3701_v5  ;;  %v2175_v28 = vadd.f32 %v3701_v5, %v3645_v17 }
0x1e27   : > { %v2182_v29 = vsel %vm2178_vm6, %v2175_v28, %v2180_v24  ;;  %vm2353_vm6 = vcmp.eq.s32.totalorder %v3640_v33, 0 }
0x1e28   : > { %v2183_v20 = vperm.slane %v2182_v29, 3  ;;  %v2216_v41 = vrot.slane %v2182_v29, 7 }
0x1e2a   : > { %v2184_v7 = vsel %vm3650_vm5, %v2183_v20, 0.0 }
0x1e2b   : > { %v2185_v12 = vsel %vm2075_vm15, %v2184_v7, 0.0 }
0x1e2c   : > { %2186 = vadd.xlane.f32.xlu0 %v2185_v12 }
0x1e9f   : > { %v2187_v30 = vpop.xlane.xlu0 %2186 }
0x1ea0   : > { %v3712_v8 = vadd.f32 %v2187_v30, %v3664_v42 }
0x1ea2   : > { %v2189_v25 = vsel %vm2075_vm15, %v3712_v8, -inf }
0x1ea3   : > { %v2190_v31 = vrot.slane %v2189_v25, 4 }
0x1ea5   : > { %v2191_v21 = vmax.f32 %v2189_v25, %v2190_v31 }
0x1ea7   : > { %v2192_v32 = vrot.slane %v2191_v21, 2 }
0x1ea9   : > { %v2193_v34 = vmax.f32 %v2191_v21, %v2192_v32  ;;  %v2321_v21 = vstv %s2320_s21  ;;  %s2464_s21 = scalar_select %p2458_p13, 1, 0 }
0x1eaa   : > { %vm2322_vm13 = vcmp.eq.s32.totalorder %v2321_v21, 1 }
0x1eab   : > { %v2194_v36 = vrot.slane %v2193_v34, 1 }
0x1ead   : > { %v3716_v26 = vmax.f32 %v2193_v34, %v2194_v36  ;;  %v2328_v34 = vrot.slane %v398_v19, 1 }
0x1eaf   : > { %vm2196_vm2 = vcmp.ge.f32.partialorder %v3712_v8, %v3716_v26  ;;  %v2211_v43 = vadd.f32 %v3716_v26, %v3645_v17 }
0x1eb1   : > { %v2218_v44 = vsel %vm2214_vm0, %v2211_v43, %v2216_v41 }
0x1eb2   : > { %v2219_v6 = vperm.slane %v2218_v44, 4  ;;  %v2252_v61 = vrot.slane %v2218_v44, 7 }
0x1eb4   : > { %v2220_v45 = vsel %vm3650_vm5, %v2219_v6, 0.0 }
0x1eb5   : > { %v2221_v46 = vsel %vm2075_vm15, %v2220_v45, 0.0 }
0x1eb6   : > { %2222 = vadd.xlane.f32.xlu1 %v2221_v46 }
0x1f29   : > { %v2223_v47 = vpop.xlane.xlu1 %2222 }
0x1f2a   : > { %v3727_v48 = vadd.f32 %v2223_v47, %v3664_v42 }
0x1f2c   : > { %v2225_v51 = vsel %vm2075_vm15, %v3727_v48, -inf }
0x1f2d   : > { %v2226_v53 = vrot.slane %v2225_v51, 4 }
0x1f2f   : > { %v2227_v38 = vmax.f32 %v2225_v51, %v2226_v53 }
0x1f31   : > { %v2228_v55 = vrot.slane %v2227_v38, 2 }
0x1f33   : > { %v2229_v35 = vmax.f32 %v2227_v38, %v2228_v55 }
0x1f35   : > { %v2230_v57 = vrot.slane %v2229_v35, 1 }
0x1f37   : > { %v3731_v59 = vmax.f32 %v2229_v35, %v2230_v57 }
0x1f39   : > { %vm2232_vm9 = vcmp.ge.f32.partialorder %v3727_v48, %v3731_v59  ;;  %v2247_v62 = vadd.f32 %v3731_v59, %v3645_v17 }
0x1f3b   : > { %v2254_v63 = vsel %vm2250_vm8, %v2247_v62, %v2252_v61  ;;  %vm2355_vm8 = vcmask 39936  }
0x1f3c   : > { %v2255_v0 = vperm.slane %v2254_v63, 5  ;;  %v2288_v11 = vrot.slane %v2254_v63, 7 }
0x1f3e   : > { %v2256_v1 = vsel %vm3650_vm5, %v2255_v0, 0.0 }
0x1f3f   : > { %v2257_v49 = vsel %vm2075_vm15, %v2256_v1, 0.0 }
0x1f40   : > { %2258 = vadd.xlane.f32.xlu2 %v2257_v49 }
0x1fb3   : > { %v2259_v2 = vpop.xlane.xlu2 %2258 }
0x1fb4   : > { %v3742_v10 = vadd.f32 %v2259_v2, %v3664_v42 }
0x1fb6   : > { %v2261_v56 = vsel %vm2075_vm15, %v3742_v10, -inf }
0x1fb7   : > { %v2262_v54 = vrot.slane %v2261_v56, 4 }
0x1fb9   : > { %v2263_v13 = vmax.f32 %v2261_v56, %v2262_v54 }
0x1fbb   : > { %v2264_v15 = vrot.slane %v2263_v13, 2 }
0x1fbd   : > { %v2265_v3 = vmax.f32 %v2263_v13, %v2264_v15 }
0x1fbf   : > { %v2266_v14 = vrot.slane %v2265_v3, 1 }
0x1fc1   : > { %v3746_v4 = vmax.f32 %v2265_v3, %v2266_v14 }
0x1fc3   : > { %vm2268_vm12 = vcmp.ge.f32.partialorder %v3742_v10, %v3746_v4  ;;  %v2283_v50 = vadd.f32 %v3746_v4, %v3645_v17 }
0x1fc5   : > { %v2290_v40 = vsel %vm2286_vm10, %v2283_v50, %v2288_v11 }
0x1fc6   : > { %v2291_v23 = vperm.slane %v2290_v40, 6  ;;  %v2324_v36 = vrot.slane %v2290_v40, 7 }
0x1fc8   : > { %v2292_v16 = vsel %vm3650_vm5, %v2291_v23, 0.0  ;;  %vm2331_vm5 = vcmask 39943   ;;  %v2374_v23 = vstv %s2373_s17  ;;  %s2518_s17 = scalar_select %p2517_p2, 1, 0 }
0x1fc9   : > { %v2293_v24 = vsel %vm2075_vm15, %v2292_v16, 0.0  ;;  %v2378_v16 = vstv %s2377_s26  ;;  %s2522_s26 = scalar_select %p2516_p3, 1, 0 }
0x1fca   : > { %2294 = vadd.xlane.f32.xlu0 %v2293_v24 }
0x203d   : > { %v2295_v28 = vpop.xlane.xlu0 %2294 }
0x203e   : > { %v2296_v29 = vadd.f32 %v2295_v28, %v3664_v42 }
0x2040   : > { %v2297_v20 = vsel %vm2075_vm15, %v2296_v29, -inf }
0x2041   : > { %v2298_v7 = vrot.slane %v2297_v20, 4 }
0x2043   : > { %v2299_v12 = vmax.f32 %v2297_v20, %v2298_v7 }
0x2045   : > { %v2300_v30 = vrot.slane %v2299_v12, 2 }
0x2047   : > { %v2301_v25 = vmax.f32 %v2299_v12, %v2300_v30 }
0x2049   : > { %v2302_v31 = vrot.slane %v2301_v25, 1 }
0x204b   : > { %v2303_v32 = vmax.f32 %v2301_v25, %v2302_v31 }
0x204d   : > { %vm2304_vm3 = vcmp.ge.f32.partialorder %v2296_v29, %v2303_v32  ;;  %v2319_v42 = vadd.f32 %v2303_v32, %v3645_v17 }
0x204e   : > { %v2305_v39 = vsel %vm2304_vm3, %v3384_v27, 5 }
0x204f   : > { %v2306_v41 = vsel %vm2075_vm15, %v2305_v39, 2147483647  ;;  %v2326_v43 = vsel %vm2322_vm13, %v2319_v42, %v2324_v36  ;;  %v2269_v39 = vsel %vm2268_vm12, %v3384_v27, 5 }
0x2050   : > { %v2307_v44 = vrot.slane %v2306_v41, 4  ;;  %v2330_v6 = vadd.f32 %v2328_v34, %v2326_v43 }
0x2052   : > { %vm2308_vm1 = vcmp.lt.s32.totalorder %v2306_v41, %v2307_v44  ;;  %v2332_v45 = vsel %vm2331_vm5, %v2330_v6, -inf }
0x2053   : > { %v2309_v46 = vsel %vm2308_vm1, %v2306_v41, %v2307_v44  ;;  %2333 = vmax.xlane.f32.xlu1 %v2332_v45  ;;  %vm2375_vm1 = vcmp.eq.s32.totalorder %v2374_v23, 1  ;;  %v2270_v41 = vsel %vm2075_vm15, %v2269_v39, 2147483647  ;;  %v2197_v39 = vsel %vm2196_vm2, %v3384_v27, 5 }
0x2054   : > { %v2310_v47 = vrot.slane %v2309_v46, 2  ;;  %v2271_v43 = vrot.slane %v2270_v41, 4 }
0x2056   : > { %vm2311_vm14 = vcmp.lt.s32.totalorder %v2309_v46, %v2310_v47 }
0x2057   : > { %v2312_v51 = vsel %vm2311_vm14, %v2309_v46, %v2310_v47  ;;  %vm2379_vm14 = vcmp.eq.s32.totalorder %v2378_v16, 1  ;;  %v2403_v47 = vstv %s2402_s23  ;;  %s2547_s23 = scalar_select %p2546_p4, 1, 0 }
0x2058   : > { %v2313_v53 = vrot.slane %v2312_v51, 1  ;;  %vm2404_vm12 = vcmp.eq.s32.totalorder %v2403_v47, 1  ;;  %v2461_v47 = vstv %s2460_s27  ;;  %s374_s27 = sand.u32 1, %s3033_s30  }
0x2059   : > { %vm2462_vm2 = vcmp.eq.s32.totalorder %v2461_v47, 1 }
0x205a   : > { %vm2314_vm0 = vcmp.lt.s32.totalorder %v2312_v51, %v2313_v53 }
0x205b   : > { %v2315_v17 = vsel %vm2314_vm0, %v2312_v51, %v2313_v53 }
0x205c   : > { %v2354_v38 = vsel %vm2353_vm6, %v2315_v17, 0 }
0x205d   : > { %v2356_v55 = vsel %vm2355_vm8, %v2354_v38, 2147483648 }
0x205e   : > { %v2358_v35 = vshra.s32 %v2356_v55, 16  ;;  %v2357_v1 = vand.u32 65535, %v2356_v55 }
0x2060   : > { %v2360_v57 = vcvt.s32.f32 %v2358_v35  ;;  %v2359_v2 = vcvt.s32.f32 %v2357_v1 }
0x2062   : > { %2361 = vmax.xlane.f32.xlu2 %v2360_v57 }
0x20c6   : > { %v2334_v58 = vpop.xlane.xlu1 %2333 }
0x20c7   : > { %vm2335_vm10 = vcmp.ge.f32.partialorder %v2330_v6, %v2334_v58 }
0x20c8   : > { %v2336_v61 = vsel %vm2335_vm10, %v3640_v33, 5  ;;  %vm2272_vm10 = vcmp.lt.s32.totalorder %v2270_v41, %v2271_v43 }
0x20c9   : > { %v2337_v62 = vsel %vm2331_vm5, %v2336_v61, 2147483647  ;;  %v2273_v44 = vsel %vm2272_vm10, %v2270_v41, %v2271_v43  ;;  %v2198_v41 = vsel %vm2075_vm15, %v2197_v39, 2147483647 }
0x20ca   : > { %v2339_v63 = vshra.s32 %v2337_v62, 16  ;;  %v2338_v54 = vand.u32 65535, %v2337_v62  ;;  %v2274_v6 = vrot.slane %v2273_v44, 2  ;;  %v2199_v43 = vrot.slane %v2198_v41, 4 }
0x20cc   : > { %v2341_v0 = vcvt.s32.f32 %v2339_v63  ;;  %v2340_v15 = vcvt.s32.f32 %v2338_v54 }
0x20ce   : > { %2342 = vmin.xlane.f32.xlu0 %v2341_v0 }
0x20d5   : > { %v2362_v49 = vpop.xlane.xlu2 %2361 }
0x20d6   : > { %vm2363_vm13 = vcmp.eq.f32.partialorder %v2360_v57, %v2362_v49  ;;  %v2368_v22 = vcvt.f32.s32 %v2362_v49 }
0x20d7   : > { %v2364_v56 = vsel %vm2363_vm13, %v2359_v2, -inf  ;;  %vm2275_vm13 = vcmp.lt.s32.totalorder %v2273_v44, %v2274_v6 }
0x20d8   : > { %2365 = vmax.xlane.f32.xlu1 %v2364_v56  ;;  %v2369_v40 = vshll.u32 %v2368_v22, 16  ;;  %v2276_v46 = vsel %vm2275_vm13, %v2273_v44, %v2274_v6 }
0x20d9   : > { %v2277_v53 = vrot.slane %v2276_v46, 1 }
0x2141   : > { %v2343_v13 = vpop.xlane.xlu0 %2342 }
0x2142   : > { %vm2344_vm3 = vcmp.eq.f32.partialorder %v2341_v0, %v2343_v13  ;;  %v2349_v50 = vcvt.f32.s32 %v2343_v13  ;;  %v2233_v13 = vsel %vm2232_vm9, %v3384_v27, 5 }
0x2143   : > { %v2345_v3 = vsel %vm2344_vm3, %v2340_v15, inf  ;;  %vm2381_vm3 = vcmp.eq.s32.totalorder %v3640_v33, 7  ;;  %v2234_v15 = vsel %vm2075_vm15, %v2233_v13, 2147483647 }
0x2144   : > { %2346 = vmin.xlane.f32.xlu2 %v2345_v3  ;;  %v2350_v29 = vshll.u32 %v2349_v50, 16  ;;  %v2235_v3 = vrot.slane %v2234_v15, 4 }
0x2146   : > { %vm2236_vm13 = vcmp.lt.s32.totalorder %v2234_v15, %v2235_v3 }
0x214b   : > { %v2366_v14 = vpop.xlane.xlu1 %2365 }
0x214c   : > { %v2367_v11 = vcvt.f32.s32 %v2366_v14  ;;  %v2237_v14 = vsel %vm2236_vm13, %v2234_v15, %v2235_v3 }
0x214d   : > { %v2238_v22 = vrot.slane %v2237_v14, 2 }
0x214e   : > { %v2370_v24 = vadd.s32 %v2369_v40, %v2367_v11  ;;  %v2432_v40 = vstv %s2431_s14  ;;  %s2576_s14 = scalar_select %p2575_p8, 1, 0 }
0x214f   : > { %vm2433_vm9 = vcmp.eq.s32.totalorder %v2432_v40, 1  ;;  %v2494_v40 = vstv %s2493_s22  ;;  %s2596_s22 = scalar_lea.hbm %s3895_s12, %s3146_s1  ;;  %s2588_s1 = scalar_lea.sflag [#allocation6], %s374_s27 }
0x2150   : > { %v2376_v12 = vsel %vm2375_vm1, %v2370_v24, 0  ;;  %v2436_v24 = vstv %s2435_s24  ;;  %s2580_s24 = scalar_select %p2574_p9, 1, 0 }
0x2151   : > { %s2600_s16 = sshll.u32 %s2596_s22, 4  ;;  %s2601_s16 = int_to_ptr.hbm [resolvable:$true] %s2600_s16 }
0x21b7   : > { %v2347_v28 = vpop.xlane.xlu2 %2346 }
0x21b8   : > { %v2348_v20 = vcvt.f32.s32 %v2347_v28 }
0x21ba   : > { %v3775_v7 = vadd.s32 %v2350_v29, %v2348_v20 }
0x21bc   : > { %v2380_v30 = vsel %vm2379_vm14, %v3775_v7, %v2376_v12  ;;  %vm2278_vm14 = vcmp.lt.s32.totalorder %v2276_v46, %v2277_v53 }
0x21bd   : > { %vm2383_vm0 = vcmp.eq.s32.totalorder %v3640_v33, %v2380_v30  ;;  %v2382_v35 = vsel %vm2381_vm3, %v2380_v30, 0  ;;  %v2279_v58 = vsel %vm2278_vm14, %v2276_v46, %v2277_v53  ;;  %vm2437_vm3 = vcmp.eq.s32.totalorder %v2436_v24, 1 }
0x21be   : > { %v2384_v25 = vsel %vm2383_vm0, %v2315_v17, 0  ;;  %v2407_v17 = vstv %s2406_s25  ;;  %vm2410_vm0 = vcmp.eq.s32.totalorder %v3640_v33, 6  ;;  %vm2439_vm14 = vcmp.eq.s32.totalorder %v3640_v33, 5  ;;  %s2551_s25 = scalar_select %p2545_p7, 1, 0 }
0x21bf   : > { %v2385_v31 = vsel %vm2331_vm5, %v2384_v25, 2147483648  ;;  %vm2408_vm1 = vcmp.eq.s32.totalorder %v2407_v17, 1  ;;  %v2465_v17 = vstv %s2464_s21  ;;  %s2997_s21 = scalar_lea.hbm %s3895_s12, 2 }
0x21c0   : > { %v2387_v19 = vshra.s32 %v2385_v31, 16  ;;  %v2386_v32 = vand.u32 65535, %v2385_v31 }
0x21c2   : > { %v2389_v21 = vcvt.s32.f32 %v2387_v19  ;;  %v2388_v36 = vcvt.s32.f32 %v2386_v32 }
0x21c4   : > { %2390 = vmax.xlane.f32.xlu0 %v2389_v21 }
0x2237   : > { %v2391_v34 = vpop.xlane.xlu0 %2390 }
0x2238   : > { %vm2392_vm8 = vcmp.eq.f32.partialorder %v2389_v21, %v2391_v34  ;;  %v2397_v45 = vcvt.f32.s32 %v2391_v34 }
0x2239   : > { %v2393_v42 = vsel %vm2392_vm8, %v2388_v36, -inf }
0x223a   : > { %2394 = vmax.xlane.f32.xlu1 %v2393_v42  ;;  %v2398_v38 = vshll.u32 %v2397_v45, 16 }
0x22ad   : > { %v2395_v51 = vpop.xlane.xlu1 %2394 }
0x22ae   : > { %v2396_v10 = vcvt.f32.s32 %v2395_v51 }
0x22b0   : > { %v2399_v4 = vadd.s32 %v2398_v38, %v2396_v10 }
0x22b2   : > { %v2405_v55 = vsel %vm2404_vm12, %v2399_v4, 0  ;;  %vm2239_vm12 = vcmp.lt.s32.totalorder %v2237_v14, %v2238_v22 }
0x22b3   : > { %v2409_v57 = vsel %vm2408_vm1, %v3775_v7, %v2405_v55  ;;  %v2240_v50 = vsel %vm2239_vm12, %v2237_v14, %v2238_v22  ;;  %vm2466_vm12 = vcmp.eq.s32.totalorder %v2465_v17, 1  ;;  %v2490_v22 = vstv %s2489_s28 }
0x22b4   : > { %v2411_v61 = vsel %vm2410_vm0, %v2409_v57, %v2382_v35  ;;  %vm2412_vm8 = vcmp.eq.s32.totalorder %v3640_v33, %v2409_v57  ;;  %v2241_v16 = vrot.slane %v2240_v50, 1 }
0x22b5   : > { %v2413_v62 = vsel %vm2412_vm8, %v2279_v58, 0 }
0x22b6   : > { %v2414_v63 = vsel %vm2331_vm5, %v2413_v62, 2147483648  ;;  %vm2242_vm1 = vcmp.lt.s32.totalorder %v2240_v50, %v2241_v16 }
0x22b7   : > { %v2416_v0 = vshra.s32 %v2414_v63, 16  ;;  %v2415_v49 = vand.u32 65535, %v2414_v63  ;;  %v2243_v12 = vsel %vm2242_vm1, %v2240_v50, %v2241_v16 }
0x22b9   : > { %v2418_v1 = vcvt.s32.f32 %v2416_v0  ;;  %v2417_v56 = vcvt.s32.f32 %v2415_v49 }
0x22bb   : > { %2419 = vmax.xlane.f32.xlu2 %v2418_v1 }
0x232e   : > { %v2420_v2 = vpop.xlane.xlu2 %2419 }
0x232f   : > { %vm2421_vm10 = vcmp.eq.f32.partialorder %v2418_v1, %v2420_v2  ;;  %v2426_v11 = vcvt.f32.s32 %v2420_v2  ;;  %v2161_v2 = vsel %vm2160_vm7, %v3384_v27, 5  ;;  %vm2491_vm7 = vcmp.eq.s32.totalorder %v2490_v22, 1 }
0x2330   : > { %v2422_v54 = vsel %vm2421_vm10, %v2417_v56, -inf  ;;  %vm2200_vm10 = vcmp.lt.s32.totalorder %v2198_v41, %v2199_v43  ;;  %v2162_v56 = vsel %vm2075_vm15, %v2161_v2, 2147483647  ;;  %v2548_v2 = vstv %s2547_s23  ;;  %s2991_s23 = sshra.s32 %s2601_s16, 4  ;;  %s2992_s23 = int_to_ptr.hbm [resolvable:$true] %s2991_s23 }
0x2331   : > { %2423 = vmax.xlane.f32.xlu0 %v2422_v54  ;;  %v2427_v28 = vshll.u32 %v2426_v11, 16  ;;  %v2201_v44 = vsel %vm2200_vm10, %v2198_v41, %v2199_v43  ;;  %v2163_v54 = vrot.slane %v2162_v56, 4  ;;  %vm2495_vm10 = vcmp.eq.s32.totalorder %v2494_v40, 1  ;;  %p2998_p13 = scmp.lt.s32.totalorder %s2992_s23, %s3895_s12 }
0x2332   : > { %v2202_v6 = vrot.slane %v2201_v44, 2  ;;  %v2519_v43 = vstv %s2518_s17  ;;  %s375_s17 = scalar_lea.vmem [#allocation5], %s374_s27 }
0x2334   : > { %vm2203_vm13 = vcmp.lt.s32.totalorder %v2201_v44, %v2202_v6 }
0x2335   : > { %v2204_v46 = vsel %vm2203_vm13, %v2201_v44, %v2202_v6 }
0x2336   : > { %v2205_v53 = vrot.slane %v2204_v46, 1 }
0x23a4   : > { %v2424_v23 = vpop.xlane.xlu0 %2423 }
0x23a5   : > { %v2425_v48 = vcvt.f32.s32 %v2424_v23 }
0x23a7   : > { %v2428_v59 = vadd.s32 %v2427_v28, %v2425_v48 }
0x23a9   : > { %v2434_v29 = vsel %vm2433_vm9, %v2428_v59, 0  ;;  %vm2206_vm9 = vcmp.lt.s32.totalorder %v2204_v46, %v2205_v53 }
0x23aa   : > { %v2438_v20 = vsel %vm2437_vm3, %v3775_v7, %v2434_v29  ;;  %vm2468_vm3 = vcmp.eq.s32.totalorder %v3640_v33, 4  ;;  %v2207_v55 = vsel %vm2206_vm9, %v2204_v46, %v2205_v53 }
0x23ab   : > { %v2440_v30 = vsel %vm2439_vm14, %v2438_v20, %v2411_v61  ;;  %vm2441_vm0 = vcmp.eq.s32.totalorder %v3640_v33, %v2438_v20 }
0x23ac   : > { %v2442_v25 = vsel %vm2441_vm0, %v2243_v12, 0  ;;  %vm2164_vm0 = vcmp.lt.s32.totalorder %v2162_v56, %v2163_v54 }
0x23ad   : > { %v2443_v31 = vsel %vm2331_vm5, %v2442_v25, 2147483648  ;;  %v2165_v13 = vsel %vm2164_vm0, %v2162_v56, %v2163_v54 }
0x23ae   : > { %v2445_v19 = vshra.s32 %v2443_v31, 16  ;;  %v2444_v32 = vand.u32 65535, %v2443_v31  ;;  %v2166_v15 = vrot.slane %v2165_v13, 2 }
0x23b0   : > { %v2447_v21 = vcvt.s32.f32 %v2445_v19  ;;  %v2446_v36 = vcvt.s32.f32 %v2444_v32 }
0x23b2   : > { %2448 = vmax.xlane.f32.xlu1 %v2447_v21 }
0x2425   : > { %v2449_v34 = vpop.xlane.xlu1 %2448 }
0x2426   : > { %vm2450_vm8 = vcmp.eq.f32.partialorder %v2447_v21, %v2449_v34  ;;  %v2455_v45 = vcvt.f32.s32 %v2449_v34  ;;  %v2125_v21 = vsel %vm2124_vm4, %v3384_v27, 5  ;;  %vm2520_vm4 = vcmp.eq.s32.totalorder %v2519_v43, 1 }
0x2427   : > { %v2451_v42 = vsel %vm2450_vm8, %v2446_v36, -inf  ;;  %vm2167_vm8 = vcmp.lt.s32.totalorder %v2165_v13, %v2166_v15  ;;  %v2126_v32 = vsel %vm2075_vm15, %v2125_v21, 2147483647 }
0x2428   : > { %2452 = vmax.xlane.f32.xlu2 %v2451_v42  ;;  %v2456_v38 = vshll.u32 %v2455_v45, 16  ;;  %v2168_v14 = vsel %vm2167_vm8, %v2165_v13, %v2166_v15  ;;  %v2127_v34 = vrot.slane %v2126_v32, 4  ;;  %v2523_v45 = vstv %s2522_s26  ;;  %s2598_s26 = sshll.u32 %s375_s17, 4  ;;  %s2599_s26 = int_to_ptr.vmem [resolvable:$true] %s2598_s26 }
0x2429   : > { %v2169_v50 = vrot.slane %v2168_v14, 1  ;;  %vm2526_vm8 = vcmp.eq.s32.totalorder %v3640_v33, 2  ;;  %v2552_v13 = vstv %s2551_s25  ;;  %s2993_s25 = scalar_lea.hbm %s2992_s23, 1 }
0x242a   : > { %p2994_p10 = scmp.ne.s32.totalorder %s2992_s23, %s2993_s25  ;;  %p2999_p0 = scmp.lt.s32.totalorder %s2997_s21, %s2993_s25 }
0x242b   : > { %vm2170_vm13 = vcmp.lt.s32.totalorder %v2168_v14, %v2169_v50 }
0x242c   : > { %v2171_v28 = vsel %vm2170_vm13, %v2168_v14, %v2169_v50  ;;  %p2995_p11 = pnand %p2994_p10, %p3163_p5  ;;  %p3000_p1 = por %p2999_p0, %p2998_p13 }
0x242e   : > { %p2996_p12 = pneg %p2995_p11 }
0x2430   : > { %p3001_p2 = pnand %p3000_p1, %p2996_p12 }
0x249b   : > { %v2453_v51 = vpop.xlane.xlu2 %2452 }
0x249c   : > { %v2454_v8 = vcvt.f32.s32 %v2453_v51 }
0x249e   : > { %v2457_v26 = vadd.s32 %v2456_v38, %v2454_v8 }
0x24a0   : > { %v2463_v10 = vsel %vm2462_vm2, %v2457_v26, 0  ;;  %vm2497_vm2 = vcmp.eq.s32.totalorder %v3640_v33, 3 }
0x24a1   : > { %v2467_v4 = vsel %vm2466_vm12, %v3775_v7, %v2463_v10 }
0x24a2   : > { %v2469_v35 = vsel %vm2468_vm3, %v2467_v4, %v2440_v30  ;;  %vm2470_vm1 = vcmp.eq.s32.totalorder %v3640_v33, %v2467_v4  ;;  %vm2128_vm3 = vcmp.lt.s32.totalorder %v2126_v32, %v2127_v34 }
0x24a3   : > { %v2471_v57 = vsel %vm2470_vm1, %v2207_v55, 0  ;;  %v2129_v36 = vsel %vm2128_vm3, %v2126_v32, %v2127_v34 }
0x24a4   : > { %v2472_v58 = vsel %vm2331_vm5, %v2471_v57, 2147483648  ;;  %v2130_v42 = vrot.slane %v2129_v36, 2 }
0x24a5   : > { %v2474_v61 = vshra.s32 %v2472_v58, 16  ;;  %v2473_v63 = vand.u32 65535, %v2472_v58  ;;  %v2088_v58 = vsel %vm2087_vm11, %v3384_v27, 5  ;;  %vm2549_vm11 = vcmp.eq.s32.totalorder %v2548_v2, 1 }
0x24a6   : > { %vm2131_vm1 = vcmp.lt.s32.totalorder %v2129_v36, %v2130_v42 }
0x24a7   : > { %v2476_v62 = vcvt.s32.f32 %v2474_v61  ;;  %v2475_v1 = vcvt.s32.f32 %v2473_v63  ;;  %v2132_v41 = vsel %vm2131_vm1, %v2129_v36, %v2130_v42  ;;  %v2089_v61 = vsel %vm2075_vm15, %v2088_v58, 2147483647 }
0x24a8   : > { %v2133_v6 = vrot.slane %v2132_v41, 1  ;;  %vm2553_vm15 = vcmp.eq.s32.totalorder %v2552_v13, 1 }
0x24a9   : > { %2477 = vmax.xlane.f32.xlu0 %v2476_v62 }
0x24aa   : > { %vm2134_vm0 = vcmp.lt.s32.totalorder %v2132_v41, %v2133_v6 }
0x24ab   : > { %v2135_v53 = vsel %vm2134_vm0, %v2132_v41, %v2133_v6 }
0x251c   : > { %v2478_v0 = vpop.xlane.xlu0 %2477 }
0x251d   : > { %vm2479_vm14 = vcmp.eq.f32.partialorder %v2476_v62, %v2478_v0  ;;  %v2484_v3 = vcvt.f32.s32 %v2478_v0  ;;  %v2090_v62 = vrot.slane %v2089_v61, 4 }
0x251e   : > { %v2480_v49 = vsel %vm2479_vm14, %v2475_v1, -inf  ;;  %vm2524_vm14 = vcmp.eq.s32.totalorder %v2523_v45, 1 }
0x251f   : > { %2481 = vmax.xlane.f32.xlu1 %v2480_v49  ;;  %v2485_v23 = vshll.u32 %v2484_v3, 16  ;;  %vm2091_vm13 = vcmp.lt.s32.totalorder %v2089_v61, %v2090_v62 }
0x2520   : > { %v2092_v63 = vsel %vm2091_vm13, %v2089_v61, %v2090_v62 }
0x2521   : > { %v2093_v0 = vrot.slane %v2092_v63, 2 }
0x2592   : > { %v2482_v11 = vpop.xlane.xlu1 %2481 }
0x2593   : > { %v2483_v18 = vcvt.f32.s32 %v2482_v11 }
0x2595   : > { %v2486_v5 = vadd.s32 %v2485_v23, %v2483_v18 }
0x2597   : > { %v2492_v16 = vsel %vm2491_vm7, %v2486_v5, 0 }
0x2598   : > { %v2496_v24 = vsel %vm2495_vm10, %v3775_v7, %v2492_v16 }
0x2599   : > { %v2498_v48 = vsel %vm2497_vm2, %v2496_v24, %v2469_v35  ;;  %vm2499_vm12 = vcmp.eq.s32.totalorder %v3640_v33, %v2496_v24  ;;  %vm2094_vm2 = vcmp.lt.s32.totalorder %v2092_v63, %v2093_v0 }
0x259a   : > { %v2500_v59 = vsel %vm2499_vm12, %v2171_v28, 0  ;;  %v2095_v49 = vsel %vm2094_vm2, %v2092_v63, %v2093_v0 }
0x259b   : > { %v2501_v29 = vsel %vm2331_vm5, %v2500_v59, 2147483648  ;;  %v2096_v54 = vrot.slane %v2095_v49, 1  ;;  %v2581_v59 = vstv %s2580_s24 }
0x259c   : > { %v2503_v20 = vshra.s32 %v2501_v29, 16  ;;  %v2502_v30 = vand.u32 65535, %v2501_v29 }
0x259d   : > { %vm2097_vm12 = vcmp.lt.s32.totalorder %v2095_v49, %v2096_v54 }
0x259e   : > { %v2505_v12 = vcvt.s32.f32 %v2503_v20  ;;  %v2504_v31 = vcvt.s32.f32 %v2502_v30  ;;  %v2098_v14 = vsel %vm2097_vm12, %v2095_v49, %v2096_v54 }
0x25a0   : > { %2506 = vmax.xlane.f32.xlu2 %v2505_v12 }
0x2613   : > { %v2507_v25 = vpop.xlane.xlu2 %2506 }
0x2614   : > { %vm2508_vm9 = vcmp.eq.f32.partialorder %v2505_v12, %v2507_v25  ;;  %v2513_v39 = vcvt.f32.s32 %v2507_v25 }
0x2615   : > { %v2509_v19 = vsel %vm2508_vm9, %v2504_v31, -inf  ;;  %vm2555_vm9 = vcmp.eq.s32.totalorder %v3640_v33, 1 }
0x2616   : > { %2510 = vmax.xlane.f32.xlu0 %v2509_v19  ;;  %v2514_v46 = vshll.u32 %v2513_v39, 16 }
0x2689   : > { %v2511_v44 = vpop.xlane.xlu0 %2510 }
0x268a   : > { %v2512_v60 = vcvt.f32.s32 %v2511_v44 }
0x268c   : > { %v2515_v9 = vadd.s32 %v2514_v46, %v2512_v60 }
0x268e   : > { %v2521_v47 = vsel %vm2520_vm4, %v2515_v9, 0  ;;  %vm2582_vm4 = vcmp.eq.s32.totalorder %v2581_v59, 1 }
0x268f   : > { %v2525_v51 = vsel %vm2524_vm14, %v3775_v7, %v2521_v47  ;;  %vm2585_vm14 = vcmask 64519  }
0x2690   : > { %v2527_v17 = vsel %vm2526_vm8, %v2525_v51, %v2498_v48  ;;  %vm2528_vm7 = vcmp.eq.s32.totalorder %v3640_v33, %v2525_v51  ;;  %v2577_v48 = vstv %s2576_s14 }
0x2691   : > { %v2529_v38 = vsel %vm2528_vm7, %v2135_v53, 0 }
0x2692   : > { %v2530_v8 = vsel %vm2331_vm5, %v2529_v38, 2147483648 }
0x2693   : > { %v2532_v26 = vshra.s32 %v2530_v8, 16  ;;  %v2531_v4 = vand.u32 65535, %v2530_v8 }
0x2695   : > { %v2534_v10 = vcvt.s32.f32 %v2532_v26  ;;  %v2533_v35 = vcvt.s32.f32 %v2531_v4 }
0x2697   : > { %2535 = vmax.xlane.f32.xlu1 %v2534_v10 }
0x270a   : > { %v2536_v55 = vpop.xlane.xlu1 %2535 }
0x270b   : > { %vm2537_vm10 = vcmp.eq.f32.partialorder %v2534_v10, %v2536_v55  ;;  %v2542_v1 = vcvt.f32.s32 %v2536_v55 }
0x270c   : > { %v2538_v57 = vsel %vm2537_vm10, %v2533_v35, -inf }
0x270d   : > { %2539 = vmax.xlane.f32.xlu2 %v2538_v57  ;;  %v2543_v15 = vshll.u32 %v2542_v1, 16 }
0x2780   : > { %v2540_v56 = vpop.xlane.xlu2 %2539 }
0x2781   : > { %v2541_v37 = vcvt.f32.s32 %v2540_v56 }
0x2783   : > { %v2544_v27 = vadd.s32 %v2543_v15, %v2541_v37 }
0x2785   : > { %v2550_v52 = vsel %vm2549_vm11, %v2544_v27, 0 }
0x2786   : > { %v2554_v3 = vsel %vm2553_vm15, %v3775_v7, %v2550_v52 }
0x2787   : > { %vm2557_vm3 = vcmp.eq.s32.totalorder %v3640_v33, %v2554_v3  ;;  %v2556_v22 = vsel %vm2555_vm9, %v2554_v3, %v2527_v17 }
0x2788   : > { %v2558_v11 = vsel %vm2557_vm3, %v2098_v14, 0 }
0x2789   : > { %v2559_v50 = vsel %vm2331_vm5, %v2558_v11, 2147483648  ;;  %vm2578_vm5 = vcmp.eq.s32.totalorder %v2577_v48, 1 }
0x278a   : > { %v2561_v40 = vshra.s32 %v2559_v50, 16  ;;  %v2560_v18 = vand.u32 65535, %v2559_v50 }
0x278c   : > { %v2563_v23 = vcvt.s32.f32 %v2561_v40  ;;  %v2562_v16 = vcvt.s32.f32 %v2560_v18 }
0x278e   : > { %2564 = vmax.xlane.f32.xlu0 %v2563_v23 }
0x2801   : > { %v2565_v5 = vpop.xlane.xlu0 %2564 }
0x2802   : > { %vm2566_vm1 = vcmp.eq.f32.partialorder %v2563_v23, %v2565_v5  ;;  %v2571_v28 = vcvt.f32.s32 %v2565_v5 }
0x2803   : > { %v2567_v24 = vsel %vm2566_vm1, %v2562_v16, -inf }
0x2804   : > { %2568 = vmax.xlane.f32.xlu1 %v2567_v24  ;;  %v2572_v20 = vshll.u32 %v2571_v28, 16 }
0x2877   : > { %v2569_v29 = vpop.xlane.xlu1 %2568 }
0x2878   : > { %v2570_v12 = vcvt.f32.s32 %v2569_v29 }
0x287a   : > { %v2573_v30 = vadd.s32 %v2572_v20, %v2570_v12 }
0x287c   : > { %v2579_v25 = vsel %vm2578_vm5, %v2573_v30, 0 }
0x287d   : > { %v2583_v31 = vsel %vm2582_vm4, %v3775_v7, %v2579_v25 }
0x287e   : > { %v2584_v19 = vsel %vm2353_vm6, %v2583_v31, %v2556_v22 }
0x287f   : > { %2586 = vst.msk [vmem:[%s375_s17 - $0x7] sm:$0x80] %vm2585_vm14, %v2584_v19 }
0x2880   : > { %3004 = shalt.err (!%p3001_p2)
}
0x2881   : > { %2776 = dma.vmem_to_hbm [thread:$0]  (%p3163_p5), %s2599_s26, 16, %s2601_s16, %s2588_s1  }
0x2882 PF: > { %p2782_p3 = scmp.ge.s32.totalorder %s3041_s13, 2  ;;  %s2612_s27 = sand.u32 1, %s3029_s29  }
0x2883   : > { %s2613_s17 = scalar_lea.sflag [#allocation6], %s2612_s27 }
0x2884   : > { %p2779_p4 = pnand %p2782_p3, %p3167_p6 }
0x2886   : > { %p2780_p7 = pneg %p2779_p4 }
0x2888   : > { %3024 = dma.done.wait (%p2780_p7), %s2613_s17, 16  }
0x2889   : > { %3026 = vsyncadd (%p2780_p7), %s2613_s17, 4294967280  ;;  %p35_p8 = scmp.ge.s32.totalorder %s3150_s15, 4   ;;  %s3913_s29 = smov %s3033_s30 }
0x288a   : > { %s3914_s30 = smov %s3037_s0  ;;  %s3915_s0 = smov %s3161_s18 }
0x288b   : > { %s3916_s13 = smov %s3150_s15  ;;  %37 = sbr.rel (!%p35_p8) target bundleno = 10 (0xa), region = 98 }
0x2890   :  { %2618 = vsyncpa [#allocation6], 1 }
0x2891   :  { %2620 = vsyncpa [#allocation6 + $0x1], 1 }

</bundles_post_ra>
